<compile_context>
chip_gen: v7x
topology: tpu7x:2x2x1
jax: 0.10.0
libtpu: 0.0.40
codegen_flags: <defaults>
</compile_context>

<pallas_src>
import functools

import jax
import jax.numpy as jnp
from jax.experimental import pallas as pl
from jax.experimental.pallas import tpu as pltpu

F32 = jnp.float32
BF16 = jnp.bfloat16
BN_EPS = 1e-5


# ---------------------------------------------------------------------------
# Kernel 1: Convlayer encoder.  All B*N points batched into one matmul chain
# (conv (1,3) done on the VPU + five 1x1 convs on the MXU, BN folded, relu),
# followed by a per-sample max over points.  Output is the concatenated
# [1024 | 512 | 256 | 128] = 1920 feature vector per sample.
# ---------------------------------------------------------------------------
def _encoder_kernel(x_ref, w1, b1, w2, b2, w3, b3, w4, b4, w5, b5, w6, b6,
                    out_ref, *, batch, npts):
    pts = x_ref[...].reshape(batch * npts, 3)             # [B*N, 3]

    # conv1 has a (1,3) kernel == Linear(3 -> 64).  K=3 is far below the MXU
    # contraction width, so compute it on the VPU as three broadcast FMAs.
    h = (pts[:, 0:1] * w1[0:1, :] + pts[:, 1:2] * w1[1:2, :]
         + pts[:, 2:3] * w1[2:3, :] + b1[...])
    h = jnp.maximum(h, 0.0)                               # [B*N, 64]

    def lin(t, w_r, b_r):
        y = jnp.dot(t, w_r[...], preferred_element_type=F32) + b_r[...]
        return jnp.maximum(y, 0.0)

    h = lin(h, w2, b2)            # [B*N, 64]
    h128 = lin(h, w3, b3)         # [B*N, 128]
    h256 = lin(h128, w4, b4)      # [B*N, 256]
    h512 = lin(h256, w5, b5)      # [B*N, 512]
    h1024 = lin(h512, w6, b6)     # [B*N, 1024]

    rows = []
    for b in range(batch):        # maxpool over the N points of each sample
        lo, hi = b * npts, (b + 1) * npts
        rows.append(jnp.concatenate(
            [jnp.max(h1024[lo:hi], axis=0, keepdims=True),
             jnp.max(h512[lo:hi], axis=0, keepdims=True),
             jnp.max(h256[lo:hi], axis=0, keepdims=True),
             jnp.max(h128[lo:hi], axis=0, keepdims=True)], axis=1))
    out_ref[...] = jnp.concatenate(rows, axis=0)          # [B, 1920]


def convlayer_encode(x, layer_params):
    """x: [B, N, 3] -> [B, 1920].  Single grid step; all B*N points batched."""
    B, N, _ = x.shape
    assert N % 8 == 0, "point count must be a multiple of 8 (sublane tiling)"
    full = lambda s: pl.BlockSpec(s, lambda i: (0,) * len(s))

    in_specs = [full((B, N, 3))]
    flat = []
    for w, bb in layer_params:
        in_specs += [full(w.shape), full(bb.shape)]
        flat += [w, bb]

    kernel = functools.partial(_encoder_kernel, batch=B, npts=N)
    return pl.pallas_call(
        kernel,
        grid=(1,),
        in_specs=in_specs,
        out_specs=full((B, 1920)),
        out_shape=jax.ShapeDtypeStruct((B, 1920), F32),
        compiler_params=pltpu.CompilerParams(
            dimension_semantics=("arbitrary",),
            vmem_limit_bytes=32 * 1024 * 1024),
    )(x, *flat)


# ---------------------------------------------------------------------------
# Kernel 2: Latentfeature fusion (Conv1d(3->1) + BN + relu over the 3 scales)
# fused with the fc1/fc2/fc3/fc3_1 head.
# ---------------------------------------------------------------------------
def _fc_head_kernel(fuse_ref, f0_ref, f1_ref, f2_ref,
                    w1, b1, w2, b2, w3, b3, w31, b31,
                    x1_out, x2_out, pc1_out):
    lat = (fuse_ref[0] * f0_ref[...] + fuse_ref[1] * f1_ref[...]
           + fuse_ref[2] * f2_ref[...] + fuse_ref[3])
    lat = jnp.maximum(lat, 0.0)                               # [B, 1920]

    x1 = jnp.maximum(jnp.dot(lat, w1[...], preferred_element_type=F32) + b1[...], 0.0)
    x2 = jnp.maximum(jnp.dot(x1, w2[...], preferred_element_type=F32) + b2[...], 0.0)
    x3 = jnp.maximum(jnp.dot(x2, w3[...], preferred_element_type=F32) + b3[...], 0.0)
    pc1 = jnp.dot(x3, w31[...], preferred_element_type=F32) + b31[...]   # no relu

    x1_out[...] = x1
    x2_out[...] = x2
    pc1_out[...] = pc1


def fc_head(feats, p):
    B = feats[0].shape[0]
    full = lambda s: pl.BlockSpec(s, lambda i: (0,) * len(s))
    args = [p["fuse"], feats[0], feats[1], feats[2],
            p["fc1_w"], p["fc1_b"], p["fc2_w"], p["fc2_b"],
            p["fc3_w"], p["fc3_b"], p["fc31_w"], p["fc31_b"]]
    in_specs = ([pl.BlockSpec(memory_space=pltpu.MemorySpace.SMEM)]
                + [full(a.shape) for a in args[1:]])
    out_shape = (jax.ShapeDtypeStruct((B, 1024), F32),
                 jax.ShapeDtypeStruct((B, 512), F32),
                 jax.ShapeDtypeStruct((B, 192), F32))
    out_specs = (full((B, 1024)), full((B, 512)), full((B, 192)))
    return pl.pallas_call(
        _fc_head_kernel,
        grid=(1,),
        in_specs=in_specs,
        out_specs=out_specs,
        out_shape=out_shape,
        compiler_params=pltpu.CompilerParams(
            dimension_semantics=("arbitrary",),
            vmem_limit_bytes=48 * 1024 * 1024),
    )(*args)


# ---------------------------------------------------------------------------
# Kernel 3: pc2 branch.  fc2_1 (512 -> 128*64) + relu, reshape to [128, 64],
# then Conv1d(128 -> 6).  Weight pre-permuted to [in=512, pos*128 + c] and
# stored in bf16; the whole 8.4 MB weight fits in one grid step, so a single
# [B,512] x [512, 64*128] dot covers all 64 positions.
# ---------------------------------------------------------------------------
def _pc2_kernel(x2_ref, w_ref, b_ref, wc_ref, bc_ref, out_ref, *, batch):
    x2 = x2_ref[...].astype(BF16)                                   # [B, 512]
    f = jnp.dot(x2, w_ref[...], preferred_element_type=F32) + b_ref[...]
    feat = jnp.maximum(f, 0.0)                                      # [B, 64*128]
    feat = feat.reshape(batch, 64, 128).reshape(batch * 64, 128)    # [B*64, 128]
    o = jnp.dot(feat, wc_ref[...], preferred_element_type=F32) + bc_ref[...]
    out_ref[...] = o.reshape(batch, 64, o.shape[-1])                # [B, 64, 6]


def pc2_branch(x2, p):
    B = x2.shape[0]
    full = lambda s: pl.BlockSpec(s, lambda i: (0,) * len(s))
    kernel = functools.partial(_pc2_kernel, batch=B)
    return pl.pallas_call(
        kernel,
        grid=(1,),
        in_specs=[full((B, 512)),
                  full(p["fc21_w"].shape),     # [512, 64*128] bf16
                  full(p["fc21_b"].shape),     # [1, 64*128]
                  full((128, 6)),
                  full((1, 6))],
        out_specs=full((B, 64, 6)),
        out_shape=jax.ShapeDtypeStruct((B, 64, 6), F32),
        compiler_params=pltpu.CompilerParams(
            dimension_semantics=("arbitrary",),
            vmem_limit_bytes=40 * 1024 * 1024),
    )(x2, p["fc21_w"], p["fc21_b"], p["c21_w"], p["c21_b"])


# ---------------------------------------------------------------------------
# Kernel 4: pc3 branch.  fc1_1 (1024 -> 512*128) + relu, reshape to [512, 128],
# then Conv1d chain 512->512->256->M (relu, relu, linear).  The fc1_1 weight
# is pre-permuted to [in=1024, pos*512 + c], stored in bf16 (134 MB total) and
# streamed in position-tiles of pt=16 (16 MB blocks, double-buffered by the
# BlockSpec pipeline).  Each tile is one [B,1024] x [1024, pt*512] dot; the
# grid axis is "parallel" so megacore parts can shard the weight stream.
# ---------------------------------------------------------------------------
def _pc3_kernel(x1_ref, w_ref, b_ref, wc1, bc1, wc2, bc2, wc3, bc3, out_ref,
                *, pt, batch):
    x1 = x1_ref[...].astype(BF16)                                   # [B, 1024]
    f = jnp.dot(x1, w_ref[...], preferred_element_type=F32) + b_ref[...]
    feat = jnp.maximum(f, 0.0)                                      # [B, pt*512]
    feat = feat.reshape(batch, pt, 512).reshape(batch * pt, 512)    # [B*pt, 512]
    g = jnp.maximum(jnp.dot(feat, wc1[...], preferred_element_type=F32) + bc1[...], 0.0)
    h = jnp.maximum(jnp.dot(g, wc2[...], preferred_element_type=F32) + bc2[...], 0.0)
    o = jnp.dot(h, wc3[...], preferred_element_type=F32) + bc3[...]  # [B*pt, M]
    out_ref[...] = o.reshape(batch, pt, o.shape[-1])                # [B, pt, M]


def pc3_branch(x1, p, m, pt=16):
    B = x1.shape[0]
    assert 128 % pt == 0
    kernel = functools.partial(_pc3_kernel, pt=pt, batch=B)

    # Advisory cost: dominated by streaming the bf16 fc1_1 weight from HBM.
    w_bytes = int(p["fc11_w"].size) * 2
    small_bytes = sum(int(p[k].size) * 4 for k in
                      ("fc11_b", "c11_w", "c11_b", "c12_w", "c12_b",
                       "c13_w", "c13_b"))
    bytes_accessed = w_bytes + small_bytes + int(x1.size) * 4 + B * 128 * m * 4
    flops = (2 * B * 1024 * (128 * 512)
             + 2 * (B * 128) * (512 * 512 + 512 * 256 + 256 * m))

    return pl.pallas_call(
        kernel,
        grid=(128 // pt,),
        in_specs=[pl.BlockSpec((B, 1024), lambda i: (0, 0)),
                  pl.BlockSpec((1024, pt * 512), lambda i: (0, i)),   # bf16 tile
                  pl.BlockSpec((1, pt * 512), lambda i: (0, i)),
                  pl.BlockSpec((512, 512), lambda i: (0, 0)),
                  pl.BlockSpec((1, 512), lambda i: (0, 0)),
                  pl.BlockSpec((512, 256), lambda i: (0, 0)),
                  pl.BlockSpec((1, 256), lambda i: (0, 0)),
                  pl.BlockSpec((256, m), lambda i: (0, 0)),
                  pl.BlockSpec((1, m), lambda i: (0, 0))],
        out_specs=pl.BlockSpec((B, pt, m), lambda i: (0, i, 0)),
        out_shape=jax.ShapeDtypeStruct((B, 128, m), F32),
        compiler_params=pltpu.CompilerParams(
            dimension_semantics=("parallel",),
            vmem_limit_bytes=48 * 1024 * 1024),   # headroom on 64 MiB v7x VMEM
        cost_estimate=pl.CostEstimate(
            flops=flops, transcendentals=0, bytes_accessed=bytes_accessed),
    )(x1, p["fc11_w"], p["fc11_b"],
      p["c11_w"], p["c11_b"], p["c12_w"], p["c12_b"], p["c13_w"], p["c13_b"])


# ---------------------------------------------------------------------------
# Parameters (deterministic synthetic init; BN folded in eval mode).
# ---------------------------------------------------------------------------
def init_params(key, crop_point_num):
    bn_scale = 1.0 / jnp.sqrt(jnp.asarray(1.0 + BN_EPS, F32))
    keys = iter(jax.random.split(key, 96))

    def rnd(shape, scale=0.02):
        return jax.random.normal(next(keys), shape, F32) * scale

    enc_dims = [(3, 64), (64, 64), (64, 128), (128, 256), (256, 512), (512, 1024)]
    enc = []
    for _ in range(3):                         # num_scales=3, each_scales_size=1
        layers = []
        for cin, cout in enc_dims:
            layers.append((rnd((cin, cout)) * bn_scale, rnd((1, cout)) * bn_scale))
        enc.append(layers)

    fuse_w = rnd((3,), 0.1) * bn_scale         # Conv1d(3->1) weights (+BN folded)
    fuse_b = rnd((), 0.02) * bn_scale
    p = {"enc": enc, "fuse": jnp.concatenate([fuse_w, fuse_b[None]]).astype(F32)}

    p["fc1_w"] = rnd((1920, 1024)); p["fc1_b"] = rnd((1, 1024))
    p["fc2_w"] = rnd((1024, 512));  p["fc2_b"] = rnd((1, 512))
    p["fc3_w"] = rnd((512, 256));   p["fc3_b"] = rnd((1, 256))
    p["fc31_w"] = rnd((256, 192));  p["fc31_b"] = rnd((1, 192))

    # fc2_1: Linear(512 -> 128*64); torch column index = c*64 + pos.
    # Pre-permute to [in=512, pos*128 + c]; store weight in bf16 (f32 accum).
    w21 = rnd((512, 128 * 64))
    p["fc21_w"] = (jnp.transpose(w21.reshape(512, 128, 64), (0, 2, 1))
                   .reshape(512, 64 * 128).astype(BF16))
    b21 = rnd((128 * 64,))
    p["fc21_b"] = jnp.transpose(b21.reshape(128, 64), (1, 0)).reshape(1, 64 * 128)
    p["c21_w"] = rnd((128, 6)); p["c21_b"] = rnd((1, 6))

    # fc1_1: Linear(1024 -> 512*128); torch column index = c*128 + pos.
    # Pre-permute to [in=1024, pos*512 + c]; store weight in bf16 (f32 accum).
    w11 = rnd((1024, 512 * 128))
    p["fc11_w"] = (jnp.transpose(w11.reshape(1024, 512, 128), (0, 2, 1))
                   .reshape(1024, 128 * 512).astype(BF16))
    b11 = rnd((512 * 128,))
    p["fc11_b"] = jnp.transpose(b11.reshape(512, 128), (1, 0)).reshape(1, 128 * 512)

    m = crop_point_num * 3 // 128
    p["c11_w"] = rnd((512, 512)); p["c11_b"] = rnd((1, 512))
    p["c12_w"] = rnd((512, 256)); p["c12_b"] = rnd((1, 256))
    p["c13_w"] = rnd((256, m));   p["c13_b"] = rnd((1, m))
    return p


# ---------------------------------------------------------------------------
# Full _netG forward.
# ---------------------------------------------------------------------------
def netg_forward(xs, params, crop_point_num):
    feats = [convlayer_encode(xs[i], params["enc"][i]) for i in range(3)]
    x1, x2, pc1_flat = fc_head(feats, params)
    B = x1.shape[0]
    m = crop_point_num * 3 // 128
    # TODO(synk): assumes crop_point_num is a multiple of 128 (as in PF-Net).

    pc1_xyz = pc1_flat.reshape(B, 64, 3)

    pc2 = pc2_branch(x2, params)                          # [B, 64, 6] (pos, chan)
    pc2 = pc2.reshape(B, 64, 2, 3)
    pc2_xyz = (pc1_xyz[:, :, None, :] + pc2).reshape(B, 128, 3)

    pc3 = pc3_branch(x1, params, m)                       # [B, 128, M] (pos, chan)
    pc3 = pc3.reshape(B, 128, crop_point_num // 128, 3)
    pc3_xyz = (pc2_xyz[:, :, None, :] + pc3).reshape(B, crop_point_num, 3)

    return pc1_xyz, pc2_xyz, pc3_xyz


if __name__ == "__main__":
    key = jax.random.PRNGKey(0)
    kx, kp = jax.random.split(key)

    B = 2
    point_scales_list = [64, 32, 16]       # num_scales=3, each_scales_size=1
    crop_point_num = 256

    xs = []
    for n in point_scales_list:
        kx, sub = jax.random.split(kx)
        xs.append(jax.random.normal(sub, (B, n, 3), F32))

    params = init_params(kp, crop_point_num)

    pc1, pc2, pc3 = netg_forward(xs, params, crop_point_num)
    jax.block_until_ready((pc1, pc2, pc3))

    assert pc1.shape == (B, 64, 3)
    assert pc2.shape == (B, 128, 3)
    assert pc3.shape == (B, crop_point_num, 3)
    assert jnp.all(jnp.isfinite(pc1)) and jnp.all(jnp.isfinite(pc2)) and jnp.all(jnp.isfinite(pc3))
    print("KERNEL_OK")
</pallas_src>

<mosaic_0001>
module attributes {stable_mosaic.version = 11 : i64} {
  func.func @_encoder_kernel(%arg0: i32, %arg1: memref<2x64x3xf32, #tpu.memory_space<vmem>>, %arg2: memref<3x64xf32, #tpu.memory_space<vmem>>, %arg3: memref<1x64xf32, #tpu.memory_space<vmem>>, %arg4: memref<64x64xf32, #tpu.memory_space<vmem>>, %arg5: memref<1x64xf32, #tpu.memory_space<vmem>>, %arg6: memref<64x128xf32, #tpu.memory_space<vmem>>, %arg7: memref<1x128xf32, #tpu.memory_space<vmem>>, %arg8: memref<128x256xf32, #tpu.memory_space<vmem>>, %arg9: memref<1x256xf32, #tpu.memory_space<vmem>>, %arg10: memref<256x512xf32, #tpu.memory_space<vmem>>, %arg11: memref<1x512xf32, #tpu.memory_space<vmem>>, %arg12: memref<512x1024xf32, #tpu.memory_space<vmem>>, %arg13: memref<1x1024xf32, #tpu.memory_space<vmem>>, %arg14: memref<2x1920xf32, #tpu.memory_space<vmem>>) attributes {dimension_semantics = [#tpu.dimension_semantics<arbitrary>], iteration_bounds = array<i64: 1>, scalar_prefetch = 0 : i64, scratch_operands = 0 : i64, tpu.core_type = #tpu.core_type<tc>, window_params = [{pipeline_mode = #tpu.pipeline_mode<synchronous>, transform_indices = @transform_0, window_bounds = array<i64: 2, 64, 3>}, {pipeline_mode = #tpu.pipeline_mode<synchronous>, transform_indices = @transform_1, window_bounds = array<i64: 3, 64>}, {pipeline_mode = #tpu.pipeline_mode<synchronous>, transform_indices = @transform_2, window_bounds = array<i64: 1, 64>}, {pipeline_mode = #tpu.pipeline_mode<synchronous>, transform_indices = @transform_3, window_bounds = array<i64: 64, 64>}, {pipeline_mode = #tpu.pipeline_mode<synchronous>, transform_indices = @transform_4, window_bounds = array<i64: 1, 64>}, {pipeline_mode = #tpu.pipeline_mode<synchronous>, transform_indices = @transform_5, window_bounds = array<i64: 64, 128>}, {pipeline_mode = #tpu.pipeline_mode<synchronous>, transform_indices = @transform_6, window_bounds = array<i64: 1, 128>}, {pipeline_mode = #tpu.pipeline_mode<synchronous>, transform_indices = @transform_7, window_bounds = array<i64: 128, 256>}, {pipeline_mode = #tpu.pipeline_mode<synchronous>, transform_indices = @transform_8, window_bounds = array<i64: 1, 256>}, {pipeline_mode = #tpu.pipeline_mode<synchronous>, transform_indices = @transform_9, window_bounds = array<i64: 256, 512>}, {pipeline_mode = #tpu.pipeline_mode<synchronous>, transform_indices = @transform_10, window_bounds = array<i64: 1, 512>}, {pipeline_mode = #tpu.pipeline_mode<synchronous>, transform_indices = @transform_11, window_bounds = array<i64: 512, 1024>}, {pipeline_mode = #tpu.pipeline_mode<synchronous>, transform_indices = @transform_12, window_bounds = array<i64: 1, 1024>}, {pipeline_mode = #tpu.pipeline_mode<synchronous>, transform_indices = @transform_13, window_bounds = array<i64: 2, 1920>}]} {
    %c0 = arith.constant 0 : index
    %c0_0 = arith.constant 0 : index
    %c0_1 = arith.constant 0 : index
    %0 = vector.load %arg1[%c0, %c0_0, %c0_1] : memref<2x64x3xf32, #tpu.memory_space<vmem>>, vector<2x64x3xf32>
    %1 = vector.shape_cast %0 : vector<2x64x3xf32> to vector<128x3xf32>
    %2 = vector.extract_strided_slice %1 {offsets = [0, 0], sizes = [128, 1], strides = [1, 1]} : vector<128x3xf32> to vector<128x1xf32>
    %c0_2 = arith.constant 0 : index
    %c0_3 = arith.constant 0 : index
    %3 = vector.load %arg2[%c0_2, %c0_3] : memref<3x64xf32, #tpu.memory_space<vmem>>, vector<1x64xf32>
    %4 = vector.broadcast %2 : vector<128x1xf32> to vector<128x64xf32>
    %5 = vector.broadcast %3 : vector<1x64xf32> to vector<128x64xf32>
    %6 = arith.mulf %4, %5 : vector<128x64xf32>
    %7 = vector.extract_strided_slice %1 {offsets = [0, 1], sizes = [128, 1], strides = [1, 1]} : vector<128x3xf32> to vector<128x1xf32>
    %c1 = arith.constant 1 : index
    %c0_4 = arith.constant 0 : index
    %8 = vector.load %arg2[%c1, %c0_4] : memref<3x64xf32, #tpu.memory_space<vmem>>, vector<1x64xf32>
    %9 = vector.broadcast %7 : vector<128x1xf32> to vector<128x64xf32>
    %10 = vector.broadcast %8 : vector<1x64xf32> to vector<128x64xf32>
    %11 = arith.mulf %9, %10 : vector<128x64xf32>
    %12 = arith.addf %6, %11 : vector<128x64xf32>
    %13 = vector.extract_strided_slice %1 {offsets = [0, 2], sizes = [128, 1], strides = [1, 1]} : vector<128x3xf32> to vector<128x1xf32>
    %c2 = arith.constant 2 : index
    %c0_5 = arith.constant 0 : index
    %14 = vector.load %arg2[%c2, %c0_5] : memref<3x64xf32, #tpu.memory_space<vmem>>, vector<1x64xf32>
    %15 = vector.broadcast %13 : vector<128x1xf32> to vector<128x64xf32>
    %16 = vector.broadcast %14 : vector<1x64xf32> to vector<128x64xf32>
    %17 = arith.mulf %15, %16 : vector<128x64xf32>
    %18 = arith.addf %12, %17 : vector<128x64xf32>
    %c0_6 = arith.constant 0 : index
    %c0_7 = arith.constant 0 : index
    %19 = vector.load %arg3[%c0_6, %c0_7] : memref<1x64xf32, #tpu.memory_space<vmem>>, vector<1x64xf32>
    %20 = vector.broadcast %19 : vector<1x64xf32> to vector<128x64xf32>
    %21 = arith.addf %18, %20 : vector<128x64xf32>
    %cst = arith.constant 0.000000e+00 : f32
    %22 = vector.broadcast %cst : f32 to vector<128x64xf32>
    %23 = arith.maximumf %21, %22 : vector<128x64xf32>
    %c0_8 = arith.constant 0 : index
    %c0_9 = arith.constant 0 : index
    %24 = vector.load %arg4[%c0_8, %c0_9] : memref<64x64xf32, #tpu.memory_space<vmem>>, vector<64x64xf32>
    %cst_10 = arith.constant dense<0.000000e+00> : vector<128x64xf32>
    %25 = tpu.matmul %23, %24, %cst_10 {dimension_numbers = #tpu.dot_dimension_numbers<[1], [0], [0], [1], [0, 0, 1, 1], [], []>} : vector<128x64xf32>, vector<64x64xf32>, vector<128x64xf32> -> vector<128x64xf32>
    %c0_11 = arith.constant 0 : index
    %c0_12 = arith.constant 0 : index
    %26 = vector.load %arg5[%c0_11, %c0_12] : memref<1x64xf32, #tpu.memory_space<vmem>>, vector<1x64xf32>
    %27 = vector.broadcast %26 : vector<1x64xf32> to vector<128x64xf32>
    %28 = arith.addf %25, %27 : vector<128x64xf32>
    %cst_13 = arith.constant 0.000000e+00 : f32
    %29 = vector.broadcast %cst_13 : f32 to vector<128x64xf32>
    %30 = arith.maximumf %28, %29 : vector<128x64xf32>
    %c0_14 = arith.constant 0 : index
    %c0_15 = arith.constant 0 : index
    %31 = vector.load %arg6[%c0_14, %c0_15] : memref<64x128xf32, #tpu.memory_space<vmem>>, vector<64x128xf32>
    %cst_16 = arith.constant dense<0.000000e+00> : vector<128x128xf32>
    %32 = tpu.matmul %30, %31, %cst_16 {dimension_numbers = #tpu.dot_dimension_numbers<[1], [0], [0], [1], [0, 0, 1, 1], [], []>} : vector<128x64xf32>, vector<64x128xf32>, vector<128x128xf32> -> vector<128x128xf32>
    %c0_17 = arith.constant 0 : index
    %c0_18 = arith.constant 0 : index
    %33 = vector.load %arg7[%c0_17, %c0_18] : memref<1x128xf32, #tpu.memory_space<vmem>>, vector<1x128xf32>
    %34 = vector.broadcast %33 : vector<1x128xf32> to vector<128x128xf32>
    %35 = arith.addf %32, %34 : vector<128x128xf32>
    %cst_19 = arith.constant 0.000000e+00 : f32
    %36 = vector.broadcast %cst_19 : f32 to vector<128x128xf32>
    %37 = arith.maximumf %35, %36 : vector<128x128xf32>
    %c0_20 = arith.constant 0 : index
    %c0_21 = arith.constant 0 : index
    %38 = vector.load %arg8[%c0_20, %c0_21] : memref<128x256xf32, #tpu.memory_space<vmem>>, vector<128x256xf32>
    %cst_22 = arith.constant dense<0.000000e+00> : vector<128x256xf32>
    %39 = tpu.matmul %37, %38, %cst_22 {dimension_numbers = #tpu.dot_dimension_numbers<[1], [0], [0], [1], [0, 0, 1, 1], [], []>} : vector<128x128xf32>, vector<128x256xf32>, vector<128x256xf32> -> vector<128x256xf32>
    %c0_23 = arith.constant 0 : index
    %c0_24 = arith.constant 0 : index
    %40 = vector.load %arg9[%c0_23, %c0_24] : memref<1x256xf32, #tpu.memory_space<vmem>>, vector<1x256xf32>
    %41 = vector.broadcast %40 : vector<1x256xf32> to vector<128x256xf32>
    %42 = arith.addf %39, %41 : vector<128x256xf32>
    %cst_25 = arith.constant 0.000000e+00 : f32
    %43 = vector.broadcast %cst_25 : f32 to vector<128x256xf32>
    %44 = arith.maximumf %42, %43 : vector<128x256xf32>
    %c0_26 = arith.constant 0 : index
    %c0_27 = arith.constant 0 : index
    %45 = vector.load %arg10[%c0_26, %c0_27] : memref<256x512xf32, #tpu.memory_space<vmem>>, vector<256x512xf32>
    %cst_28 = arith.constant dense<0.000000e+00> : vector<128x512xf32>
    %46 = tpu.matmul %44, %45, %cst_28 {dimension_numbers = #tpu.dot_dimension_numbers<[1], [0], [0], [1], [0, 0, 1, 1], [], []>} : vector<128x256xf32>, vector<256x512xf32>, vector<128x512xf32> -> vector<128x512xf32>
    %c0_29 = arith.constant 0 : index
    %c0_30 = arith.constant 0 : index
    %47 = vector.load %arg11[%c0_29, %c0_30] : memref<1x512xf32, #tpu.memory_space<vmem>>, vector<1x512xf32>
    %48 = vector.broadcast %47 : vector<1x512xf32> to vector<128x512xf32>
    %49 = arith.addf %46, %48 : vector<128x512xf32>
    %cst_31 = arith.constant 0.000000e+00 : f32
    %50 = vector.broadcast %cst_31 : f32 to vector<128x512xf32>
    %51 = arith.maximumf %49, %50 : vector<128x512xf32>
    %c0_32 = arith.constant 0 : index
    %c0_33 = arith.constant 0 : index
    %52 = vector.load %arg12[%c0_32, %c0_33] : memref<512x1024xf32, #tpu.memory_space<vmem>>, vector<512x1024xf32>
    %cst_34 = arith.constant dense<0.000000e+00> : vector<128x1024xf32>
    %53 = tpu.matmul %51, %52, %cst_34 {dimension_numbers = #tpu.dot_dimension_numbers<[1], [0], [0], [1], [0, 0, 1, 1], [], []>} : vector<128x512xf32>, vector<512x1024xf32>, vector<128x1024xf32> -> vector<128x1024xf32>
    %c0_35 = arith.constant 0 : index
    %c0_36 = arith.constant 0 : index
    %54 = vector.load %arg13[%c0_35, %c0_36] : memref<1x1024xf32, #tpu.memory_space<vmem>>, vector<1x1024xf32>
    %55 = vector.broadcast %54 : vector<1x1024xf32> to vector<128x1024xf32>
    %56 = arith.addf %53, %55 : vector<128x1024xf32>
    %cst_37 = arith.constant 0.000000e+00 : f32
    %57 = vector.broadcast %cst_37 : f32 to vector<128x1024xf32>
    %58 = arith.maximumf %56, %57 : vector<128x1024xf32>
    %59 = vector.extract_strided_slice %58 {offsets = [0, 0], sizes = [64, 1024], strides = [1, 1]} : vector<128x1024xf32> to vector<64x1024xf32>
    %cst_38 = arith.constant dense<0xFF800000> : vector<1024xf32>
    %60 = vector.multi_reduction <maximumf>, %59, %cst_38 [0] : vector<64x1024xf32> to vector<1024xf32>
    %61 = vector.shape_cast %60 : vector<1024xf32> to vector<1x1024xf32>
    %62 = vector.extract_strided_slice %51 {offsets = [0, 0], sizes = [64, 512], strides = [1, 1]} : vector<128x512xf32> to vector<64x512xf32>
    %cst_39 = arith.constant dense<0xFF800000> : vector<512xf32>
    %63 = vector.multi_reduction <maximumf>, %62, %cst_39 [0] : vector<64x512xf32> to vector<512xf32>
    %64 = vector.shape_cast %63 : vector<512xf32> to vector<1x512xf32>
    %65 = vector.extract_strided_slice %44 {offsets = [0, 0], sizes = [64, 256], strides = [1, 1]} : vector<128x256xf32> to vector<64x256xf32>
    %cst_40 = arith.constant dense<0xFF800000> : vector<256xf32>
    %66 = vector.multi_reduction <maximumf>, %65, %cst_40 [0] : vector<64x256xf32> to vector<256xf32>
    %67 = vector.shape_cast %66 : vector<256xf32> to vector<1x256xf32>
    %68 = vector.extract_strided_slice %37 {offsets = [0, 0], sizes = [64, 128], strides = [1, 1]} : vector<128x128xf32> to vector<64x128xf32>
    %cst_41 = arith.constant dense<0xFF800000> : vector<128xf32>
    %69 = vector.multi_reduction <maximumf>, %68, %cst_41 [0] : vector<64x128xf32> to vector<128xf32>
    %70 = vector.shape_cast %69 : vector<128xf32> to vector<1x128xf32>
    %71 = tpu.concatenate %61, %64, %67, %70 in 1 : vector<1x1024xf32>, vector<1x512xf32>, vector<1x256xf32>, vector<1x128xf32> -> vector<1x1920xf32>
    %72 = vector.extract_strided_slice %58 {offsets = [64, 0], sizes = [64, 1024], strides = [1, 1]} : vector<128x1024xf32> to vector<64x1024xf32>
    %cst_42 = arith.constant dense<0xFF800000> : vector<1024xf32>
    %73 = vector.multi_reduction <maximumf>, %72, %cst_42 [0] : vector<64x1024xf32> to vector<1024xf32>
    %74 = vector.shape_cast %73 : vector<1024xf32> to vector<1x1024xf32>
    %75 = vector.extract_strided_slice %51 {offsets = [64, 0], sizes = [64, 512], strides = [1, 1]} : vector<128x512xf32> to vector<64x512xf32>
    %cst_43 = arith.constant dense<0xFF800000> : vector<512xf32>
    %76 = vector.multi_reduction <maximumf>, %75, %cst_43 [0] : vector<64x512xf32> to vector<512xf32>
    %77 = vector.shape_cast %76 : vector<512xf32> to vector<1x512xf32>
    %78 = vector.extract_strided_slice %44 {offsets = [64, 0], sizes = [64, 256], strides = [1, 1]} : vector<128x256xf32> to vector<64x256xf32>
    %cst_44 = arith.constant dense<0xFF800000> : vector<256xf32>
    %79 = vector.multi_reduction <maximumf>, %78, %cst_44 [0] : vector<64x256xf32> to vector<256xf32>
    %80 = vector.shape_cast %79 : vector<256xf32> to vector<1x256xf32>
    %81 = vector.extract_strided_slice %37 {offsets = [64, 0], sizes = [64, 128], strides = [1, 1]} : vector<128x128xf32> to vector<64x128xf32>
    %cst_45 = arith.constant dense<0xFF800000> : vector<128xf32>
    %82 = vector.multi_reduction <maximumf>, %81, %cst_45 [0] : vector<64x128xf32> to vector<128xf32>
    %83 = vector.shape_cast %82 : vector<128xf32> to vector<1x128xf32>
    %84 = tpu.concatenate %74, %77, %80, %83 in 1 : vector<1x1024xf32>, vector<1x512xf32>, vector<1x256xf32>, vector<1x128xf32> -> vector<1x1920xf32>
    %85 = tpu.concatenate %71, %84 in 0 : vector<1x1920xf32>, vector<1x1920xf32> -> vector<2x1920xf32>
    %c0_46 = arith.constant 0 : index
    %c0_47 = arith.constant 0 : index
    %86 = vector.load %arg14[%c0_46, %c0_47] : memref<2x1920xf32, #tpu.memory_space<vmem>>, vector<2x1920xf32>
    tpu.vector_store %arg14[%c0_46, %c0_47], %85 {strides = array<i32>} : memref<2x1920xf32, #tpu.memory_space<vmem>>, vector<2x1920xf32>,
    return
  }
  func.func @transform_0(%arg0: i32) -> (i32, i32, i32) {
    %c0_i32 = arith.constant 0 : i32
    %c0_i32_0 = arith.constant 0 : i32
    %c0_i32_1 = arith.constant 0 : i32
    %c0_i32_2 = arith.constant 0 : i32
    return %c0_i32, %c0_i32_0, %c0_i32_1 : i32, i32, i32
  }
  func.func @transform_1(%arg0: i32) -> (i32, i32) {
    %c0_i32 = arith.constant 0 : i32
    %c0_i32_0 = arith.constant 0 : i32
    %c0_i32_1 = arith.constant 0 : i32
    return %c0_i32, %c0_i32_0 : i32, i32
  }
  func.func @transform_2(%arg0: i32) -> (i32, i32) {
    %c0_i32 = arith.constant 0 : i32
    %c0_i32_0 = arith.constant 0 : i32
    %c0_i32_1 = arith.constant 0 : i32
    return %c0_i32, %c0_i32_0 : i32, i32
  }
  func.func @transform_3(%arg0: i32) -> (i32, i32) {
    %c0_i32 = arith.constant 0 : i32
    %c0_i32_0 = arith.constant 0 : i32
    %c0_i32_1 = arith.constant 0 : i32
    return %c0_i32, %c0_i32_0 : i32, i32
  }
  func.func @transform_4(%arg0: i32) -> (i32, i32) {
    %c0_i32 = arith.constant 0 : i32
    %c0_i32_0 = arith.constant 0 : i32
    %c0_i32_1 = arith.constant 0 : i32
    return %c0_i32, %c0_i32_0 : i32, i32
  }
  func.func @transform_5(%arg0: i32) -> (i32, i32) {
    %c0_i32 = arith.constant 0 : i32
    %c0_i32_0 = arith.constant 0 : i32
    %c0_i32_1 = arith.constant 0 : i32
    return %c0_i32, %c0_i32_0 : i32, i32
  }
  func.func @transform_6(%arg0: i32) -> (i32, i32) {
    %c0_i32 = arith.constant 0 : i32
    %c0_i32_0 = arith.constant 0 : i32
    %c0_i32_1 = arith.constant 0 : i32
    return %c0_i32, %c0_i32_0 : i32, i32
  }
  func.func @transform_7(%arg0: i32) -> (i32, i32) {
    %c0_i32 = arith.constant 0 : i32
    %c0_i32_0 = arith.constant 0 : i32
    %c0_i32_1 = arith.constant 0 : i32
    return %c0_i32, %c0_i32_0 : i32, i32
  }
  func.func @transform_8(%arg0: i32) -> (i32, i32) {
    %c0_i32 = arith.constant 0 : i32
    %c0_i32_0 = arith.constant 0 : i32
    %c0_i32_1 = arith.constant 0 : i32
    return %c0_i32, %c0_i32_0 : i32, i32
  }
  func.func @transform_9(%arg0: i32) -> (i32, i32) {
    %c0_i32 = arith.constant 0 : i32
    %c0_i32_0 = arith.constant 0 : i32
    %c0_i32_1 = arith.constant 0 : i32
    return %c0_i32, %c0_i32_0 : i32, i32
  }
  func.func @transform_10(%arg0: i32) -> (i32, i32) {
    %c0_i32 = arith.constant 0 : i32
    %c0_i32_0 = arith.constant 0 : i32
    %c0_i32_1 = arith.constant 0 : i32
    return %c0_i32, %c0_i32_0 : i32, i32
  }
  func.func @transform_11(%arg0: i32) -> (i32, i32) {
    %c0_i32 = arith.constant 0 : i32
    %c0_i32_0 = arith.constant 0 : i32
    %c0_i32_1 = arith.constant 0 : i32
    return %c0_i32, %c0_i32_0 : i32, i32
  }
  func.func @transform_12(%arg0: i32) -> (i32, i32) {
    %c0_i32 = arith.constant 0 : i32
    %c0_i32_0 = arith.constant 0 : i32
    %c0_i32_1 = arith.constant 0 : i32
    return %c0_i32, %c0_i32_0 : i32, i32
  }
  func.func @transform_13(%arg0: i32) -> (i32, i32) {
    %c0_i32 = arith.constant 0 : i32
    %c0_i32_0 = arith.constant 0 : i32
    %c0_i32_1 = arith.constant 0 : i32
    return %c0_i32, %c0_i32_0 : i32, i32
  }
}

</mosaic_0001>

<bundles_post_ra>
// kernel: tpu_custom_call.1
= control target key start
LH: loop header
LB: loop body
LE: loop exit
PB: predicated region body
PF: predicated region fallthrough
CT: control target
= control target key end

     0   :  { %18 = vsyncpa [#allocation3], 0  ;;  %s7583_s0 = inlined_call_operand.vmem [shape: f32[2,64,3], index: 0, kind: input, shape index: {}]   ;;  %s7584_s1 = inlined_call_operand.hbm [shape: f32[3,64], index: 1, kind: input, shape index: {}]   ;;  %s7585_s2 = inlined_call_operand.hbm [shape: f32[1,64], index: 2, kind: input, shape index: {}]   ;;  %s7586_s3 = inlined_call_operand.hbm [shape: f32[64,64], index: 3, kind: input, shape index: {}]   ;;  %s7587_s4 = inlined_call_operand.hbm [shape: f32[1,64], index: 4, kind: input, shape index: {}]   ;;  %s7588_s5 = inlined_call_operand.hbm [shape: f32[64,128], index: 5, kind: input, shape index: {}]   ;;  %s7589_s6 = inlined_call_operand.hbm [shape: f32[1,128], index: 6, kind: input, shape index: {}]   ;;  %s7590_s7 = inlined_call_operand.hbm [shape: f32[128,256], index: 7, kind: input, shape index: {}]   ;;  %s7591_s8 = inlined_call_operand.hbm [shape: f32[1,256], index: 8, kind: input, shape index: {}]   ;;  %s7592_s9 = inlined_call_operand.hbm [shape: f32[256,512], index: 9, kind: input, shape index: {}]   ;;  %s7593_s10 = inlined_call_operand.hbm [shape: f32[1,512], index: 10, kind: input, shape index: {}]   ;;  %s7594_s11 = inlined_call_operand.hbm [shape: f32[512,1024], index: 11, kind: input, shape index: {}]   ;;  %s7595_s12 = inlined_call_operand.hbm [shape: f32[1,1024], index: 12, kind: input, shape index: {}]   ;;  %s7596_s13 = inlined_call_operand.hbm [shape: f32[2,1920], index: 13, kind: output, shape index: {}]  }
   0x1   :  { %19 = vsyncpa [#allocation6], 0 }
   0x2   :  { %20 = vsyncpa [#allocation9], 0 }
   0x3   :  { %21 = vsyncpa [#allocation12], 0 }
   0x4   :  { %22 = vsyncpa [#allocation15], 0 }
   0x5   :  { %23 = vsyncpa [#allocation18], 0 }
   0x6   :  { %24 = vsyncpa [#allocation21], 0 }
   0x7   :  { %25 = vsyncpa [#allocation4], 0  ;;  %s5822_s25 = smov [#allocation5]   ;;  %s5823_s27 = smov [#allocation8]  }
   0x8   :  { %s44_s26 = sshll.u32 %s5822_s25, 4  ;;  %s66_s28 = sshll.u32 %s5823_s27, 4  ;;  %s45_s26 = int_to_ptr.vmem [resolvable:$true] %s44_s26  ;;  %s67_s28 = int_to_ptr.vmem [resolvable:$true] %s66_s28 }
   0x9   :  { %s5520_s14 = scalar_lea.hbm %s7585_s2, 16 }
   0xa   :  { %p5521_p0 = scmp.ne.s32.totalorder %s7585_s2, %s5520_s14  ;;  %p5524_p1 = scmp.lt.u32.totalorder %s5520_s14, %s7585_s2 }
   0xc   :  { %p5526_p2 = pnand %p5524_p1, %p5521_p0 }
   0xe   :  { %5529 = shalt.err (!%p5526_p2)
}
   0xf   :  { %s5530_s19 = scalar_lea.vmem %s45_s26, 16  ;;  %s5534_s20 = scalar_lea.vmem %s45_s26, 32 }
  0x10   :  { %p5531_p3 = scmp.ne.s32.totalorder %s45_s26, %s5530_s19  ;;  %p5535_p4 = scmp.lt.s32.totalorder %s45_s26, %s45_s26 }
  0x11   :  { %p5536_p5 = scmp.lt.s32.totalorder %s5534_s20, %s5530_s19 }
  0x13   :  { %p5537_p6 = por %p5536_p5, %p5535_p4 }
  0x15   :  { %p5538_p7 = pnand %p5537_p6, %p5531_p3 }
  0x17   :  { %5541 = shalt.err (!%p5538_p7)
}
  0x18   :  { %47 = dma.hbm_to_vmem [thread:$0]  %s7585_s2, 16, %s45_s26, [#allocation6]  }
  0x19   :  { %s5542_s25 = scalar_lea.hbm %s7587_s4, 16 }
  0x1a   :  { %p5543_p8 = scmp.ne.s32.totalorder %s7587_s4, %s5542_s25  ;;  %p5546_p9 = scmp.lt.u32.totalorder %s5542_s25, %s7587_s4 }
  0x1c   :  { %p5548_p10 = pnand %p5546_p9, %p5543_p8 }
  0x1e   :  { %5551 = shalt.err (!%p5548_p10)
}
  0x1f   :  { %s5552_s15 = scalar_lea.vmem %s67_s28, 16  ;;  %s5556_s16 = scalar_lea.vmem %s67_s28, 32 }
  0x20   :  { %p5553_p11 = scmp.ne.s32.totalorder %s67_s28, %s5552_s15  ;;  %p5557_p12 = scmp.lt.s32.totalorder %s67_s28, %s67_s28 }
  0x21   :  { %p5558_p13 = scmp.lt.s32.totalorder %s5556_s16, %s5552_s15 }
  0x23   :  { %p5559_p0 = por %p5558_p13, %p5557_p12 }
  0x25   :  { %p5560_p1 = pnand %p5559_p0, %p5553_p11 }
  0x27   :  { %5563 = shalt.err (!%p5560_p1)
}
  0x28   :  { %69 = dma.hbm_to_vmem [thread:$0]  %s7587_s4, 16, %s67_s28, [#allocation9]  }
  0x29   :  { %s5824_s17 = smov [#allocation11]   ;;  %s5825_s19 = smov [#allocation14]  }
  0x2a   :  { %s88_s18 = sshll.u32 %s5824_s17, 4  ;;  %s110_s20 = sshll.u32 %s5825_s19, 4  ;;  %s89_s18 = int_to_ptr.vmem [resolvable:$true] %s88_s18  ;;  %s111_s20 = int_to_ptr.vmem [resolvable:$true] %s110_s20 }
  0x2b   :  { %s5564_s23 = scalar_lea.hbm %s7589_s6, 16 }
  0x2c   :  { %p5565_p2 = scmp.ne.s32.totalorder %s7589_s6, %s5564_s23  ;;  %p5568_p3 = scmp.lt.u32.totalorder %s5564_s23, %s7589_s6 }
  0x2e   :  { %p5570_p4 = pnand %p5568_p3, %p5565_p2 }
  0x30   :  { %5573 = shalt.err (!%p5570_p4)
}
  0x31   :  { %s5574_s4 = scalar_lea.vmem %s89_s18, 16  ;;  %s5578_s28 = scalar_lea.vmem %s89_s18, 32 }
  0x32   :  { %p5575_p5 = scmp.ne.s32.totalorder %s89_s18, %s5574_s4  ;;  %p5579_p6 = scmp.lt.s32.totalorder %s89_s18, %s89_s18 }
  0x33   :  { %p5580_p7 = scmp.lt.s32.totalorder %s5578_s28, %s5574_s4 }
  0x35   :  { %p5581_p8 = por %p5580_p7, %p5579_p6 }
  0x37   :  { %p5582_p9 = pnand %p5581_p8, %p5575_p5 }
  0x39   :  { %5585 = shalt.err (!%p5582_p9)
}
  0x3a   :  { %91 = dma.hbm_to_vmem [thread:$0]  %s7589_s6, 16, %s89_s18, [#allocation12]  }
  0x3b   :  { %s5586_s2 = scalar_lea.hbm %s7591_s8, 32 }
  0x3c   :  { %p5587_p10 = scmp.ne.s32.totalorder %s7591_s8, %s5586_s2  ;;  %p5590_p11 = scmp.lt.u32.totalorder %s5586_s2, %s7591_s8 }
  0x3e   :  { %p5592_p12 = pnand %p5590_p11, %p5587_p10 }
  0x40   :  { %5595 = shalt.err (!%p5592_p12)
}
  0x41   :  { %s5596_s22 = scalar_lea.vmem %s111_s20, 32  ;;  %p5601_p0 = scmp.lt.s32.totalorder %s111_s20, %s111_s20 }
  0x42   :  { %p5597_p13 = scmp.ne.s32.totalorder %s111_s20, %s5596_s22  ;;  %p5602_p1 = scmp.lt.s32.totalorder %s5596_s22, %s5596_s22 }
  0x44   :  { %p5603_p2 = por %p5602_p1, %p5601_p0 }
  0x46   :  { %p5604_p3 = pnand %p5603_p2, %p5597_p13 }
  0x48   :  { %5607 = shalt.err (!%p5604_p3)
}
  0x49   :  { %113 = dma.hbm_to_vmem [thread:$0]  %s7591_s8, 32, %s111_s20, [#allocation15]  }
  0x4a   :  { %s5826_s23 = smov [#allocation17]   ;;  %s5827_s25 = smov [#allocation2]  }
  0x4b   :  { %s132_s24 = sshll.u32 %s5826_s23, 4  ;;  %s34_s27 = sshll.u32 %s5827_s25, 4  ;;  %s133_s24 = int_to_ptr.vmem [resolvable:$true] %s132_s24  ;;  %s35_s27 = int_to_ptr.vmem [resolvable:$true] %s34_s27 }
  0x4c   :  { %s5608_s28 = scalar_lea.hbm %s7593_s10, 64 }
  0x4d   :  { %p5609_p4 = scmp.ne.s32.totalorder %s7593_s10, %s5608_s28  ;;  %p5612_p5 = scmp.lt.u32.totalorder %s5608_s28, %s7593_s10 }
  0x4f   :  { %p5614_p6 = pnand %p5612_p5, %p5609_p4 }
  0x51   :  { %5617 = shalt.err (!%p5614_p6)
}
  0x52   :  { %s5618_s8 = scalar_lea.vmem %s133_s24, 64  ;;  %p5623_p8 = scmp.lt.s32.totalorder %s133_s24, %s133_s24 }
  0x53   :  { %p5619_p7 = scmp.ne.s32.totalorder %s133_s24, %s5618_s8  ;;  %p5624_p9 = scmp.lt.s32.totalorder %s5618_s8, %s5618_s8 }
  0x55   :  { %p5625_p10 = por %p5624_p9, %p5623_p8 }
  0x57   :  { %p5626_p11 = pnand %p5625_p10, %p5619_p7 }
  0x59   :  { %5629 = shalt.err (!%p5626_p11)
}
  0x5a   :  { %135 = dma.hbm_to_vmem [thread:$0]  %s7593_s10, 64, %s133_s24, [#allocation18]  }
  0x5b   :  { %s5630_s19 = scalar_lea.hbm %s7584_s1, 64 }
  0x5c   :  { %p5631_p12 = scmp.ne.s32.totalorder %s7584_s1, %s5630_s19  ;;  %p5634_p13 = scmp.lt.u32.totalorder %s5630_s19, %s7584_s1 }
  0x5e   :  { %p5636_p0 = pnand %p5634_p13, %p5631_p12 }
  0x60   :  { %5639 = shalt.err (!%p5636_p0)
}
  0x61   :  { %s5640_s23 = scalar_lea.vmem %s35_s27, 64  ;;  %p5645_p2 = scmp.lt.s32.totalorder %s35_s27, %s35_s27 }
  0x62   :  { %p5641_p1 = scmp.ne.s32.totalorder %s35_s27, %s5640_s23  ;;  %p5646_p3 = scmp.lt.s32.totalorder %s5640_s23, %s5640_s23 }
  0x64   :  { %p5647_p4 = por %p5646_p3, %p5645_p2 }
  0x66   :  { %p5648_p5 = pnand %p5647_p4, %p5641_p1 }
  0x68   :  { %5651 = shalt.err (!%p5648_p5)
}
  0x69   :  { %37 = dma.hbm_to_vmem [thread:$0]  %s7584_s1, 64, %s35_s27, [#allocation3]  }
  0x6a   :  { %s5828_s25 = smov [#allocation7]   ;;  %s5652_s30 = scalar_lea.hbm %s7586_s3, 1024 }
  0x6b   :  { %s53_s29 = sshll.u32 %s5828_s25, 4  ;;  %p5653_p6 = scmp.ne.s32.totalorder %s7586_s3, %s5652_s30  ;;  %s54_s29 = int_to_ptr.vmem [resolvable:$true] %s53_s29 }
  0x6c   :  { %p5656_p7 = scmp.lt.u32.totalorder %s5652_s30, %s7586_s3 }
  0x6e   :  { %p5658_p8 = pnand %p5656_p7, %p5653_p6 }
  0x70   :  { %5661 = shalt.err (!%p5658_p8)
}
  0x71   :  { %s5662_s20 = scalar_lea.vmem %s54_s29, 1024  ;;  %p5667_p10 = scmp.lt.s32.totalorder %s54_s29, %s54_s29 }
  0x72   :  { %p5663_p9 = scmp.ne.s32.totalorder %s54_s29, %s5662_s20  ;;  %p5668_p11 = scmp.lt.s32.totalorder %s5662_s20, %s5662_s20 }
  0x74   :  { %p5669_p12 = por %p5668_p11, %p5667_p10 }
  0x76   :  { %p5670_p13 = pnand %p5669_p12, %p5663_p9 }
  0x78   :  { %5673 = shalt.err (!%p5670_p13)
}
  0x79   :  { %s5829_s1 = smov 128   ;;  %s5830_s27 = smov 8  }
  0x7a   :  { %59 = dma.hbm_to_vmem [thread:$0]  %s7586_s3, 1024, %s54_s29, [#allocation6], %s5829_s1, %s5829_s1, %s5830_s27  }
  0x7b   :  { %s5831_s17 = smov [#allocation10]   ;;  %s5832_s21 = smov [#allocation13]  }
  0x7c   :  { %s75_s19 = sshll.u32 %s5831_s17, 4  ;;  %s97_s22 = sshll.u32 %s5832_s21, 4  ;;  %s76_s19 = int_to_ptr.vmem [resolvable:$true] %s75_s19  ;;  %s98_s22 = int_to_ptr.vmem [resolvable:$true] %s97_s22 }
  0x7d   :  { %s5674_s23 = scalar_lea.hbm %s7588_s5, 1024 }
  0x7e   :  { %p5675_p0 = scmp.ne.s32.totalorder %s7588_s5, %s5674_s23  ;;  %p5678_p1 = scmp.lt.u32.totalorder %s5674_s23, %s7588_s5 }
  0x80   :  { %p5680_p2 = pnand %p5678_p1, %p5675_p0 }
  0x82   :  { %5683 = shalt.err (!%p5680_p2)
}
  0x83   :  { %s5684_s3 = scalar_lea.vmem %s76_s19, 1024  ;;  %p5689_p4 = scmp.lt.s32.totalorder %s76_s19, %s76_s19 }
  0x84   :  { %p5685_p3 = scmp.ne.s32.totalorder %s76_s19, %s5684_s3  ;;  %p5690_p5 = scmp.lt.s32.totalorder %s5684_s3, %s5684_s3 }
  0x86   :  { %p5691_p6 = por %p5690_p5, %p5689_p4 }
  0x88   :  { %p5692_p7 = pnand %p5691_p6, %p5685_p3 }
  0x8a   :  { %5695 = shalt.err (!%p5692_p7)
}
  0x8b   :  { %81 = dma.hbm_to_vmem [thread:$0]  %s7588_s5, 1024, %s76_s19, [#allocation9], %s5829_s1, %s5829_s1, %s5830_s27  }
  0x8c   :  { %s5696_s15 = scalar_lea.hbm %s7590_s7, 4096 }
  0x8d   :  { %p5697_p8 = scmp.ne.s32.totalorder %s7590_s7, %s5696_s15  ;;  %p5700_p9 = scmp.lt.u32.totalorder %s5696_s15, %s7590_s7 }
  0x8f   :  { %p5702_p10 = pnand %p5700_p9, %p5697_p8 }
  0x91   :  { %5705 = shalt.err (!%p5702_p10)
}
  0x92   :  { %s5706_s26 = scalar_lea.vmem %s98_s22, 4096  ;;  %p5711_p12 = scmp.lt.s32.totalorder %s98_s22, %s98_s22 }
  0x93   :  { %p5707_p11 = scmp.ne.s32.totalorder %s98_s22, %s5706_s26  ;;  %p5712_p13 = scmp.lt.s32.totalorder %s5706_s26, %s5706_s26 }
  0x95   :  { %p5713_p0 = por %p5712_p13, %p5711_p12 }
  0x97   :  { %p5714_p1 = pnand %p5713_p0, %p5707_p11 }
  0x99   :  { %5717 = shalt.err (!%p5714_p1)
}
  0x9a   :  { %s5833_s5 = smov 256   ;;  %s5834_s1 = smov 16  }
  0x9b   :  { %103 = dma.hbm_to_vmem [thread:$0]  %s7590_s7, 4096, %s98_s22, [#allocation12], %s5833_s5, %s5833_s5, %s5834_s1  }
  0x9c   :  { %s5835_s19 = smov [#allocation16]   ;;  %s5718_s23 = scalar_lea.hbm %s7592_s9, 16384 }
  0x9d   :  { %s119_s21 = sshll.u32 %s5835_s19, 4  ;;  %p5719_p2 = scmp.ne.s32.totalorder %s7592_s9, %s5718_s23  ;;  %s120_s21 = int_to_ptr.vmem [resolvable:$true] %s119_s21 }
  0x9e   :  { %p5722_p3 = scmp.lt.u32.totalorder %s5718_s23, %s7592_s9 }
  0xa0   :  { %p5724_p4 = pnand %p5722_p3, %p5719_p2 }
  0xa2   :  { %5727 = shalt.err (!%p5724_p4)
}
  0xa3   :  { %s5728_s3 = scalar_lea.vmem %s120_s21, 16384  ;;  %p5733_p6 = scmp.lt.s32.totalorder %s120_s21, %s120_s21 }
  0xa4   :  { %p5729_p5 = scmp.ne.s32.totalorder %s120_s21, %s5728_s3  ;;  %p5734_p7 = scmp.lt.s32.totalorder %s5728_s3, %s5728_s3 }
  0xa6   :  { %p5735_p8 = por %p5734_p7, %p5733_p6 }
  0xa8   :  { %p5736_p9 = pnand %p5735_p8, %p5729_p5 }
  0xaa   :  { %5739 = shalt.err (!%p5736_p9)
}
  0xab   :  { %s5836_s7 = smov 512   ;;  %s5837_s22 = smov 32  }
  0xac   :  { %125 = dma.hbm_to_vmem [thread:$0]  %s7592_s9, 16384, %s120_s21, [#allocation15], %s5836_s7, %s5836_s7, %s5837_s22  }
  0xad   :  { %s5838_s30 = smov [#allocation19]   ;;  %s5740_s8 = scalar_lea.hbm %s7594_s11, 65536 }
  0xae   :  { %s141_s14 = sshll.u32 %s5838_s30, 4  ;;  %p5741_p10 = scmp.ne.s32.totalorder %s7594_s11, %s5740_s8  ;;  %s142_s14 = int_to_ptr.vmem [resolvable:$true] %s141_s14 }
  0xaf   :  { %p5744_p11 = scmp.lt.u32.totalorder %s5740_s8, %s7594_s11 }
  0xb1   :  { %p5746_p12 = pnand %p5744_p11, %p5741_p10 }
  0xb3   :  { %5749 = shalt.err (!%p5746_p12)
}
  0xb4   :  { %s5750_s1 = scalar_lea.vmem %s142_s14, 65536  ;;  %p5755_p0 = scmp.lt.s32.totalorder %s142_s14, %s142_s14 }
  0xb5   :  { %p5751_p13 = scmp.ne.s32.totalorder %s142_s14, %s5750_s1  ;;  %p5756_p1 = scmp.lt.s32.totalorder %s5750_s1, %s5750_s1 }
  0xb7   :  { %p5757_p2 = por %p5756_p1, %p5755_p0 }
  0xb9   :  { %p5758_p3 = pnand %p5757_p2, %p5751_p13 }
  0xbb   :  { %5761 = shalt.err (!%p5758_p3)
}
  0xbc   :  { %s5839_s9 = smov 1024   ;;  %s5840_s27 = smov 64  }
  0xbd   :  { %147 = dma.hbm_to_vmem [thread:$0]  %s7594_s11, 65536, %s142_s14, [#allocation18], %s5839_s9, %s5839_s9, %s5840_s27  }
  0xbe   :  { %s5841_s21 = smov [#allocation20]   ;;  %s5762_s10 = scalar_lea.hbm %s7595_s12, 128 }
  0xbf   :  { %s154_s6 = sshll.u32 %s5841_s21, 4  ;;  %p5763_p4 = scmp.ne.s32.totalorder %s7595_s12, %s5762_s10  ;;  %s155_s6 = int_to_ptr.vmem [resolvable:$true] %s154_s6 }
  0xc0   :  { %p5766_p5 = scmp.lt.u32.totalorder %s5762_s10, %s7595_s12 }
  0xc2   :  { %p5768_p6 = pnand %p5766_p5, %p5763_p4 }
  0xc4   :  { %5771 = shalt.err (!%p5768_p6)
}
  0xc5   :  { %s5772_s7 = scalar_lea.vmem %s155_s6, 128  ;;  %p5777_p8 = scmp.lt.s32.totalorder %s155_s6, %s155_s6 }
  0xc6   :  { %p5773_p7 = scmp.ne.s32.totalorder %s155_s6, %s5772_s7  ;;  %p5778_p9 = scmp.lt.s32.totalorder %s5772_s7, %s5772_s7 }
  0xc8   :  { %p5779_p10 = por %p5778_p9, %p5777_p8 }
  0xca   :  { %p5780_p11 = pnand %p5779_p10, %p5773_p7 }
  0xcc   :  { %5783 = shalt.err (!%p5780_p11)
}
  0xcd   :  { %157 = dma.hbm_to_vmem [thread:$0]  %s7595_s12, 128, %s155_s6, [#allocation21]  }
  0xce   :  { %5806 = dma.done.wait [#allocation3], 64  }
  0xcf   :  { %5807 = vsyncadd [#allocation3], 4294967232 }
  0xd0   :  { %5808 = dma.done.wait [#allocation6], 1040  }
  0xd1   :  { %5809 = vsyncadd [#allocation6], 4294966256 }
  0xd2   :  { %5810 = dma.done.wait [#allocation9], 1040  }
  0xd3   :  { %5811 = vsyncadd [#allocation9], 4294966256 }
  0xd4   :  { %5812 = dma.done.wait [#allocation12], 4112  }
  0xd5   :  { %5813 = vsyncadd [#allocation12], 4294963184 }
  0xd6   :  { %5814 = dma.done.wait [#allocation15], 16416  }
  0xd7   :  { %5815 = vsyncadd [#allocation15], 4294950880 }
  0xd8   :  { %5816 = dma.done.wait [#allocation18], 65600  }
  0xd9   :  { %5817 = vsyncadd [#allocation18], 4294901696 }
  0xda   :  { %5818 = dma.done.wait [#allocation21], 128  }
  0xdb   :  { %5819 = vsyncadd [#allocation21], 4294967168  ;;  %v5842_v0 = vmov 1   ;;  %v5843_v1 = vmov 0   ;;  %v195_v2 = vld [vmem:[%s7583_s0 + $0x8] sm:$0xff]  ;;  %v194_v3 = vld [vmem:[%s7583_s0] sm:$0xff] }
  0xdc   :  { %5490 = vset.pattern.permute.xlu0 %v5842_v0  ;;  %5491 = vset.pattern.permute.xlu1 %v5843_v1  ;;  %v5844_v4 = vmov 2   ;;  %v197_v5 = vld [vmem:[%s7583_s0 + $0x18] sm:$0xff]  ;;  %v199_v6 = vld [vmem:[%s7583_s0 + $0x28] sm:$0xff]  ;;  %v196_v10 = vld [vmem:[%s7583_s0 + $0x10] sm:$0xff]  ;;  %vm567_vm0 = vcmask 523264   ;;  %vm4179_vm1 = vcmask 1040384  }
  0xdd   :  { %218 = vperm.xlu1 %5491, %v195_v2   ;;  %313 = vperm.xlu0 %5490, %v194_v3   ;;  %v552_v7 = vld [vmem:[#allocation7] sm:$0xff]  ;;  %v553_v8 = vld [vmem:[#allocation7 + $0x8] sm:$0xff]  ;;  %v554_v11 = vld [vmem:[#allocation7 + $0x10] sm:$0xff] }
  0xde   :  { %v4472_v9 = vpack.c.bf16 %v553_v8, %v552_v7  ;;  %v555_v12 = vld [vmem:[#allocation7 + $0x18] sm:$0xff]  ;;  %v556_v14 = vld [vmem:[#allocation7 + $0x20] sm:$0xff]  ;;  %v557_v15 = vld [vmem:[#allocation7 + $0x28] sm:$0xff] }
  0xdf   :  { %v4476_v13 = vpack.c.bf16 %v555_v12, %v554_v11  ;;  %v4480_v16 = vpack.c.bf16 %v557_v15, %v556_v14  ;;  %v558_v17 = vld [vmem:[#allocation7 + $0x30] sm:$0xff]  ;;  %v559_v18 = vld [vmem:[#allocation7 + $0x38] sm:$0xff]  ;;  %v203_v22 = vld [vmem:[%s7583_s0 + $0x48] sm:$0xff] }
  0xe0   :  { %4473 = vmatprep.subr.bf16.mxu0 %v4472_v9  ;;  %v4484_v19 = vpack.c.bf16 %v559_v18, %v558_v17  ;;  %v201_v20 = vld [vmem:[%s7583_s0 + $0x38] sm:$0xff]  ;;  %v198_v21 = vld [vmem:[%s7583_s0 + $0x20] sm:$0xff]  ;;  %v200_v24 = vld [vmem:[%s7583_s0 + $0x30] sm:$0xff] }
  0xe1   :  { %5492 = vset.pattern.permute.xlu1 %v5842_v0  ;;  %5494 = vset.pattern.permute.xlu0 %v5844_v4  ;;  %v205_v23 = vld [vmem:[%s7583_s0 + $0x58] sm:$0xff]  ;;  %v207_v25 = vld [vmem:[%s7583_s0 + $0x68] sm:$0xff]  ;;  %v202_v27 = vld [vmem:[%s7583_s0 + $0x40] sm:$0xff] }
  0xe2   :  { %317 = vperm.xlu1 %5492, %v195_v2   ;;  %418 = vperm.xlu0 %5494, %v195_v2   ;;  %v209_v26 = vld [vmem:[%s7583_s0 + $0x78] sm:$0xff]  ;;  %v204_v28 = vld [vmem:[%s7583_s0 + $0x50] sm:$0xff]  ;;  %v206_v29 = vld [vmem:[%s7583_s0 + $0x60] sm:$0xff] }
  0xe3   :  { %4475 = vmatpush3.bf16.msra.mxu0 %v4472_v9  ;;  %v208_v30 = vld [vmem:[%s7583_s0 + $0x70] sm:$0xff]  ;;  %v6139_v35 = vld [vmem:[#allocation2 + $0x1] ss:$0 sm:$0xff]  ;;  %v6141_v38 = vld [vmem:[#allocation2] ss:$0 sm:$0xff]  ;;  %s5847_s0 = smov [#allocation22]  }
  0xe4   :  { %4477 = vmatprep.subr.bf16.mxu0 %v4476_v13  ;;  %v6144_v40 = vld [vmem:[#allocation2 + $0x2] ss:$0 sm:$0xff]  ;;  %v6153_v51 = vld [vmem:[#allocation5] ss:$0 sm:$0xff]  ;;  %v777_v62 = vld [vmem:[#allocation10] sm:$0xff]  ;;  %s4291_s30 = sshll.u32 %s5847_s0, 4  ;;  %s4292_s30 = int_to_ptr.vmem [resolvable:$true] %s4291_s30 }
  0xe5   :  { %v778_v63 = vld [vmem:[#allocation10 + $0x8] sm:$0xff]  ;;  %v781_v7 = vld [vmem:[#allocation10 + $0x20] sm:$0xff]  ;;  %s5784_s14 = scalar_lea.vmem %s4292_s30, 480  ;;  %p5789_p13 = scmp.lt.s32.totalorder %s4292_s30, %s4292_s30 }
  0xe6   :  { %5493 = vset.pattern.permute.xlu1 %v5844_v4  ;;  %426 = vperm.xlu0 %5494, %v197_v5   ;;  %v4488_v2 = vpack.c.bf16 %v778_v63, %v777_v62  ;;  %v782_v8 = vld [vmem:[#allocation10 + $0x28] sm:$0xff]  ;;  %p5785_p12 = scmp.ne.s32.totalorder %s4292_s30, %s5784_s14  ;;  %p5790_p0 = scmp.lt.s32.totalorder %s5784_s14, %s5784_s14 }
  0xe7   :  { %414 = vperm.xlu1 %5493, %v194_v3   ;;  %4479 = vmatpush3.bf16.msra.mxu0 %v4476_v13  ;;  %v4496_v15 = vpack.c.bf16 %v782_v8, %v781_v7 }
  0xe8   :  { %4481 = vmatprep.subr.bf16.mxu0 %v4480_v16  ;;  %4489 = vmatprep.subr.bf16.mxu1 %v4488_v2  ;;  %p5791_p1 = por %p5790_p0, %p5789_p13 }
  0xe9   :  { %4491 = vmatpush3.bf16.msra.mxu1 %v4488_v2 }
  0xea   :  { %434 = vperm.xlu0 %5494, %v199_v6   ;;  %p5792_p2 = pnand %p5791_p1, %p5785_p12 }
  0xeb   :  { %5495 = vset.pattern.permute.xlu1 %v5843_v1  ;;  %4483 = vmatpush3.bf16.msra.mxu0 %v4480_v16 }
  0xec   :  { %223 = vperm.xlu1 %5495, %v196_v10   ;;  %4485 = vmatprep.subr.bf16.mxu0 %v4484_v19 }
  0xee   :  { %5501 = vset.pattern.permute.xlu0 %v5843_v1 }
  0xef   :  { %213 = vperm.xlu0 %5501, %v194_v3   ;;  %4487 = vmatpush3.bf16.msra.mxu0 %v4484_v19  ;;  %v780_v3 = vld [vmem:[#allocation10 + $0x18] sm:$0xff] }
  0xf0   :  { %5496 = vset.pattern.permute.xlu1 %v5842_v0 }
  0xf1   :  { %321 = vperm.xlu1 %5496, %v196_v10  }
  0xf3   :  { %228 = vperm.xlu0 %5501, %v197_v5  }
  0xf5   :  { %325 = vperm.xlu1 %5496, %v197_v5  }
  0xf7   :  { %238 = vperm.xlu0 %5501, %v199_v6  }
  0xf9   :  { %5497 = vset.pattern.permute.xlu1 %v5844_v4 }
  0xfa   :  { %422 = vperm.xlu1 %5497, %v196_v10  }
  0xfb   :  { %248 = vperm.xlu0 %5501, %v201_v20  }
  0xfe   :  { %5498 = vset.pattern.permute.xlu1 %v5843_v1 }
  0xff   :  { %233 = vperm.xlu1 %5498, %v198_v21   ;;  %258 = vperm.xlu0 %5501, %v203_v22  }
 0x103   :  { %5499 = vset.pattern.permute.xlu1 %v5842_v0  ;;  %268 = vperm.xlu0 %5501, %v205_v23  }
 0x104   :  { %329 = vperm.xlu1 %5499, %v198_v21  }
 0x107   :  { %5510 = vset.pattern.permute.xlu0 %v5844_v4 }
 0x108   :  { %333 = vperm.xlu1 %5499, %v199_v6   ;;  %442 = vperm.xlu0 %5510, %v201_v20  }
 0x10c   :  { %5500 = vset.pattern.permute.xlu1 %v5844_v4  ;;  %450 = vperm.xlu0 %5510, %v203_v22  }
 0x10d   :  { %430 = vperm.xlu1 %5500, %v198_v21  }
 0x110   :  { %458 = vperm.xlu0 %5510, %v205_v23  }
 0x111   :  { %5502 = vset.pattern.permute.xlu1 %v5843_v1 }
 0x112   :  { %243 = vperm.xlu1 %5502, %v200_v24  }
 0x114   :  { %466 = vperm.xlu0 %5510, %v207_v25  }
 0x116   :  { %5503 = vset.pattern.permute.xlu1 %v5842_v0 }
 0x117   :  { %337 = vperm.xlu1 %5503, %v200_v24  }
 0x118   :  { %5515 = vset.pattern.permute.xlu0 %v5843_v1 }
 0x119   :  { %278 = vperm.xlu0 %5515, %v207_v25  }
 0x11b   :  { %341 = vperm.xlu1 %5503, %v201_v20  }
 0x11d   :  { %288 = vperm.xlu0 %5515, %v209_v26  }
 0x11f   :  { %5504 = vset.pattern.permute.xlu1 %v5844_v4 }
 0x120   :  { %438 = vperm.xlu1 %5504, %v200_v24  }
 0x121   :  { %5519 = vset.pattern.permute.xlu0 %v5844_v4 }
 0x122   :  { %474 = vperm.xlu0 %5519, %v209_v26  }
 0x124   :  { %5505 = vset.pattern.permute.xlu1 %v5843_v1 }
 0x125   :  { %253 = vperm.xlu1 %5505, %v202_v27  }
 0x129   :  { %5506 = vset.pattern.permute.xlu1 %v5842_v0 }
 0x12a   :  { %345 = vperm.xlu1 %5506, %v202_v27  }
 0x12e   :  { %349 = vperm.xlu1 %5506, %v203_v22  }
 0x132   :  { %5507 = vset.pattern.permute.xlu1 %v5844_v4 }
 0x133   :  { %446 = vperm.xlu1 %5507, %v202_v27  }
 0x137   :  { %5508 = vset.pattern.permute.xlu1 %v5843_v1 }
 0x138   :  { %263 = vperm.xlu1 %5508, %v204_v28  }
 0x13c   :  { %5509 = vset.pattern.permute.xlu1 %v5842_v0 }
 0x13d   :  { %353 = vperm.xlu1 %5509, %v204_v28  }
 0x141   :  { %357 = vperm.xlu1 %5509, %v205_v23  }
 0x145   :  { %5511 = vset.pattern.permute.xlu1 %v5844_v4 }
 0x146   :  { %454 = vperm.xlu1 %5511, %v204_v28  }
 0x14a   :  { %5512 = vset.pattern.permute.xlu1 %v5843_v1 }
 0x14b   :  { %273 = vperm.xlu1 %5512, %v206_v29  }
 0x14f   :  { %5513 = vset.pattern.permute.xlu1 %v5842_v0 }
 0x150   :  { %361 = vperm.xlu1 %5513, %v206_v29  }
 0x154   :  { %365 = vperm.xlu1 %5513, %v207_v25  }
 0x158   :  { %5514 = vset.pattern.permute.xlu1 %v5844_v4 }
 0x159   :  { %462 = vperm.xlu1 %5514, %v206_v29  }
 0x15c   :  { %v219_v31 = vpop.permute.xlu1 %218  ;;  %v314_v32 = vpop.permute.xlu0 %313 }
 0x15d   :  { %5516 = vset.pattern.permute.xlu1 %v5843_v1  ;;  %v296_v42 = vmul.f32 %v6141_v38, %v219_v31  ;;  %v380_v46 = vmul.f32 %v6139_v35, %v314_v32 }
 0x15e   :  { %283 = vperm.xlu1 %5516, %v208_v30  }
 0x161   :  { %v318_v33 = vpop.permute.xlu1 %317  ;;  %v419_v34 = vpop.permute.xlu0 %418 }
 0x162   :  { %5517 = vset.pattern.permute.xlu1 %v5842_v0  ;;  %v381_v39 = vmul.f32 %v6139_v35, %v318_v33  ;;  %v482_v45 = vmul.f32 %v6144_v40, %v419_v34  ;;  %v779_v0 = vld [vmem:[#allocation10 + $0x10] sm:$0xff] }
 0x163   :  { %369 = vperm.xlu1 %5517, %v208_v30   ;;  %v4492_v6 = vpack.c.bf16 %v780_v3, %v779_v0 }
 0x164   :  { %v397_v44 = vadd.f32 %v381_v39, %v296_v42 }
 0x165   :  { %v427_v36 = vpop.permute.xlu0 %426  ;;  %4493 = vmatprep.subr.bf16.mxu1 %v4492_v6 }
 0x166   :  { %v415_v37 = vpop.permute.xlu1 %414  ;;  %v498_v49 = vadd.f32 %v482_v45, %v397_v44  ;;  %v484_v59 = vmul.f32 %v6144_v40, %v427_v36  ;;  %4495 = vmatpush3.bf16.msra.mxu1 %v4492_v6 }
 0x167   :  { %373 = vperm.xlu1 %5517, %v209_v26   ;;  %v481_v52 = vmul.f32 %v6144_v40, %v415_v37  ;;  %4497 = vmatprep.subr.bf16.mxu1 %v4496_v15 }
 0x168   :  { %v521_v57 = vadd.f32 %v6153_v51, %v498_v49 }
 0x169   :  { %v6146_v41 = vpop.permute.xlu0 %434 }
 0x16a   :  { %v537_v9 = vmax.f32 %v521_v57, 0.0  ;;  %4499 = vmatpush3.bf16.msra.mxu1 %v4496_v15  ;;  %v486_v27 = vmul.f32 %v6144_v40, %v6146_v41 }
 0x16b   :  { %5518 = vset.pattern.permute.xlu1 %v5844_v4  ;;  %v224_v43 = vpop.permute.xlu1 %223 }
 0x16c   :  { %470 = vperm.xlu1 %5518, %v208_v30   ;;  %v297_v10 = vmul.f32 %v6141_v38, %v224_v43 }
 0x16e   :  { %v214_v47 = vpop.permute.xlu0 %213 }
 0x16f   :  { %v295_v48 = vmul.f32 %v6141_v38, %v214_v47 }
 0x170   :  { %v322_v50 = vpop.permute.xlu1 %321 }
 0x171   :  { %v396_v53 = vadd.f32 %v380_v46, %v295_v48  ;;  %v382_v1 = vmul.f32 %v6139_v35, %v322_v50 }
 0x172   :  { %v229_v54 = vpop.permute.xlu0 %228 }
 0x173   :  { %v298_v55 = vmul.f32 %v6141_v38, %v229_v54  ;;  %v497_v56 = vadd.f32 %v481_v52, %v396_v53  ;;  %v398_v13 = vadd.f32 %v382_v1, %v297_v10 }
 0x174   :  { %v326_v58 = vpop.permute.xlu1 %325 }
 0x175   :  { %v383_v60 = vmul.f32 %v6139_v35, %v326_v58  ;;  %v520_v61 = vadd.f32 %v6153_v51, %v497_v56 }
 0x176   :  { %v239_v22 = vpop.permute.xlu0 %238 }
 0x177   :  { %v399_v4 = vadd.f32 %v383_v60, %v298_v55  ;;  %v536_v5 = vmax.f32 %v520_v61, 0.0  ;;  %v300_v24 = vmul.f32 %v6141_v38, %v239_v22 }
 0x179   :  { %v500_v11 = vadd.f32 %v484_v59, %v399_v4  ;;  %v423_v12 = vpop.permute.xlu1 %422  ;;  %4408 = vmatprep.mubr.msk.f32.mxu0 %vm567_vm0, %v536_v5 }
 0x17a   :  { %v483_v14 = vmul.f32 %v6144_v40, %v423_v12  ;;  %4409 = vmatmul.mubr.msk.f32.vlgmr.msra.gmra.mrb[0].mxu0 %vm567_vm0, %v537_v9  ;;  %v249_v25 = vpop.permute.xlu0 %248 }
 0x17b   :  { %v523_v17 = vadd.f32 %v6153_v51, %v500_v11  ;;  %v302_v49 = vmul.f32 %v6141_v38, %v249_v25 }
 0x17c   :  { %v499_v16 = vadd.f32 %v483_v14, %v398_v13 }
 0x17d   :  { %v539_v21 = vmax.f32 %v523_v17, 0.0 }
 0x17e   :  { %v522_v18 = vadd.f32 %v6153_v51, %v499_v16  ;;  %v234_v19 = vpop.permute.xlu1 %233  ;;  %v259_v34 = vpop.permute.xlu0 %258 }
 0x17f   :  { %v299_v31 = vmul.f32 %v6141_v38, %v234_v19  ;;  %v304_v5 = vmul.f32 %v6141_v38, %v259_v34 }
 0x180   :  { %v538_v20 = vmax.f32 %v522_v18, 0.0 }
 0x182   :  { %4411 = vmatprep.mubr.msk.f32.mxu0 %vm567_vm0, %v538_v20  ;;  %v269_v41 = vpop.permute.xlu0 %268 }
 0x183   :  { %v330_v23 = vpop.permute.xlu1 %329  ;;  %4412 = vmatmul.mubr.msk.f32.gmra.mrb[2].mxu0 %vm567_vm0, %v539_v21  ;;  %v306_v25 = vmul.f32 %v6141_v38, %v269_v41 }
 0x184   :  { %v384_v29 = vmul.f32 %v6139_v35, %v330_v23 }
 0x186   :  { %v400_v36 = vadd.f32 %v384_v29, %v299_v31 }
 0x187   :  { %v334_v26 = vpop.permute.xlu1 %333  ;;  %v443_v48 = vpop.permute.xlu0 %442 }
 0x188   :  { %v385_v28 = vmul.f32 %v6139_v35, %v334_v26  ;;  %v488_v53 = vmul.f32 %v6144_v40, %v443_v48 }
 0x18a   :  { %v401_v30 = vadd.f32 %v385_v28, %v300_v24 }
 0x18b   :  { %v451_v4 = vpop.permute.xlu0 %450 }
 0x18c   :  { %v502_v32 = vadd.f32 %v486_v27, %v401_v30  ;;  %v431_v33 = vpop.permute.xlu1 %430  ;;  %v490_v8 = vmul.f32 %v6144_v40, %v451_v4 }
 0x18d   :  { %v485_v37 = vmul.f32 %v6144_v40, %v431_v33 }
 0x18e   :  { %v525_v42 = vadd.f32 %v6153_v51, %v502_v32 }
 0x18f   :  { %v501_v39 = vadd.f32 %v485_v37, %v400_v36  ;;  %v459_v23 = vpop.permute.xlu0 %458 }
 0x190   :  { %v541_v46 = vmax.f32 %v525_v42, 0.0  ;;  %v492_v27 = vmul.f32 %v6144_v40, %v459_v23 }
 0x191   :  { %v524_v43 = vadd.f32 %v6153_v51, %v501_v39  ;;  %v244_v44 = vpop.permute.xlu1 %243 }
 0x192   :  { %v301_v56 = vmul.f32 %v6141_v38, %v244_v44 }
 0x193   :  { %v540_v45 = vmax.f32 %v524_v43, 0.0  ;;  %v467_v43 = vpop.permute.xlu0 %466 }
 0x195   :  { %4414 = vmatprep.mubr.msk.f32.mxu0 %vm567_vm0, %v540_v45  ;;  %v783_v45 = vld [vmem:[#allocation10 + $0x30] sm:$0xff] }
 0x196   :  { %v338_v47 = vpop.permute.xlu1 %337  ;;  %4415 = vmatmul.mubr.msk.f32.gmra.mrb[4].mxu0 %vm567_vm0, %v541_v46  ;;  %v784_v46 = vld [vmem:[#allocation10 + $0x38] sm:$0xff] }
 0x197   :  { %v386_v54 = vmul.f32 %v6139_v35, %v338_v47  ;;  %v4500_v47 = vpack.c.bf16 %v784_v46, %v783_v45  ;;  %v1011_v45 = vld [vmem:[#allocation13 + $0x50] sm:$0xff]  ;;  %v1014_v46 = vld [vmem:[#allocation13 + $0x68] sm:$0xff] }
 0x199   :  { %v402_v59 = vadd.f32 %v386_v54, %v301_v56  ;;  %4501 = vmatprep.subr.bf16.mxu1 %v4500_v47 }
 0x19a   :  { %v342_v50 = vpop.permute.xlu1 %341  ;;  %4503 = vmatpush3.bf16.msra.mxu1 %v4500_v47  ;;  %v1016_v47 = vld [vmem:[#allocation13 + $0x78] sm:$0xff] }
 0x19b   :  { %v387_v52 = vmul.f32 %v6139_v35, %v342_v50 }
 0x19d   :  { %v403_v55 = vadd.f32 %v387_v52, %v302_v49  ;;  %v279_v49 = vpop.permute.xlu0 %278 }
 0x19e   :  { %v308_v50 = vmul.f32 %v6141_v38, %v279_v49 }
 0x19f   :  { %v504_v57 = vadd.f32 %v488_v53, %v403_v55  ;;  %v439_v58 = vpop.permute.xlu1 %438  ;;  %v494_v55 = vmul.f32 %v6144_v40, %v467_v43 }
 0x1a0   :  { %v487_v60 = vmul.f32 %v6144_v40, %v439_v58 }
 0x1a1   :  { %v527_v62 = vadd.f32 %v6153_v51, %v504_v57  ;;  %v289_v4 = vpop.permute.xlu0 %288 }
 0x1a2   :  { %v503_v61 = vadd.f32 %v487_v60, %v402_v59 }
 0x1a3   :  { %v543_v2 = vmax.f32 %v527_v62, 0.0 }
 0x1a4   :  { %v526_v63 = vadd.f32 %v6153_v51, %v503_v61  ;;  %v254_v0 = vpop.permute.xlu1 %253 }
 0x1a5   :  { %v303_v11 = vmul.f32 %v6141_v38, %v254_v0 }
 0x1a6   :  { %v542_v1 = vmax.f32 %v526_v63, 0.0 }
 0x1a8   :  { %4417 = vmatprep.mubr.msk.f32.mxu0 %vm567_vm0, %v542_v1 }
 0x1a9   :  { %v346_v3 = vpop.permute.xlu1 %345  ;;  %4418 = vmatmul.mubr.msk.f32.gmra.mrb[6].mxu0 %vm567_vm0, %v543_v2 }
 0x1aa   :  { %v388_v9 = vmul.f32 %v6139_v35, %v346_v3 }
 0x1ac   :  { %v404_v14 = vadd.f32 %v388_v9, %v303_v11 }
 0x1ad   :  { %v350_v6 = vpop.permute.xlu1 %349 }
 0x1ae   :  { %v389_v7 = vmul.f32 %v6139_v35, %v350_v6  ;;  %v475_v6 = vpop.permute.xlu0 %474 }
 0x1b0   :  { %v405_v10 = vadd.f32 %v389_v7, %v304_v5 }
 0x1b2   :  { %v506_v12 = vadd.f32 %v490_v8, %v405_v10  ;;  %v447_v13 = vpop.permute.xlu1 %446  ;;  %v310_v8 = vmul.f32 %v6141_v38, %v289_v4  ;;  %v496_v10 = vmul.f32 %v6144_v40, %v475_v6  ;;  %v1023_v6 = vld [vmem:[#allocation13 + $0xb0] sm:$0xff] }
 0x1b3   :  { %v489_v15 = vmul.f32 %v6144_v40, %v447_v13 }
 0x1b4   :  { %v529_v17 = vadd.f32 %v6153_v51, %v506_v12 }
 0x1b5   :  { %v505_v16 = vadd.f32 %v489_v15, %v404_v14 }
 0x1b6   :  { %v545_v21 = vmax.f32 %v529_v17, 0.0 }
 0x1b7   :  { %v528_v18 = vadd.f32 %v6153_v51, %v505_v16  ;;  %v264_v19 = vpop.permute.xlu1 %263 }
 0x1b8   :  { %v305_v30 = vmul.f32 %v6141_v38, %v264_v19 }
 0x1b9   :  { %v544_v20 = vmax.f32 %v528_v18, 0.0 }
 0x1bb   :  { %4420 = vmatprep.mubr.msk.f32.mxu0 %vm567_vm0, %v544_v20 }
 0x1bc   :  { %v354_v22 = vpop.permute.xlu1 %353  ;;  %4421 = vmatmul.mubr.msk.f32.gmra.mrb[8].mxu0 %vm567_vm0, %v545_v21 }
 0x1bd   :  { %v390_v28 = vmul.f32 %v6139_v35, %v354_v22 }
 0x1bf   :  { %v406_v33 = vadd.f32 %v390_v28, %v305_v30  ;;  %v1008_v30 = vld [vmem:[#allocation13 + $0x38] sm:$0xff] }
 0x1c0   :  { %v358_v24 = vpop.permute.xlu1 %357 }
 0x1c1   :  { %v391_v26 = vmul.f32 %v6139_v35, %v358_v24 }
 0x1c3   :  { %v407_v29 = vadd.f32 %v391_v26, %v306_v25  ;;  %v1004_v26 = vld [vmem:[#allocation13 + $0x18] sm:$0xff] }
 0x1c5   :  { %v508_v31 = vadd.f32 %v492_v27, %v407_v29  ;;  %v455_v32 = vpop.permute.xlu1 %454  ;;  %v1001_v27 = vld [vmem:[#allocation13] sm:$0xff]  ;;  %v1003_v29 = vld [vmem:[#allocation13 + $0x10] sm:$0xff] }
 0x1c6   :  { %v491_v34 = vmul.f32 %v6144_v40, %v455_v32  ;;  %v4506_v32 = vpack.c.bf16 %v1003_v29, %v1001_v27 }
 0x1c7   :  { %v531_v37 = vadd.f32 %v6153_v51, %v508_v31 }
 0x1c8   :  { %v507_v36 = vadd.f32 %v491_v34, %v406_v33  ;;  %v1005_v34 = vld [vmem:[#allocation13 + $0x20] sm:$0xff] }
 0x1c9   :  { %v547_v41 = vmax.f32 %v531_v37, 0.0  ;;  %v1010_v37 = vld [vmem:[#allocation13 + $0x48] sm:$0xff] }
 0x1ca   :  { %v530_v39 = vadd.f32 %v6153_v51, %v507_v36  ;;  %v274_v42 = vpop.permute.xlu1 %273  ;;  %v1007_v36 = vld [vmem:[#allocation13 + $0x30] sm:$0xff] }
 0x1cb   :  { %v307_v57 = vmul.f32 %v6141_v38, %v274_v42  ;;  %v1012_v42 = vld [vmem:[#allocation13 + $0x58] sm:$0xff]  ;;  %v4510_v43 = vpack.c.bf16 %v1007_v36, %v1005_v34  ;;  %v1030_v34 = vld [vmem:[#allocation13 + $0xe8] sm:$0xff] }
 0x1cc   :  { %v546_v44 = vmax.f32 %v530_v39, 0.0  ;;  %v1032_v36 = vld [vmem:[#allocation13 + $0xf8] sm:$0xff] }
 0x1ce   :  { %4423 = vmatprep.mubr.msk.f32.mxu0 %vm567_vm0, %v546_v44  ;;  %v4512_v44 = vpack.c.bf16 %v1012_v42, %v1010_v37  ;;  %v1029_v42 = vld [vmem:[#allocation13 + $0xe0] sm:$0xff] }
 0x1cf   :  { %v362_v48 = vpop.permute.xlu1 %361  ;;  %4424 = vmatmul.mubr.msk.f32.gmra.mrb[10].mxu0 %vm567_vm0, %v547_v41  ;;  %v1009_v41 = vld [vmem:[#allocation13 + $0x40] sm:$0xff] }
 0x1d0   :  { %v392_v54 = vmul.f32 %v6139_v35, %v362_v48 }
 0x1d2   :  { %v408_v60 = vadd.f32 %v392_v54, %v307_v57  ;;  %v4516_v54 = vpack.c.bf16 %v1016_v47, %v1014_v46  ;;  %v1018_v57 = vld [vmem:[#allocation13 + $0x88] sm:$0xff] }
 0x1d3   :  { %v366_v52 = vpop.permute.xlu1 %365 }
 0x1d4   :  { %v393_v53 = vmul.f32 %v6139_v35, %v366_v52  ;;  %v4514_v52 = vpack.c.bf16 %v1011_v45, %v1009_v41  ;;  %v5845_v41 = vmov 0.0  }
 0x1d6   :  { %v409_v56 = vadd.f32 %v393_v53, %v308_v50 }
 0x1d8   :  { %v510_v58 = vadd.f32 %v494_v55, %v409_v56  ;;  %v463_v59 = vpop.permute.xlu1 %462  ;;  %v1013_v55 = vld [vmem:[#allocation13 + $0x60] sm:$0xff]  ;;  %v1015_v56 = vld [vmem:[#allocation13 + $0x70] sm:$0xff] }
 0x1d9   :  { %v493_v61 = vmul.f32 %v6144_v40, %v463_v59 }
 0x1da   :  { %v533_v63 = vadd.f32 %v6153_v51, %v510_v58  ;;  %v1020_v58 = vld [vmem:[#allocation13 + $0x98] sm:$0xff] }
 0x1db   :  { %v509_v62 = vadd.f32 %v493_v61, %v408_v60  ;;  %v4518_v61 = vpack.c.bf16 %v1015_v56, %v1013_v55 }
 0x1dc   :  { %v549_v3 = vmax.f32 %v533_v63, 0.0  ;;  %v1017_v63 = vld [vmem:[#allocation13 + $0x80] sm:$0xff] }
 0x1dd   :  { %v532_v0 = vadd.f32 %v6153_v51, %v509_v62  ;;  %v284_v1 = vpop.permute.xlu1 %283  ;;  %v4520_v62 = vpack.c.bf16 %v1020_v58, %v1018_v57  ;;  %v6266_v58 = vld [vmem:[#allocation11] ss:$0 sm:$0xff] }
 0x1de   :  { %v309_v13 = vmul.f32 %v6141_v38, %v284_v1  ;;  %v1022_v1 = vld [vmem:[#allocation13 + $0xa8] sm:$0xff] }
 0x1df   :  { %v548_v2 = vmax.f32 %v532_v0, 0.0  ;;  %v1019_v0 = vld [vmem:[#allocation13 + $0x90] sm:$0xff] }
 0x1e1   :  { %4426 = vmatprep.mubr.msk.f32.mxu0 %vm567_vm0, %v548_v2  ;;  %v1024_v2 = vld [vmem:[#allocation13 + $0xb8] sm:$0xff] }
 0x1e2   :  { %v370_v5 = vpop.permute.xlu1 %369  ;;  %4427 = vmatmul.mubr.msk.f32.gmra.mrb[12].mxu0 %vm567_vm0, %v549_v3  ;;  %v4522_v3 = vpack.c.bf16 %v1019_v0, %v1017_v63  ;;  %v4524_v4 = vpack.c.bf16 %v1024_v2, %v1022_v1 }
 0x1e3   :  { %v394_v11 = vmul.f32 %v6139_v35, %v370_v5  ;;  %v1021_v5 = vld [vmem:[#allocation13 + $0xa0] sm:$0xff] }
 0x1e5   :  { %v410_v16 = vadd.f32 %v394_v11, %v309_v13  ;;  %v1025_v11 = vld [vmem:[#allocation13 + $0xc0] sm:$0xff] }
 0x1e6   :  { %v374_v7 = vpop.permute.xlu1 %373 }
 0x1e7   :  { %v395_v9 = vmul.f32 %v6139_v35, %v374_v7  ;;  %v6231_v35 = vld [vmem:[#allocation8] ss:$0 sm:$0xff]  ;;  %v1026_v7 = vld [vmem:[#allocation13 + $0xc8] sm:$0xff] }
 0x1e9   :  { %v411_v12 = vadd.f32 %v395_v9, %v310_v8  ;;  %v1028_v8 = vld [vmem:[#allocation13 + $0xd8] sm:$0xff]  ;;  %v4526_v9 = vpack.c.bf16 %v1023_v6, %v1021_v5  ;;  %v1239_v6 = vld [vmem:[#allocation16 + $0x8] sm:$0xff] }
 0x1eb   :  { %v512_v14 = vadd.f32 %v496_v10, %v411_v12  ;;  %v471_v15 = vpop.permute.xlu1 %470  ;;  %v4528_v10 = vpack.c.bf16 %v1028_v8, %v1026_v7  ;;  %v1027_v12 = vld [vmem:[#allocation13 + $0xd0] sm:$0xff]  ;;  %v1241_v8 = vld [vmem:[#allocation16 + $0x18] sm:$0xff] }
 0x1ec   :  { %v495_v17 = vmul.f32 %v6144_v40, %v471_v15  ;;  %v1002_v40 = vld [vmem:[#allocation13 + $0x8] sm:$0xff]  ;;  %v4530_v13 = vpack.c.bf16 %v1027_v12, %v1025_v11 }
 0x1ed   :  { %v535_v19 = vadd.f32 %v6153_v51, %v512_v14  ;;  %v4504_v28 = vpack.c.bf16 %v1004_v26, %v1002_v40  ;;  %v1243_v7 = vld [vmem:[#allocation16 + $0x28] sm:$0xff]  ;;  %v1238_v11 = vld [vmem:[#allocation16] sm:$0xff] }
 0x1ee   :  { %v511_v18 = vadd.f32 %v495_v17, %v410_v16  ;;  %v1242_v12 = vld [vmem:[#allocation16 + $0x20] sm:$0xff] }
 0x1ef   :  { %v551_v22 = vmax.f32 %v535_v19, 0.0  ;;  %4505 = vmatprep.subr.bf16.mxu0 %v4504_v28 }
 0x1f0   :  { %v534_v20 = vadd.f32 %v6153_v51, %v511_v18  ;;  %v1006_v51 = vld [vmem:[#allocation13 + $0x28] sm:$0xff]  ;;  %4507 = vmatpush1.bf16.msra.mxu0 %v4506_v32 }
 0x1f1   :  { %v4508_v33 = vpack.c.bf16 %v1008_v30, %v1006_v51 }
 0x1f2   :  { %v550_v21 = vmax.f32 %v534_v20, 0.0 }
 0x1f3   :  { %4509 = vmatprep.subr.bf16.mxu0 %v4508_v33 }
 0x1f4   :  { %4429 = vmatprep.mubr.msk.f32.mxu0 %vm567_vm0, %v550_v21  ;;  %4511 = vmatpush1.bf16.msra.mxu0 %v4510_v43  ;;  %v1031_v43 = vld [vmem:[#allocation13 + $0xf0] sm:$0xff] }
 0x1f5   :  { %4430 = vmatmul.mubr.msk.f32.gmra.mrb[14].mxu0 %vm567_vm0, %v551_v22  ;;  %4513 = vmatprep.subr.bf16.mxu0 %v4512_v44  ;;  %v4534_v44 = vpack.c.bf16 %v1031_v43, %v1029_v42  ;;  %v1263_v42 = vld [vmem:[#allocation16 + $0xc8] sm:$0xff] }
 0x1f6   :  { %1109 = vmatprep.mubr.f32.mxu0 %v5845_v41  ;;  %v1267_v43 = vld [vmem:[#allocation16 + $0xe8] sm:$0xff] }
 0x1f8   :  { %4515 = vmatpush1.bf16.msra.mxu0 %v4514_v52 }
 0x1f9   :  { %4517 = vmatprep.subr.bf16.mxu0 %v4516_v54 }
 0x1fc   :  { %4519 = vmatpush1.bf16.msra.mxu0 %v4518_v61 }
 0x1fd   :  { %4521 = vmatprep.subr.bf16.mxu0 %v4520_v62 }
 0x200   :  { %4523 = vmatpush1.bf16.msra.mxu0 %v4522_v3 }
 0x201   :  { %4525 = vmatprep.subr.bf16.mxu0 %v4524_v4 }
 0x204   :  { %4527 = vmatpush1.bf16.msra.mxu0 %v4526_v9  ;;  %v4536_v9 = vpack.c.bf16 %v1243_v7, %v1239_v6 }
 0x205   :  { %4529 = vmatprep.subr.bf16.mxu0 %v4528_v10  ;;  %v1245_v10 = vld [vmem:[#allocation16 + $0x38] sm:$0xff] }
 0x206   :  { %4537 = vmatprep.subr.bf16.mxu1 %v4536_v9 }
 0x208   :  { %4531 = vmatpush1.bf16.msra.mxu0 %v4530_v13  ;;  %v4600_v13 = vpack.c.bf16 %v1245_v10, %v1241_v8 }
 0x24d   :  { %v4410_v23 = vpop.f32.mrb[0].mxu0 }
 0x24e   :  { %v688_v38 = vadd.f32 %v4410_v23, %v6231_v35  ;;  %v682_v24 = vpop.f32.mrb[1].mxu0 }
 0x24f   :  { %v683_v25 = vadd.f32 %v6231_v35, %v682_v24 }
 0x250   :  { %v762_v39 = vmax.f32 %v688_v38, 0.0 }
 0x251   :  { %v761_v31 = vmax.f32 %v683_v25, 0.0 }
 0x253   :  { %4448 = vmatprep.mubr.msk.f32.mxu1 %vm567_vm0, %v761_v31 }
 0x254   :  { %4449 = vmatmul.mubr.msk.f32.vlgmr.msra.gmra.mrb[0].mxu1 %vm567_vm0, %v762_v39  ;;  %v4532_v39 = vpack.c.bf16 %v1032_v36, %v1030_v34  ;;  %v1258_v34 = vld [vmem:[#allocation16 + $0xa0] sm:$0xff]  ;;  %v1256_v36 = vld [vmem:[#allocation16 + $0x90] sm:$0xff] }
 0x256   :  { %v4413_v48 = vpop.f32.mrb[2].mxu0  ;;  %4533 = vmatprep.subr.bf16.mxu0 %v4532_v39 }
 0x257   :  { %v698_v49 = vadd.f32 %v4413_v48, %v6231_v35  ;;  %v692_v50 = vpop.f32.mrb[3].mxu0  ;;  %4535 = vmatpush1.bf16.msra.mxu0 %v4534_v44  ;;  %v1265_v44 = vld [vmem:[#allocation16 + $0xd8] sm:$0xff] }
 0x258   :  { %v693_v53 = vadd.f32 %v6231_v35, %v692_v50  ;;  %4601 = vmatprep.subr.bf16.mxu0 %v4600_v13  ;;  %v1272_v13 = vld [vmem:[#allocation16 + $0x110] sm:$0xff] }
 0x259   :  { %v764_v60 = vmax.f32 %v698_v49, 0.0 }
 0x25a   :  { %v763_v59 = vmax.f32 %v693_v53, 0.0 }
 0x25c   :  { %4451 = vmatprep.mubr.msk.f32.mxu1 %vm567_vm0, %v763_v59 }
 0x25d   :  { %4452 = vmatmul.mubr.msk.f32.gmra.mrb[2].mxu1 %vm567_vm0, %v764_v60 }
 0x269   :  { %v4416_v14 = vpop.f32.mrb[4].mxu0 }
 0x26a   :  { %v708_v15 = vadd.f32 %v4416_v14, %v6231_v35  ;;  %v702_v16 = vpop.f32.mrb[5].mxu0  ;;  %v4538_v14 = vpack.c.bf16 %v1242_v12, %v1238_v11  ;;  %v1270_v11 = vld [vmem:[#allocation16 + $0x100] sm:$0xff] }
 0x26b   :  { %v703_v17 = vadd.f32 %v6231_v35, %v702_v16  ;;  %v1244_v16 = vld [vmem:[#allocation16 + $0x30] sm:$0xff]  ;;  %v1274_v12 = vld [vmem:[#allocation16 + $0x120] sm:$0xff] }
 0x26c   :  { %v766_v19 = vmax.f32 %v708_v15, 0.0  ;;  %v1240_v15 = vld [vmem:[#allocation16 + $0x10] sm:$0xff]  ;;  %4539 = vmatpush1.bf16.msra.mxu1 %v4538_v14 }
 0x26d   :  { %v765_v18 = vmax.f32 %v703_v17, 0.0  ;;  %v1247_v17 = vld [vmem:[#allocation16 + $0x48] sm:$0xff] }
 0x26f   :  { %4454 = vmatprep.mubr.msk.f32.mxu1 %vm567_vm0, %v765_v18  ;;  %v4602_v18 = vpack.c.bf16 %v1244_v16, %v1240_v15  ;;  %v1276_v16 = vld [vmem:[#allocation16 + $0x130] sm:$0xff] }
 0x270   :  { %4455 = vmatmul.mubr.msk.f32.gmra.mrb[4].mxu1 %vm567_vm0, %v766_v19  ;;  %v1251_v19 = vld [vmem:[#allocation16 + $0x68] sm:$0xff] }
 0x27c   :  { %v4419_v20 = vpop.f32.mrb[6].mxu0 }
 0x27d   :  { %v718_v21 = vadd.f32 %v4419_v20, %v6231_v35  ;;  %v712_v22 = vpop.f32.mrb[7].mxu0  ;;  %v1249_v20 = vld [vmem:[#allocation16 + $0x58] sm:$0xff] }
 0x27e   :  { %v713_v23 = vadd.f32 %v6231_v35, %v712_v22  ;;  %v4540_v22 = vpack.c.bf16 %v1251_v19, %v1247_v17  ;;  %v1279_v17 = vld [vmem:[#allocation16 + $0x148] sm:$0xff] }
 0x27f   :  { %v768_v24 = vmax.f32 %v718_v21, 0.0  ;;  %v1253_v21 = vld [vmem:[#allocation16 + $0x78] sm:$0xff] }
 0x280   :  { %v767_v38 = vmax.f32 %v713_v23, 0.0  ;;  %v4604_v23 = vpack.c.bf16 %v1253_v21, %v1249_v20  ;;  %4541 = vmatprep.subr.bf16.mxu1 %v4540_v22  ;;  %v1281_v20 = vld [vmem:[#allocation16 + $0x158] sm:$0xff]  ;;  %v4554_v22 = vpack.c.bf16 %v1274_v12, %v1270_v11  ;;  %v1308_v12 = vld [vmem:[#allocation16 + $0x230] sm:$0xff] }
 0x281   :  { %v1285_v21 = vld [vmem:[#allocation16 + $0x178] sm:$0xff] }
 0x282   :  { %4457 = vmatprep.mubr.msk.f32.mxu1 %vm567_vm0, %v767_v38  ;;  %v1246_v38 = vld [vmem:[#allocation16 + $0x40] sm:$0xff] }
 0x283   :  { %4458 = vmatmul.mubr.msk.f32.gmra.mrb[6].mxu1 %vm567_vm0, %v768_v24  ;;  %v1250_v24 = vld [vmem:[#allocation16 + $0x60] sm:$0xff] }
 0x28f   :  { %v4422_v25 = vpop.f32.mrb[8].mxu0 }
 0x290   :  { %v728_v40 = vadd.f32 %v4422_v25, %v6231_v35  ;;  %v722_v26 = vpop.f32.mrb[9].mxu0  ;;  %v1248_v25 = vld [vmem:[#allocation16 + $0x50] sm:$0xff] }
 0x291   :  { %v723_v27 = vadd.f32 %v6231_v35, %v722_v26  ;;  %v1252_v26 = vld [vmem:[#allocation16 + $0x70] sm:$0xff] }
 0x292   :  { %v770_v29 = vmax.f32 %v728_v40, 0.0  ;;  %v4542_v40 = vpack.c.bf16 %v1250_v24, %v1246_v38  ;;  %v1278_v38 = vld [vmem:[#allocation16 + $0x140] sm:$0xff] }
 0x293   :  { %v769_v28 = vmax.f32 %v723_v27, 0.0  ;;  %v1255_v27 = vld [vmem:[#allocation16 + $0x88] sm:$0xff]  ;;  %v1282_v24 = vld [vmem:[#allocation16 + $0x160] sm:$0xff] }
 0x294   :  { %4543 = vmatpush1.bf16.msra.mxu1 %v4542_v40  ;;  %v1287_v40 = vld [vmem:[#allocation16 + $0x188] sm:$0xff] }
 0x295   :  { %4460 = vmatprep.mubr.msk.f32.mxu1 %vm567_vm0, %v769_v28  ;;  %v1259_v28 = vld [vmem:[#allocation16 + $0xa8] sm:$0xff] }
 0x296   :  { %4461 = vmatmul.mubr.msk.f32.gmra.mrb[8].mxu1 %vm567_vm0, %v770_v29  ;;  %v4606_v29 = vpack.c.bf16 %v1252_v26, %v1248_v25  ;;  %v1280_v25 = vld [vmem:[#allocation16 + $0x150] sm:$0xff]  ;;  %v1291_v26 = vld [vmem:[#allocation16 + $0x1a8] sm:$0xff] }
 0x2a2   :  { %v4425_v51 = vpop.f32.mrb[10].mxu0 }
 0x2a3   :  { %v738_v30 = vadd.f32 %v4425_v51, %v6231_v35  ;;  %v732_v31 = vpop.f32.mrb[11].mxu0  ;;  %v4544_v51 = vpack.c.bf16 %v1259_v28, %v1255_v27  ;;  %v1289_v27 = vld [vmem:[#allocation16 + $0x198] sm:$0xff] }
 0x2a4   :  { %v733_v32 = vadd.f32 %v6231_v35, %v732_v31  ;;  %v1261_v31 = vld [vmem:[#allocation16 + $0xb8] sm:$0xff] }
 0x2a5   :  { %v772_v37 = vmax.f32 %v738_v30, 0.0  ;;  %v1257_v30 = vld [vmem:[#allocation16 + $0x98] sm:$0xff]  ;;  %4545 = vmatprep.subr.bf16.mxu1 %v4544_v51 }
 0x2a6   :  { %v771_v33 = vmax.f32 %v733_v32, 0.0  ;;  %v1254_v32 = vld [vmem:[#allocation16 + $0x80] sm:$0xff]  ;;  %v1293_v28 = vld [vmem:[#allocation16 + $0x1b8] sm:$0xff] }
 0x2a7   :  { %v4546_v39 = vpack.c.bf16 %v1258_v34, %v1254_v32  ;;  %v1290_v32 = vld [vmem:[#allocation16 + $0x1a0] sm:$0xff]  ;;  %v4624_v34 = vpack.c.bf16 %v1293_v28, %v1289_v27  ;;  %v1323_v27 = vld [vmem:[#allocation16 + $0x2a8] sm:$0xff] }
 0x2a8   :  { %4463 = vmatprep.mubr.msk.f32.mxu1 %vm567_vm0, %v771_v33  ;;  %v4608_v33 = vpack.c.bf16 %v1261_v31, %v1257_v30  ;;  %v4560_v30 = vpack.c.bf16 %v1291_v26, %v1287_v40  ;;  %v1286_v31 = vld [vmem:[#allocation16 + $0x180] sm:$0xff]  ;;  %v1316_v40 = vld [vmem:[#allocation16 + $0x270] sm:$0xff]  ;;  %v1319_v26 = vld [vmem:[#allocation16 + $0x288] sm:$0xff] }
 0x2a9   :  { %4464 = vmatmul.mubr.msk.f32.gmra.mrb[10].mxu1 %vm567_vm0, %v772_v37  ;;  %v1260_v37 = vld [vmem:[#allocation16 + $0xb0] sm:$0xff] }
 0x2aa   :  { %4547 = vmatpush1.bf16.msra.mxu1 %v4546_v39  ;;  %v1299_v39 = vld [vmem:[#allocation16 + $0x1e8] sm:$0xff] }
 0x2b5   :  { %v4428_v45 = vpop.f32.mrb[12].mxu0 }
 0x2b6   :  { %v748_v46 = vadd.f32 %v4428_v45, %v6231_v35  ;;  %v742_v47 = vpop.f32.mrb[13].mxu0 }
 0x2b7   :  { %v743_v48 = vadd.f32 %v6231_v35, %v742_v47  ;;  %v4548_v47 = vpack.c.bf16 %v1267_v43, %v1263_v42  ;;  %v1297_v42 = vld [vmem:[#allocation16 + $0x1d8] sm:$0xff] }
 0x2b8   :  { %v774_v50 = vmax.f32 %v748_v46, 0.0  ;;  %v4610_v46 = vpack.c.bf16 %v1260_v37, %v1256_v36  ;;  %v1292_v36 = vld [vmem:[#allocation16 + $0x1b0] sm:$0xff]  ;;  %v1295_v37 = vld [vmem:[#allocation16 + $0x1c8] sm:$0xff]  ;;  %v1301_v43 = vld [vmem:[#allocation16 + $0x1f8] sm:$0xff] }
 0x2b9   :  { %v773_v49 = vmax.f32 %v743_v48, 0.0  ;;  %v1269_v48 = vld [vmem:[#allocation16 + $0xf8] sm:$0xff]  ;;  %4549 = vmatprep.subr.bf16.mxu1 %v4548_v47  ;;  %v1294_v47 = vld [vmem:[#allocation16 + $0x1c0] sm:$0xff] }
 0x2bb   :  { %4466 = vmatprep.mubr.msk.f32.mxu1 %vm567_vm0, %v773_v49  ;;  %v1262_v49 = vld [vmem:[#allocation16 + $0xc0] sm:$0xff] }
 0x2bc   :  { %4467 = vmatmul.mubr.msk.f32.gmra.mrb[12].mxu1 %vm567_vm0, %v774_v50  ;;  %v1266_v50 = vld [vmem:[#allocation16 + $0xe0] sm:$0xff] }
 0x2bd   :  { %v4550_v7 = vpack.c.bf16 %v1266_v50, %v1262_v49  ;;  %v1296_v49 = vld [vmem:[#allocation16 + $0x1d0] sm:$0xff]  ;;  %v4628_v50 = vpack.c.bf16 %v1301_v43, %v1297_v42  ;;  %v1333_v42 = vld [vmem:[#allocation16 + $0x2f8] sm:$0xff] }
 0x2bf   :  { %4551 = vmatpush1.bf16.msra.mxu1 %v4550_v7  ;;  %v1302_v7 = vld [vmem:[#allocation16 + $0x200] sm:$0xff] }
 0x2c8   :  { %v4431_v52 = vpop.f32.mrb[14].mxu0 }
 0x2c9   :  { %v758_v53 = vadd.f32 %v4431_v52, %v6231_v35  ;;  %v752_v54 = vpop.f32.mrb[15].mxu0 }
 0x2ca   :  { %v753_v55 = vadd.f32 %v6231_v35, %v752_v54  ;;  %v4612_v54 = vpack.c.bf16 %v1269_v48, %v1265_v44  ;;  %v4562_v44 = vpack.c.bf16 %v1290_v32, %v1286_v31  ;;  %v1298_v48 = vld [vmem:[#allocation16 + $0x1e0] sm:$0xff] }
 0x2cb   :  { %v776_v57 = vmax.f32 %v758_v53, 0.0  ;;  %v1318_v31 = vld [vmem:[#allocation16 + $0x280] sm:$0xff] }
 0x2cc   :  { %v775_v56 = vmax.f32 %v753_v55, 0.0  ;;  %v1264_v55 = vld [vmem:[#allocation16 + $0xd0] sm:$0xff] }
 0x2ce   :  { %4469 = vmatprep.mubr.msk.f32.mxu1 %vm567_vm0, %v775_v56  ;;  %v1268_v56 = vld [vmem:[#allocation16 + $0xf0] sm:$0xff] }
 0x2cf   :  { %4470 = vmatmul.mubr.msk.f32.gmra.mrb[14].mxu1 %vm567_vm0, %v776_v57  ;;  %v1271_v57 = vld [vmem:[#allocation16 + $0x108] sm:$0xff]  ;;  %v4614_v9 = vpack.c.bf16 %v1268_v56, %v1264_v55  ;;  %v1305_v55 = vld [vmem:[#allocation16 + $0x218] sm:$0xff] }
 0x2d0   :  { %v1309_v56 = vld [vmem:[#allocation16 + $0x238] sm:$0xff] }
 0x2d1   :  { %v4632_v11 = vpack.c.bf16 %v1309_v56, %v1305_v55  ;;  %v1334_v56 = vld [vmem:[#allocation16 + $0x300] sm:$0xff] }
 0x327   :  { %v4450_v59 = vpop.f32.mrb[0].mxu1 }
 0x328   :  { %v906_v60 = vpop.f32.mrb[1].mxu1  ;;  %v6272_v62 = vadd.f32 %v4450_v59, %v6266_v58 }
 0x329   :  { %v6269_v61 = vadd.f32 %v6266_v58, %v906_v60  ;;  %v1275_v60 = vld [vmem:[#allocation16 + $0x128] sm:$0xff] }
 0x32a   :  { %v986_v35 = vmax.f32 %v6272_v62, 0.0  ;;  %v4552_v10 = vpack.c.bf16 %v1275_v60, %v1271_v57 }
 0x32b   :  { %v985_v63 = vmax.f32 %v6269_v61, 0.0  ;;  %v4620_v61 = vpack.c.bf16 %v1285_v21, %v1281_v20 }
 0x32c   :  { %4553 = vmatprep.subr.bf16.mxu1 %v4552_v10 }
 0x32d   :  { %1110 = vmatmul.mubr.f32.vlgmr.msra.gmra.mrb[16].mxu0 %v985_v63  ;;  %4555 = vmatpush1.bf16.msra.mxu1 %v4554_v22 }
 0x32e   :  { %1115 = vmatprep.mubr.f32.mxu0 %v5845_v41  ;;  %4603 = vmatpush1.bf16.msra.mxu0 %v4602_v18  ;;  %v1283_v18 = vld [vmem:[#allocation16 + $0x168] sm:$0xff] }
 0x32f   :  { %4605 = vmatprep.subr.bf16.mxu0 %v4604_v23  ;;  %v4556_v23 = vpack.c.bf16 %v1283_v18, %v1279_v17  ;;  %v1313_v17 = vld [vmem:[#allocation16 + $0x258] sm:$0xff] }
 0x330   :  { %v4453_v0 = vpop.f32.mrb[2].mxu1  ;;  %v1317_v18 = vld [vmem:[#allocation16 + $0x278] sm:$0xff] }
 0x331   :  { %v916_v1 = vpop.f32.mrb[3].mxu1  ;;  %1116 = vmatmul.mubr.f32.gmra.mrb[18].mxu0 %v986_v35  ;;  %v6286_v3 = vadd.f32 %v4453_v0, %v6266_v58  ;;  %v1273_v0 = vld [vmem:[#allocation16 + $0x118] sm:$0xff]  ;;  %4557 = vmatprep.subr.bf16.mxu1 %v4556_v23 }
 0x332   :  { %v6282_v2 = vadd.f32 %v6266_v58, %v916_v1  ;;  %1121 = vmatprep.mubr.f32.mxu0 %v5845_v41  ;;  %4607 = vmatpush1.bf16.msra.mxu0 %v4606_v29  ;;  %v1277_v1 = vld [vmem:[#allocation16 + $0x138] sm:$0xff]  ;;  %v4558_v29 = vpack.c.bf16 %v1282_v24, %v1278_v38  ;;  %v1310_v38 = vld [vmem:[#allocation16 + $0x240] sm:$0xff] }
 0x333   :  { %v988_v5 = vmax.f32 %v6286_v3, 0.0  ;;  %4609 = vmatprep.subr.bf16.mxu0 %v4608_v33  ;;  %v4616_v15 = vpack.c.bf16 %v1277_v1, %v1273_v0  ;;  %v1288_v33 = vld [vmem:[#allocation16 + $0x190] sm:$0xff]  ;;  %v1314_v24 = vld [vmem:[#allocation16 + $0x260] sm:$0xff]  ;;  %v1321_v3 = vld [vmem:[#allocation16 + $0x298] sm:$0xff] }
 0x334   :  { %v987_v4 = vmax.f32 %v6282_v2, 0.0  ;;  %4559 = vmatpush1.bf16.msra.mxu1 %v4558_v29  ;;  %v4574_v29 = vpack.c.bf16 %v1314_v24, %v1310_v38  ;;  %v1322_v2 = vld [vmem:[#allocation16 + $0x2a0] sm:$0xff]  ;;  %v1348_v38 = vld [vmem:[#allocation16 + $0x370] sm:$0xff] }
 0x335   :  { %4561 = vmatprep.subr.bf16.mxu1 %v4560_v30  ;;  %v4576_v30 = vpack.c.bf16 %v1323_v27, %v1319_v26  ;;  %v4578_v43 = vpack.c.bf16 %v1322_v2, %v1318_v31  ;;  %v1356_v2 = vld [vmem:[#allocation16 + $0x3b0] sm:$0xff] }
 0x336   :  { %1122 = vmatmul.mubr.f32.gmra.mrb[20].mxu0 %v987_v4 }
 0x337   :  { %1127 = vmatprep.mubr.f32.mxu0 %v5845_v41  ;;  %4611 = vmatpush1.bf16.msra.mxu0 %v4610_v46  ;;  %v4564_v46 = vpack.c.bf16 %v1299_v39, %v1295_v37  ;;  %v1331_v37 = vld [vmem:[#allocation16 + $0x2e8] sm:$0xff]  ;;  %v1329_v39 = vld [vmem:[#allocation16 + $0x2d8] sm:$0xff] }
 0x338   :  { %4613 = vmatprep.subr.bf16.mxu0 %v4612_v54  ;;  %v1307_v54 = vld [vmem:[#allocation16 + $0x228] sm:$0xff]  ;;  %4563 = vmatpush1.bf16.msra.mxu1 %v4562_v44 }
 0x339   :  { %4565 = vmatprep.subr.bf16.mxu1 %v4564_v46  ;;  %v1326_v46 = vld [vmem:[#allocation16 + $0x2c0] sm:$0xff] }
 0x33a   :  { %1128 = vmatmul.mubr.f32.gmra.mrb[22].mxu0 %v988_v5 }
 0x33b   :  { %1133 = vmatprep.mubr.f32.mxu0 %v5845_v41  ;;  %4615 = vmatpush1.bf16.msra.mxu0 %v4614_v9  ;;  %v1304_v9 = vld [vmem:[#allocation16 + $0x210] sm:$0xff] }
 0x33c   :  { %4617 = vmatprep.subr.bf16.mxu0 %v4616_v15  ;;  %v1315_v15 = vld [vmem:[#allocation16 + $0x268] sm:$0xff] }
 0x343   :  { %v4456_v45 = vpop.f32.mrb[4].mxu1 }
 0x344   :  { %v932_v52 = vadd.f32 %v4456_v45, %v6266_v58  ;;  %v926_v53 = vpop.f32.mrb[5].mxu1  ;;  %v4626_v45 = vpack.c.bf16 %v1292_v36, %v1288_v33  ;;  %v1327_v36 = vld [vmem:[#allocation16 + $0x2c8] sm:$0xff] }
 0x345   :  { %v927_v59 = vadd.f32 %v6266_v58, %v926_v53  ;;  %v1303_v53 = vld [vmem:[#allocation16 + $0x208] sm:$0xff] }
 0x346   :  { %v990_v6 = vmax.f32 %v932_v52, 0.0  ;;  %v1300_v52 = vld [vmem:[#allocation16 + $0x1f0] sm:$0xff] }
 0x347   :  { %v989_v8 = vmax.f32 %v927_v59, 0.0  ;;  %v4566_v59 = vpack.c.bf16 %v1298_v48, %v1294_v47  ;;  %v4630_v1 = vpack.c.bf16 %v1300_v52, %v1296_v49  ;;  %v1332_v47 = vld [vmem:[#allocation16 + $0x2f0] sm:$0xff]  ;;  %v1335_v48 = vld [vmem:[#allocation16 + $0x308] sm:$0xff]  ;;  %v1341_v52 = vld [vmem:[#allocation16 + $0x338] sm:$0xff] }
 0x348   :  { %v6300_v14 = vmax.f32 %v986_v35, %v990_v6  ;;  %v4618_v35 = vpack.c.bf16 %v1276_v16, %v1272_v13  ;;  %v1311_v13 = vld [vmem:[#allocation16 + $0x248] sm:$0xff] }
 0x349   :  { %v6304_v19 = vmax.f32 %v985_v63, %v989_v8  ;;  %1134 = vmatmul.mubr.f32.gmra.mrb[24].mxu0 %v989_v8  ;;  %v1284_v63 = vld [vmem:[#allocation16 + $0x170] sm:$0xff]  ;;  %v1306_v8 = vld [vmem:[#allocation16 + $0x220] sm:$0xff]  ;;  %4567 = vmatpush1.bf16.msra.mxu1 %v4566_v59  ;;  %v4572_v23 = vpack.c.bf16 %v1315_v15, %v1311_v13  ;;  %v1339_v49 = vld [vmem:[#allocation16 + $0x328] sm:$0xff] }
 0x34a   :  { %1139 = vmatprep.mubr.f32.mxu0 %v5845_v41  ;;  %4619 = vmatpush1.bf16.msra.mxu0 %v4618_v35  ;;  %v4622_v51 = vpack.c.bf16 %v1284_v63, %v1280_v25  ;;  %v4570_v21 = vpack.c.bf16 %v1306_v8, %v1302_v7  ;;  %v4634_v35 = vpack.c.bf16 %v1308_v12, %v1304_v9  ;;  %v1312_v25 = vld [vmem:[#allocation16 + $0x250] sm:$0xff]  ;;  %v1342_v15 = vld [vmem:[#allocation16 + $0x340] sm:$0xff] }
 0x34b   :  { %v3930_v62 = vmax.f32 %v6304_v19, %v6300_v14  ;;  %4621 = vmatprep.subr.bf16.mxu0 %v4620_v61  ;;  %v4636_v63 = vpack.c.bf16 %v1317_v18, %v1313_v17  ;;  %v1330_v14 = vld [vmem:[#allocation16 + $0x2e0] sm:$0xff]  ;;  %v1328_v19 = vld [vmem:[#allocation16 + $0x2d0] sm:$0xff]  ;;  %v4584_v55 = vpack.c.bf16 %v1339_v49, %v1335_v48  ;;  %v1351_v18 = vld [vmem:[#allocation16 + $0x388] sm:$0xff] }
 0x34c   :  { %v1340_v7 = vld [vmem:[#allocation16 + $0x330] sm:$0xff] }
 0x34d   :  { %1140 = vmatmul.mubr.f32.gmra.mrb[26].mxu0 %v990_v6  ;;  %v4568_v6 = vpack.c.bf16 %v1307_v54, %v1303_v53  ;;  %v4582_v53 = vpack.c.bf16 %v1330_v14, %v1326_v46  ;;  %v4646_v54 = vpack.c.bf16 %v1332_v47, %v1328_v19  ;;  %v1360_v19 = vld [vmem:[#allocation16 + $0x3d0] sm:$0xff] }
 0x34e   :  { %1145 = vmatprep.mubr.f32.mxu0 %v5845_v41  ;;  %4623 = vmatpush1.bf16.msra.mxu0 %v4622_v51  ;;  %v4638_v51 = vpack.c.bf16 %v1316_v40, %v1312_v25  ;;  %v1353_v25 = vld [vmem:[#allocation16 + $0x398] sm:$0xff] }
 0x34f   :  { %4625 = vmatprep.subr.bf16.mxu0 %v4624_v34  ;;  %4569 = vmatprep.subr.bf16.mxu1 %v4568_v6  ;;  %v1324_v34 = vld [vmem:[#allocation16 + $0x2b0] sm:$0xff] }
 0x350   :  { %4571 = vmatpush1.bf16.msra.mxu1 %v4570_v21  ;;  %v1336_v6 = vld [vmem:[#allocation16 + $0x310] sm:$0xff] }
 0x351   :  { %4573 = vmatprep.subr.bf16.mxu1 %v4572_v23  ;;  %v4650_v17 = vpack.c.bf16 %v1340_v7, %v1336_v6  ;;  %v1344_v23 = vld [vmem:[#allocation16 + $0x350] sm:$0xff] }
 0x352   :  { %4627 = vmatpush1.bf16.msra.mxu0 %v4626_v45  ;;  %v4580_v45 = vpack.c.bf16 %v1331_v37, %v1327_v36  ;;  %v4654_v40 = vpack.c.bf16 %v1348_v38, %v1344_v23  ;;  %v1359_v36 = vld [vmem:[#allocation16 + $0x3c8] sm:$0xff] }
 0x353   :  { %4629 = vmatprep.subr.bf16.mxu0 %v4628_v50  ;;  %v1337_v50 = vld [vmem:[#allocation16 + $0x318] sm:$0xff]  ;;  %v1363_v37 = vld [vmem:[#allocation16 + $0x3e8] sm:$0xff] }
 0x354   :  { %4575 = vmatpush1.bf16.msra.mxu1 %v4574_v29  ;;  %v4648_v59 = vpack.c.bf16 %v1341_v52, %v1337_v50  ;;  %v1354_v29 = vld [vmem:[#allocation16 + $0x3a0] sm:$0xff] }
 0x355   :  { %4577 = vmatprep.subr.bf16.mxu1 %v4576_v30 }
 0x356   :  { %v4459_v57 = vpop.f32.mrb[6].mxu1  ;;  %4631 = vmatpush1.bf16.msra.mxu0 %v4630_v1 }
 0x357   :  { %v942_v60 = vadd.f32 %v4459_v57, %v6266_v58  ;;  %v936_v0 = vpop.f32.mrb[7].mxu1  ;;  %4633 = vmatprep.subr.bf16.mxu0 %v4632_v11  ;;  %v1338_v57 = vld [vmem:[#allocation16 + $0x320] sm:$0xff]  ;;  %v1349_v11 = vld [vmem:[#allocation16 + $0x378] sm:$0xff] }
 0x358   :  { %v937_v10 = vadd.f32 %v6266_v58, %v936_v0  ;;  %4579 = vmatpush1.bf16.msra.mxu1 %v4578_v43  ;;  %v1347_v0 = vld [vmem:[#allocation16 + $0x368] sm:$0xff]  ;;  %v4586_v9 = vpack.c.bf16 %v1338_v57, %v1334_v56  ;;  %v1365_v43 = vld [vmem:[#allocation16 + $0x3f8] sm:$0xff] }
 0x359   :  { %v992_v16 = vmax.f32 %v942_v60, 0.0  ;;  %4581 = vmatprep.subr.bf16.mxu1 %v4580_v45  ;;  %v1343_v60 = vld [vmem:[#allocation16 + $0x348] sm:$0xff]  ;;  %v1362_v45 = vld [vmem:[#allocation16 + $0x3e0] sm:$0xff] }
 0x35a   :  { %v991_v20 = vmax.f32 %v937_v10, 0.0  ;;  %4635 = vmatpush1.bf16.msra.mxu0 %v4634_v35  ;;  %v1345_v10 = vld [vmem:[#allocation16 + $0x358] sm:$0xff]  ;;  %v4588_v13 = vpack.c.bf16 %v1347_v0, %v1343_v60 }
 0x35b   :  { %v3929_v22 = vmax.f32 %v988_v5, %v992_v16  ;;  %v1325_v5 = vld [vmem:[#allocation16 + $0x2b8] sm:$0xff]  ;;  %4637 = vmatprep.subr.bf16.mxu0 %v4636_v63  ;;  %v4652_v35 = vpack.c.bf16 %v1349_v11, %v1345_v10 }
 0x35c   :  { %v3928_v61 = vmax.f32 %v987_v4, %v991_v20  ;;  %1146 = vmatmul.mubr.f32.gmra.mrb[28].mxu0 %v991_v20  ;;  %v1320_v4 = vld [vmem:[#allocation16 + $0x290] sm:$0xff]  ;;  %v4640_v33 = vpack.c.bf16 %v1325_v5, %v1321_v3  ;;  %4583 = vmatpush1.bf16.msra.mxu1 %v4582_v53  ;;  %v1355_v20 = vld [vmem:[#allocation16 + $0x3a8] sm:$0xff] }
 0x35d   :  { %1151 = vmatprep.mubr.f32.mxu0 %v5845_v41  ;;  %v4642_v44 = vpack.c.bf16 %v1324_v34, %v1320_v4  ;;  %4585 = vmatprep.subr.bf16.mxu1 %v4584_v55  ;;  %v4592_v63 = vpack.c.bf16 %v1355_v20, %v1351_v18 }
 0x35e   :  { %v3931_v28 = vmax.f32 %v3928_v61, %v3929_v22  ;;  %4639 = vmatpush1.bf16.msra.mxu0 %v4638_v51  ;;  %v1357_v61 = vld [vmem:[#allocation16 + $0x3b8] sm:$0xff]  ;;  %v1352_v51 = vld [vmem:[#allocation16 + $0x390] sm:$0xff] }
 0x35f   :  { %4641 = vmatprep.subr.bf16.mxu0 %v4640_v33  ;;  %v4656_v27 = vpack.c.bf16 %v1357_v61, %v1353_v25  ;;  %v4658_v4 = vpack.c.bf16 %v1356_v2, %v1352_v51 }
 0x360   :  { %v6320_v32 = vmax.f32 %v3930_v62, %v3931_v28  ;;  %1152 = vmatmul.mubr.f32.gmra.mrb[30].mxu0 %v992_v16  ;;  %v4644_v62 = vpack.c.bf16 %v1333_v42, %v1329_v39  ;;  %v1346_v16 = vld [vmem:[#allocation16 + $0x360] sm:$0xff]  ;;  %4587 = vmatpush1.bf16.msra.mxu1 %v4586_v9  ;;  %v1361_v39 = vld [vmem:[#allocation16 + $0x3d8] sm:$0xff]  ;;  %v4596_v42 = vpack.c.bf16 %v1363_v37, %v1359_v36 }
 0x361   :  { %1157 = vmatprep.mubr.f32.mxu0 %v5845_v41  ;;  %v4590_v24 = vpack.c.bf16 %v1346_v16, %v1342_v15  ;;  %4589 = vmatprep.subr.bf16.mxu1 %v4588_v13  ;;  %v1350_v28 = vld [vmem:[#allocation16 + $0x380] sm:$0xff]  ;;  %v4660_v46 = vpack.c.bf16 %v1365_v43, %v1361_v39 }
 0x362   :  { %4643 = vmatpush1.bf16.msra.mxu0 %v4642_v44  ;;  %v4594_v31 = vpack.c.bf16 %v1354_v29, %v1350_v28  ;;  %v1358_v44 = vld [vmem:[#allocation16 + $0x3c0] sm:$0xff] }
 0x363   :  { %4645 = vmatprep.subr.bf16.mxu0 %v4644_v62  ;;  %v4598_v14 = vpack.c.bf16 %v1362_v45, %v1358_v44  ;;  %v1364_v62 = vld [vmem:[#allocation16 + $0x3f0] sm:$0xff] }
 0x364   :  { %4591 = vmatpush1.bf16.msra.mxu1 %v4590_v24  ;;  %v4662_v47 = vpack.c.bf16 %v1364_v62, %v1360_v19 }
 0x365   :  { %4593 = vmatprep.subr.bf16.mxu1 %v4592_v63  ;;  %v1033_v63 = vld [vmem:[#allocation14] sm:$0x3] }
 0x366   :  { %4647 = vmatpush1.bf16.msra.mxu0 %v4646_v54 }
 0x367   :  { %4649 = vmatprep.subr.bf16.mxu0 %v4648_v59 }
 0x368   :  { %4595 = vmatpush1.bf16.msra.mxu1 %v4594_v31 }
 0x369   :  { %v4462_v1 = vpop.f32.mrb[8].mxu1  ;;  %4597 = vmatprep.subr.bf16.mxu1 %v4596_v42 }
 0x36a   :  { %v946_v8 = vpop.f32.mrb[9].mxu1  ;;  %v6327_v21 = vadd.f32 %v4462_v1, %v6266_v58  ;;  %4651 = vmatpush1.bf16.msra.mxu0 %v4650_v17 }
 0x36b   :  { %v6324_v12 = vadd.f32 %v6266_v58, %v946_v8  ;;  %4653 = vmatprep.subr.bf16.mxu0 %v4652_v35  ;;  %v3933_v8 = vrot.slane %v6320_v32, 4 }
 0x36c   :  { %v994_v26 = vmax.f32 %v6327_v21, 0.0  ;;  %4599 = vmatpush1.bf16.msra.mxu1 %v4598_v14 }
 0x36d   :  { %v993_v22 = vmax.f32 %v6324_v12, 0.0  ;;  %v3934_v12 = vmax.f32 %v6320_v32, %v3933_v8  ;;  %v1784_v8 = vld [vmem:[#allocation19 + $0x50] sm:$0xff] }
 0x36e   :  { %4655 = vmatpush1.bf16.msra.mxu0 %v4654_v40 }
 0x36f   :  { %1158 = vmatmul.mubr.f32.gmra.mrb[32].mxu0 %v993_v22  ;;  %4657 = vmatprep.subr.bf16.mxu0 %v4656_v27  ;;  %v3935_v16 = vrot.slane %v3934_v12, 2 }
 0x370   :  { %1163 = vmatprep.mubr.f32.mxu0 %v5845_v41 }
 0x371   :  { %v3936_v20 = vmax.f32 %v3934_v12, %v3935_v16  ;;  %v1793_v12 = vld [vmem:[#allocation19 + $0x98] sm:$0xff] }
 0x372   :  { %4659 = vmatpush1.bf16.msra.mxu0 %v4658_v4 }
 0x373   :  { %1164 = vmatmul.mubr.f32.gmra.mrb[34].mxu0 %v994_v26  ;;  %4661 = vmatprep.subr.bf16.mxu0 %v4660_v46 }
 0x374   :  { %1169 = vmatprep.mubr.f32.mxu0 %v5845_v41 }
 0x376   :  { %4663 = vmatpush1.bf16.msra.mxu0 %v4662_v47 }
 0x37c   :  { %v4465_v3 = vpop.f32.mrb[10].mxu1 }
 0x37d   :  { %v956_v5 = vpop.f32.mrb[11].mxu1  ;;  %v962_v33 = vadd.f32 %v4465_v3, %v6266_v58 }
 0x37e   :  { %v957_v30 = vadd.f32 %v6266_v58, %v956_v5 }
 0x37f   :  { %v996_v48 = vmax.f32 %v962_v33, 0.0 }
 0x380   :  { %v995_v34 = vmax.f32 %v957_v30, 0.0 }
 0x382   :  { %1170 = vmatmul.mubr.f32.gmra.mrb[36].mxu0 %v995_v34 }
 0x383   :  { %1175 = vmatprep.mubr.f32.mxu0 %v5845_v41 }
 0x386   :  { %1176 = vmatmul.mubr.f32.gmra.mrb[38].mxu0 %v996_v48 }
 0x387   :  { %1181 = vmatprep.mubr.f32.mxu0 %v5845_v41 }
 0x38f   :  { %v4468_v49 = vpop.f32.mrb[12].mxu1 }
 0x390   :  { %v972_v50 = vadd.f32 %v4468_v49, %v6266_v58  ;;  %v966_v52 = vpop.f32.mrb[13].mxu1 }
 0x391   :  { %v967_v53 = vadd.f32 %v6266_v58, %v966_v52 }
 0x392   :  { %v998_v54 = vmax.f32 %v972_v50, 0.0 }
 0x393   :  { %v997_v55 = vmax.f32 %v967_v53, 0.0 }
 0x394   :  { %v4122_v56 = vmax.f32 %v994_v26, %v998_v54 }
 0x395   :  { %v4121_v57 = vmax.f32 %v993_v22, %v997_v55  ;;  %1182 = vmatmul.mubr.f32.gmra.mrb[40].mxu0 %v997_v55  ;;  %v3937_v22 = vrot.slane %v3936_v20, 1  ;;  %v1783_v55 = vld [vmem:[#allocation19 + $0x48] sm:$0xff] }
 0x396   :  { %1187 = vmatprep.mubr.f32.mxu0 %v5845_v41 }
 0x397   :  { %v4125_v59 = vmax.f32 %v4121_v57, %v4122_v56  ;;  %v3938_v38 = vmax.f32 %v3936_v20, %v3937_v22  ;;  %v1777_v56 = vld [vmem:[#allocation19 + $0x18] sm:$0xff]  ;;  %v1792_v20 = vld [vmem:[#allocation19 + $0x90] sm:$0xff]  ;;  %v1807_v22 = vld [vmem:[#allocation19 + $0x108] sm:$0xff] }
 0x399   :  { %1188 = vmatmul.mubr.f32.gmra.mrb[42].mxu0 %v998_v54  ;;  %v1775_v54 = vld [vmem:[#allocation19 + $0x8] sm:$0xff] }
 0x39a   :  { %1193 = vmatprep.mubr.f32.mxu0 %v5845_v41  ;;  %v4664_v57 = vpack.c.bf16 %v1783_v55, %v1775_v54 }
 0x39c   :  { %4665 = vmatprep.subr.bf16.mxu1 %v4664_v57 }
 0x3a2   :  { %v4471_v60 = vpop.f32.mrb[14].mxu1 }
 0x3a3   :  { %v982_v0 = vadd.f32 %v4471_v60, %v6266_v58  ;;  %v976_v1 = vpop.f32.mrb[15].mxu1  ;;  %v1774_v60 = vld [vmem:[#allocation19] sm:$0xff] }
 0x3a4   :  { %v977_v6 = vadd.f32 %v6266_v58, %v976_v1 }
 0x3a5   :  { %v1000_v7 = vmax.f32 %v982_v0, 0.0  ;;  %v1782_v0 = vld [vmem:[#allocation19 + $0x40] sm:$0xff] }
 0x3a6   :  { %v999_v9 = vmax.f32 %v977_v6, 0.0  ;;  %v4666_v6 = vpack.c.bf16 %v1782_v0, %v1774_v60  ;;  %v1832_v60 = vld [vmem:[#allocation19 + $0x1d0] sm:$0xff] }
 0x3a7   :  { %v4124_v10 = vmax.f32 %v996_v48, %v1000_v7 }
 0x3a8   :  { %v4123_v11 = vmax.f32 %v995_v34, %v999_v9  ;;  %1194 = vmatmul.mubr.f32.gmra.mrb[44].mxu0 %v999_v9  ;;  %v1791_v9 = vld [vmem:[#allocation19 + $0x88] sm:$0xff] }
 0x3a9   :  { %1199 = vmatprep.mubr.f32.mxu0 %v5845_v41  ;;  %v1035_v41 = vlaneseq }
 0x3aa   :  { %v4126_v13 = vmax.f32 %v4123_v11, %v4124_v10  ;;  %v1799_v11 = vld [vmem:[#allocation19 + $0xc8] sm:$0xff] }
 0x3ab   :  { %v6353_v32 = vshrl.u32 %v1035_v41, 7  ;;  %v1817_v41 = vld [vmem:[#allocation19 + $0x158] sm:$0xff] }
 0x3ac   :  { %v4127_v15 = vmax.f32 %v4125_v59, %v4126_v13  ;;  %1200 = vmatmul.mubr.f32.gmra.mrb[46].mxu0 %v1000_v7  ;;  %v1785_v59 = vld [vmem:[#allocation19 + $0x58] sm:$0xff]  ;;  %v1776_v7 = vld [vmem:[#allocation19 + $0x10] sm:$0xff] }
 0x3ad   :  { %7705 = vst [vmem:[#allocation31_spill] sm:$0xff] %v6353_v32  ;;  %v6356_v61 = vsub.s32 0, %v6353_v32  ;;  %v6359_v40 = vsub.s32 1, %v6353_v32  ;;  %v4792_v1 = vpack.c.bf16 %v1785_v59, %v1777_v56  ;;  %v4794_v10 = vpack.c.bf16 %v1784_v8, %v1776_v7  ;;  %v1801_v13 = vld [vmem:[#allocation19 + $0xd8] sm:$0xff]  ;;  %v1824_v59 = vld [vmem:[#allocation19 + $0x190] sm:$0xff] }
 0x3ae   :  { %v4128_v17 = vrot.slane %v4127_v15, 4  ;;  %v4796_v16 = vpack.c.bf16 %v1801_v13, %v1793_v12 }
 0x3af   :  { %7706 = vst [vmem:[#allocation32_spill] sm:$0xff] %v6356_v61  ;;  %7707 = vst [vmem:[#allocation33_spill] sm:$0xff] %v6359_v40  ;;  %v6362_v26 = vrot.slane %v1033_v63, %v6356_v61  ;;  %v6365_v27 = vrot.slane %v1033_v63, %v6359_v40  ;;  %4793 = vmatprep.subr.bf16.mxu0 %v4792_v1  ;;  %v1806_v63 = vld [vmem:[#allocation19 + $0x100] sm:$0xff] }
 0x3b0   :  { %v4129_v18 = vmax.f32 %v4127_v15, %v4128_v17  ;;  %v4668_v15 = vpack.c.bf16 %v1799_v11, %v1791_v9  ;;  %v1790_v17 = vld [vmem:[#allocation19 + $0x80] sm:$0xff]  ;;  %v1839_v9 = vld [vmem:[#allocation19 + $0x208] sm:$0xff]  ;;  %v1841_v11 = vld [vmem:[#allocation19 + $0x218] sm:$0xff] }
 0x3b2   :  { %v4130_v21 = vrot.slane %v4129_v18, 2 }
 0x3b4   :  { %v4131_v58 = vmax.f32 %v4129_v18, %v4130_v21  ;;  %v1798_v18 = vld [vmem:[#allocation19 + $0xc0] sm:$0xff] }
 0x3b5   :  { %v4670_v21 = vpack.c.bf16 %v1798_v18, %v1790_v17  ;;  %v1863_v17 = vld [vmem:[#allocation19 + $0x2c8] sm:$0xff] }
 0x3b6   :  { %v4132_v35 = vrot.slane %v4131_v58, 1 }
 0x3b8   :  { %v4133_v23 = vmax.f32 %v4131_v58, %v4132_v35  ;;  %v1800_v58 = vld [vmem:[#allocation19 + $0xd0] sm:$0xff]  ;;  %v1815_v35 = vld [vmem:[#allocation19 + $0x148] sm:$0xff] }
 0x3ba   :  { %v4163_v24 = vrot.slane %v4133_v23, 7  ;;  %v4798_v23 = vpack.c.bf16 %v1800_v58, %v1792_v20  ;;  %v4806_v20 = vpack.c.bf16 %v1832_v60, %v1824_v59  ;;  %v1840_v58 = vld [vmem:[#allocation19 + $0x210] sm:$0xff]  ;;  %v1886_v59 = vld [vmem:[#allocation19 + $0x380] sm:$0xff] }
 0x3bb   :  { %v1894_v60 = vld [vmem:[#allocation19 + $0x3c0] sm:$0xff] }
 0x3bc   :  { %v6351_v25 = vsel %vm4179_vm1, %v3938_v38, %v4163_v24  ;;  %v4672_v38 = vpack.c.bf16 %v1815_v35, %v1807_v22  ;;  %v1809_v24 = vld [vmem:[#allocation19 + $0x118] sm:$0xff]  ;;  %v1848_v22 = vld [vmem:[#allocation19 + $0x250] sm:$0xff] }
 0x3bd   :  { %v1857_v35 = vld [vmem:[#allocation19 + $0x298] sm:$0xff] }
 0x400   :  { %v1111_v3 = vpop.f32.mrb[16].mxu0 }
 0x401   :  { %v1112_v5 = vadd.f32 %v1111_v3, %v6362_v26  ;;  %v1113_v28 = vpop.f32.mrb[17].mxu0 }
 0x402   :  { %v1114_v29 = vadd.f32 %v1113_v28, %v6365_v27  ;;  %v1814_v28 = vld [vmem:[#allocation19 + $0x140] sm:$0xff] }
 0x403   :  { %v6371_v31 = vmax.f32 %v1112_v5, 0.0  ;;  %v4800_v5 = vpack.c.bf16 %v1817_v41, %v1809_v24  ;;  %v1865_v24 = vld [vmem:[#allocation19 + $0x2d8] sm:$0xff]  ;;  %v1854_v41 = vld [vmem:[#allocation19 + $0x280] sm:$0xff] }
 0x404   :  { %v6369_v51 = vmax.f32 %v1114_v29, 0.0  ;;  %v1117_v30 = vpop.f32.mrb[18].mxu0  ;;  %v1808_v29 = vld [vmem:[#allocation19 + $0x110] sm:$0xff] }
 0x405   :  { %v1118_v2 = vadd.f32 %v1117_v30, %v6362_v26  ;;  %v1119_v4 = vpop.f32.mrb[19].mxu0  ;;  %v1816_v30 = vld [vmem:[#allocation19 + $0x150] sm:$0xff] }
 0x406   :  { %v1120_v33 = vadd.f32 %v1119_v4, %v6365_v27  ;;  %1452 = vmatprep.mubr.f32.mxu1 %v6369_v51  ;;  %1613 = vmatprep.mubr.f32.mxu0 %v6369_v51  ;;  %v4802_v56 = vpack.c.bf16 %v1816_v30, %v1808_v29  ;;  %v1881_v29 = vld [vmem:[#allocation19 + $0x358] sm:$0xff]  ;;  %v1870_v30 = vld [vmem:[#allocation19 + $0x300] sm:$0xff] }
 0x407   :  { %1453 = vmatmul.mubr.f32.vlgmr.msra.gmra.mrb[16].mxu1 %v6371_v31  ;;  %1614 = vmatmul.mubr.f32.vlgmr.msra.gmra.mrb[48].mxu0 %v6371_v31  ;;  %v6381_v36 = vmax.f32 %v1118_v2, 0.0 }
 0x408   :  { %v6379_v34 = vmax.f32 %v1120_v33, 0.0  ;;  %4667 = vmatpush1.bf16.msra.mxu1 %v4666_v6  ;;  %4795 = vmatpush1.bf16.msra.mxu0 %v4794_v10  ;;  %v4674_v33 = vpack.c.bf16 %v1814_v28, %v1806_v63  ;;  %v1847_v10 = vld [vmem:[#allocation19 + $0x248] sm:$0xff]  ;;  %v4810_v63 = vpack.c.bf16 %v1848_v22, %v1840_v58  ;;  %v1904_v58 = vld [vmem:[#allocation19 + $0x410] sm:$0xff] }
 0x409   :  { %v1123_v37 = vpop.f32.mrb[20].mxu0  ;;  %4669 = vmatprep.subr.bf16.mxu1 %v4668_v15  ;;  %4797 = vmatprep.subr.bf16.mxu0 %v4796_v16  ;;  %v1855_v16 = vld [vmem:[#allocation19 + $0x288] sm:$0xff] }
 0x40a   :  { %v1124_v39 = vadd.f32 %v1123_v37, %v6362_v26  ;;  %v1125_v42 = vpop.f32.mrb[21].mxu0  ;;  %1458 = vmatprep.mubr.f32.mxu1 %v6379_v34  ;;  %1619 = vmatprep.mubr.f32.mxu0 %v6379_v34  ;;  %v1823_v37 = vld [vmem:[#allocation19 + $0x188] sm:$0xff] }
 0x40b   :  { %v1126_v43 = vadd.f32 %v1125_v42, %v6365_v27  ;;  %1459 = vmatmul.mubr.f32.gmra.mrb[18].mxu1 %v6381_v36  ;;  %1620 = vmatmul.mubr.f32.gmra.mrb[50].mxu0 %v6381_v36  ;;  %v1825_v42 = vld [vmem:[#allocation19 + $0x198] sm:$0xff] }
 0x40c   :  { %v6389_v44 = vmax.f32 %v1124_v39, 0.0  ;;  %4671 = vmatpush1.bf16.msra.mxu1 %v4670_v21  ;;  %v1831_v39 = vld [vmem:[#allocation19 + $0x1c8] sm:$0xff]  ;;  %4799 = vmatpush1.bf16.msra.mxu0 %v4798_v23  ;;  %v4680_v21 = vpack.c.bf16 %v1847_v10, %v1839_v9 }
 0x40d   :  { %v6391_v45 = vmax.f32 %v1126_v43, 0.0  ;;  %v1129_v46 = vpop.f32.mrb[22].mxu0  ;;  %4673 = vmatprep.subr.bf16.mxu1 %v4672_v38  ;;  %4801 = vmatprep.subr.bf16.mxu0 %v4800_v5  ;;  %v4676_v57 = vpack.c.bf16 %v1831_v39, %v1823_v37  ;;  %v4684_v38 = vpack.c.bf16 %v1863_v17, %v1855_v16  ;;  %v1911_v9 = vld [vmem:[#allocation19 + $0x448] sm:$0xff] }
 0x40e   :  { %v3900_v14 = vmax.f32 %v6371_v31, %v6389_v44  ;;  %v1130_v19 = vadd.f32 %v1129_v46, %v6362_v26  ;;  %v1131_v62 = vpop.f32.mrb[23].mxu0  ;;  %v1833_v46 = vld [vmem:[#allocation19 + $0x1d8] sm:$0xff] }
 0x40f   :  { %v3913_v47 = vmax.f32 %v6369_v51, %v6391_v45  ;;  %v1132_v48 = vadd.f32 %v1131_v62, %v6365_v27  ;;  %1464 = vmatprep.mubr.f32.mxu1 %v6391_v45  ;;  %1625 = vmatprep.mubr.f32.mxu0 %v6391_v45  ;;  %v1830_v62 = vld [vmem:[#allocation19 + $0x1c0] sm:$0xff]  ;;  %v4804_v7 = vpack.c.bf16 %v1833_v46, %v1825_v42  ;;  %v1849_v31 = vld [vmem:[#allocation19 + $0x258] sm:$0xff]  ;;  %v1880_v46 = vld [vmem:[#allocation19 + $0x350] sm:$0xff] }
 0x410   :  { %v6401_v49 = vmax.f32 %v1130_v19, 0.0  ;;  %1465 = vmatmul.mubr.f32.gmra.mrb[20].mxu1 %v6389_v44  ;;  %1626 = vmatmul.mubr.f32.gmra.mrb[52].mxu0 %v6389_v44  ;;  %v1822_v19 = vld [vmem:[#allocation19 + $0x180] sm:$0xff]  ;;  %v4808_v45 = vpack.c.bf16 %v1849_v31, %v1841_v11 }
 0x411   :  { %v6405_v50 = vmax.f32 %v1132_v48, 0.0  ;;  %4675 = vmatpush1.bf16.msra.mxu1 %v4674_v33  ;;  %v4678_v8 = vpack.c.bf16 %v1830_v62, %v1822_v19  ;;  %v1838_v44 = vld [vmem:[#allocation19 + $0x200] sm:$0xff]  ;;  %4803 = vmatpush1.bf16.msra.mxu0 %v4802_v56  ;;  %v1895_v33 = vld [vmem:[#allocation19 + $0x3c8] sm:$0xff] }
 0x412   :  { %v3901_v52 = vmax.f32 %v6381_v36, %v6401_v49  ;;  %4677 = vmatprep.subr.bf16.mxu1 %v4676_v57  ;;  %4805 = vmatprep.subr.bf16.mxu0 %v4804_v7  ;;  %v1862_v36 = vld [vmem:[#allocation19 + $0x2c0] sm:$0xff]  ;;  %v1896_v7 = vld [vmem:[#allocation19 + $0x3d0] sm:$0xff] }
 0x413   :  { %v3914_v53 = vmax.f32 %v6379_v34, %v6405_v50  ;;  %1470 = vmatprep.mubr.f32.mxu1 %v6405_v50  ;;  %1631 = vmatprep.mubr.f32.mxu0 %v6405_v50  ;;  %v4686_v5 = vpack.c.bf16 %v1862_v36, %v1854_v41  ;;  %v1856_v34 = vld [vmem:[#allocation19 + $0x290] sm:$0xff]  ;;  %v1927_v41 = vld [vmem:[#allocation19 + $0x4c8] sm:$0xff] }
 0x414   :  { %1471 = vmatmul.mubr.f32.gmra.mrb[22].mxu1 %v6401_v49  ;;  %1632 = vmatmul.mubr.f32.gmra.mrb[54].mxu0 %v6401_v49  ;;  %v1871_v49 = vld [vmem:[#allocation19 + $0x308] sm:$0xff]  ;;  %v1864_v50 = vld [vmem:[#allocation19 + $0x2d0] sm:$0xff] }
 0x415   :  { %4679 = vmatpush1.bf16.msra.mxu1 %v4678_v8  ;;  %4807 = vmatpush1.bf16.msra.mxu0 %v4806_v20  ;;  %v4814_v37 = vpack.c.bf16 %v1864_v50, %v1856_v34  ;;  %v1903_v8 = vld [vmem:[#allocation19 + $0x408] sm:$0xff]  ;;  %v1918_v50 = vld [vmem:[#allocation19 + $0x480] sm:$0xff] }
 0x416   :  { %4681 = vmatprep.subr.bf16.mxu1 %v4680_v21  ;;  %4809 = vmatprep.subr.bf16.mxu0 %v4808_v45  ;;  %v4696_v21 = vpack.c.bf16 %v1911_v9, %v1903_v8  ;;  %v1902_v45 = vld [vmem:[#allocation19 + $0x400] sm:$0xff] }
 0x417   :  { %v1950_v8 = vld [vmem:[#allocation19 + $0x580] sm:$0xff] }
 0x418   :  { %v1958_v9 = vld [vmem:[#allocation19 + $0x5c0] sm:$0xff] }
 0x419   :  { %4811 = vmatpush1.bf16.msra.mxu0 %v4810_v63 }
 0x41c   :  { %v1135_v3 = vpop.f32.mrb[24].mxu0 }
 0x41d   :  { %v1136_v2 = vadd.f32 %v1135_v3, %v6362_v26  ;;  %v1137_v4 = vpop.f32.mrb[25].mxu0  ;;  %v4812_v3 = vpack.c.bf16 %v1865_v24, %v1857_v35  ;;  %v1919_v24 = vld [vmem:[#allocation19 + $0x488] sm:$0xff] }
 0x41e   :  { %v1138_v43 = vadd.f32 %v1137_v4, %v6365_v27  ;;  %v1887_v4 = vld [vmem:[#allocation19 + $0x388] sm:$0xff]  ;;  %v4700_v34 = vpack.c.bf16 %v1927_v41, %v1919_v24  ;;  %v1968_v24 = vld [vmem:[#allocation19 + $0x610] sm:$0xff] }
 0x41f   :  { %v1214_v48 = vmax.f32 %v1136_v2, 0.0  ;;  %v1878_v2 = vld [vmem:[#allocation19 + $0x340] sm:$0xff]  ;;  %4813 = vmatprep.subr.bf16.mxu0 %v4812_v3  ;;  %v4692_v19 = vpack.c.bf16 %v1895_v33, %v1887_v4  ;;  %v1935_v4 = vld [vmem:[#allocation19 + $0x508] sm:$0xff]  ;;  %v1976_v41 = vld [vmem:[#allocation19 + $0x650] sm:$0xff] }
 0x420   :  { %v1215_v54 = vmax.f32 %v1138_v43, 0.0  ;;  %v1141_v55 = vpop.f32.mrb[26].mxu0  ;;  %v4690_v42 = vpack.c.bf16 %v1878_v2, %v1870_v30  ;;  %v1872_v43 = vld [vmem:[#allocation19 + $0x310] sm:$0xff]  ;;  %4815 = vmatpush1.bf16.msra.mxu0 %v4814_v37  ;;  %v1943_v33 = vld [vmem:[#allocation19 + $0x548] sm:$0xff] }
 0x421   :  { %v6420_v0 = vmax.f32 %v3900_v14, %v1214_v48  ;;  %v1142_v1 = vadd.f32 %v1141_v55, %v6362_v26  ;;  %v1143_v6 = vpop.f32.mrb[27].mxu0  ;;  %v1846_v14 = vld [vmem:[#allocation19 + $0x240] sm:$0xff]  ;;  %v4818_v57 = vpack.c.bf16 %v1880_v46, %v1872_v43  ;;  %v1928_v2 = vld [vmem:[#allocation19 + $0x4d0] sm:$0xff]  ;;  %v4704_v46 = vpack.c.bf16 %v1943_v33, %v1935_v4 }
 0x422   :  { %v6426_v12 = vmax.f32 %v3913_v47, %v1215_v54  ;;  %v1144_v13 = vadd.f32 %v1143_v6, %v6365_v27  ;;  %1476 = vmatprep.mubr.f32.mxu1 %v1215_v54  ;;  %1637 = vmatprep.mubr.f32.mxu0 %v1215_v54  ;;  %v4682_v47 = vpack.c.bf16 %v1846_v14, %v1838_v44  ;;  %v1897_v54 = vld [vmem:[#allocation19 + $0x3d8] sm:$0xff] }
 0x423   :  { %v1216_v15 = vmax.f32 %v1142_v1, 0.0  ;;  %1477 = vmatmul.mubr.f32.gmra.mrb[24].mxu1 %v1214_v48  ;;  %1638 = vmatmul.mubr.f32.gmra.mrb[56].mxu0 %v1214_v48  ;;  %v1889_v48 = vld [vmem:[#allocation19 + $0x398] sm:$0xff]  ;;  %v1888_v1 = vld [vmem:[#allocation19 + $0x390] sm:$0xff]  ;;  %v4694_v44 = vpack.c.bf16 %v1894_v60, %v1886_v59  ;;  %v4842_v4 = vpack.c.bf16 %v1976_v41, %v1968_v24 }
 0x424   :  { %v1217_v18 = vmax.f32 %v1144_v13, 0.0  ;;  %4683 = vmatpush1.bf16.msra.mxu1 %v4682_v47  ;;  %v4820_v31 = vpack.c.bf16 %v1897_v54, %v1889_v48  ;;  %v1905_v14 = vld [vmem:[#allocation19 + $0x418] sm:$0xff]  ;;  %v4822_v20 = vpack.c.bf16 %v1896_v7, %v1888_v1  ;;  %v1910_v47 = vld [vmem:[#allocation19 + $0x440] sm:$0xff]  ;;  %v1936_v48 = vld [vmem:[#allocation19 + $0x510] sm:$0xff] }
 0x425   :  { %v6432_v51 = vmax.f32 %v3901_v52, %v1216_v15  ;;  %v1879_v52 = vld [vmem:[#allocation19 + $0x348] sm:$0xff]  ;;  %4685 = vmatprep.subr.bf16.mxu1 %v4684_v38  ;;  %v1912_v38 = vld [vmem:[#allocation19 + $0x450] sm:$0xff]  ;;  %v4698_v3 = vpack.c.bf16 %v1910_v47, %v1902_v45  ;;  %v1953_v59 = vld [vmem:[#allocation19 + $0x598] sm:$0xff] }
 0x426   :  { %v6437_v23 = vmax.f32 %v3914_v53, %v1217_v18  ;;  %1482 = vmatprep.mubr.f32.mxu1 %v1217_v18  ;;  %1643 = vmatprep.mubr.f32.mxu0 %v1217_v18  ;;  %v1873_v53 = vld [vmem:[#allocation19 + $0x318] sm:$0xff]  ;;  %v4688_v28 = vpack.c.bf16 %v1879_v52, %v1871_v49  ;;  %v1966_v45 = vld [vmem:[#allocation19 + $0x600] sm:$0xff] }
 0x427   :  { %1483 = vmatmul.mubr.f32.gmra.mrb[26].mxu1 %v1216_v15  ;;  %1644 = vmatmul.mubr.f32.gmra.mrb[58].mxu0 %v1216_v15  ;;  %v4816_v39 = vpack.c.bf16 %v1881_v29, %v1873_v53  ;;  %v1913_v15 = vld [vmem:[#allocation19 + $0x458] sm:$0xff]  ;;  %v1926_v53 = vld [vmem:[#allocation19 + $0x4c0] sm:$0xff] }
 0x428   :  { %4687 = vmatpush1.bf16.msra.mxu1 %v4686_v5  ;;  %v1929_v49 = vld [vmem:[#allocation19 + $0x4d8] sm:$0xff]  ;;  %v4824_v63 = vpack.c.bf16 %v1913_v15, %v1905_v14  ;;  %v4702_v43 = vpack.c.bf16 %v1926_v53, %v1918_v50  ;;  %v4710_v15 = vpack.c.bf16 %v1958_v9, %v1950_v8  ;;  %v1974_v47 = vld [vmem:[#allocation19 + $0x640] sm:$0xff] }
 0x429   :  { %4689 = vmatprep.subr.bf16.mxu1 %v4688_v28  ;;  %4817 = vmatprep.subr.bf16.mxu0 %v4816_v39  ;;  %v1920_v28 = vld [vmem:[#allocation19 + $0x490] sm:$0xff]  ;;  %v1945_v39 = vld [vmem:[#allocation19 + $0x558] sm:$0xff]  ;;  %v1982_v53 = vld [vmem:[#allocation19 + $0x680] sm:$0xff] }
 0x42a   :  { %4819 = vmatpush1.bf16.msra.mxu0 %v4818_v57  ;;  %v1959_v57 = vld [vmem:[#allocation19 + $0x5c8] sm:$0xff]  ;;  %v1961_v60 = vld [vmem:[#allocation19 + $0x5d8] sm:$0xff] }
 0x42b   :  { %4821 = vmatprep.subr.bf16.mxu0 %v4820_v31  ;;  %v1960_v31 = vld [vmem:[#allocation19 + $0x5d0] sm:$0xff]  ;;  %v1993_v50 = vld [vmem:[#allocation19 + $0x6d8] sm:$0xff] }
 0x42c   :  { %4691 = vmatpush1.bf16.msra.mxu1 %v4690_v42 }
 0x42d   :  { %4693 = vmatprep.subr.bf16.mxu1 %v4692_v19  ;;  %v1934_v19 = vld [vmem:[#allocation19 + $0x500] sm:$0xff] }
 0x42e   :  { %4823 = vmatpush1.bf16.msra.mxu0 %v4822_v20 }
 0x42f   :  { %v1147_v62 = vpop.f32.mrb[28].mxu0  ;;  %4825 = vmatprep.subr.bf16.mxu0 %v4824_v63  ;;  %v4714_v63 = vpack.c.bf16 %v1974_v47, %v1966_v45  ;;  %v2025_v47 = vld [vmem:[#allocation19 + $0x7d8] sm:$0xff] }
 0x430   :  { %v1148_v55 = vadd.f32 %v1147_v62, %v6362_v26  ;;  %v1149_v56 = vpop.f32.mrb[29].mxu0  ;;  %4695 = vmatpush1.bf16.msra.mxu1 %v4694_v44  ;;  %v1942_v62 = vld [vmem:[#allocation19 + $0x540] sm:$0xff] }
 0x431   :  { %v1150_v6 = vadd.f32 %v1149_v56, %v6365_v27  ;;  %4697 = vmatprep.subr.bf16.mxu1 %v4696_v21  ;;  %v1951_v56 = vld [vmem:[#allocation19 + $0x588] sm:$0xff]  ;;  %v4706_v1 = vpack.c.bf16 %v1942_v62, %v1934_v19  ;;  %v1977_v21 = vld [vmem:[#allocation19 + $0x658] sm:$0xff] }
 0x432   :  { %v1218_v10 = vmax.f32 %v1148_v55, 0.0  ;;  %v1944_v55 = vld [vmem:[#allocation19 + $0x550] sm:$0xff]  ;;  %v4708_v7 = vpack.c.bf16 %v1959_v57, %v1951_v56  ;;  %v2001_v62 = vld [vmem:[#allocation19 + $0x718] sm:$0xff] }
 0x433   :  { %v1219_v11 = vmax.f32 %v1150_v6, 0.0  ;;  %v1153_v13 = vpop.f32.mrb[30].mxu0  ;;  %v4834_v6 = vpack.c.bf16 %v1944_v55, %v1936_v48  ;;  %v2009_v48 = vld [vmem:[#allocation19 + $0x758] sm:$0xff] }
 0x434   :  { %v3904_v16 = vmax.f32 %v6420_v0, %v1218_v10  ;;  %v1154_v17 = vadd.f32 %v1153_v13, %v6362_v26  ;;  %v1155_v18 = vpop.f32.mrb[31].mxu0  ;;  %v1921_v0 = vld [vmem:[#allocation19 + $0x498] sm:$0xff]  ;;  %4699 = vmatpush1.bf16.msra.mxu1 %v4698_v3  ;;  %v1952_v13 = vld [vmem:[#allocation19 + $0x590] sm:$0xff]  ;;  %v1983_v3 = vld [vmem:[#allocation19 + $0x688] sm:$0xff]  ;;  %v4848_v55 = vpack.c.bf16 %v2009_v48, %v2001_v62 }
 0x435   :  { %v3917_v22 = vmax.f32 %v6426_v12, %v1219_v11  ;;  %v1156_v35 = vadd.f32 %v1155_v18, %v6365_v27  ;;  %1488 = vmatprep.mubr.f32.mxu1 %v1219_v11  ;;  %1649 = vmatprep.mubr.f32.mxu0 %v1219_v11  ;;  %v4826_v12 = vpack.c.bf16 %v1912_v38, %v1904_v58  ;;  %v1969_v18 = vld [vmem:[#allocation19 + $0x618] sm:$0xff] }
 0x436   :  { %v1220_v36 = vmax.f32 %v1154_v17, 0.0  ;;  %1489 = vmatmul.mubr.f32.gmra.mrb[28].mxu1 %v1218_v10  ;;  %1650 = vmatmul.mubr.f32.gmra.mrb[60].mxu0 %v1218_v10  ;;  %v4828_v30 = vpack.c.bf16 %v1929_v49, %v1921_v0  ;;  %v4836_v10 = vpack.c.bf16 %v1961_v60, %v1953_v59  ;;  %v1975_v17 = vld [vmem:[#allocation19 + $0x648] sm:$0xff] }
 0x437   :  { %v1221_v52 = vmax.f32 %v1156_v35, 0.0  ;;  %4827 = vmatpush1.bf16.msra.mxu0 %v4826_v12  ;;  %4701 = vmatprep.subr.bf16.mxu1 %v4700_v34  ;;  %v4838_v35 = vpack.c.bf16 %v1960_v31, %v1952_v13  ;;  %v1985_v12 = vld [vmem:[#allocation19 + $0x698] sm:$0xff] }
 0x438   :  { %v3905_v5 = vmax.f32 %v6432_v51, %v1220_v36  ;;  %v1937_v51 = vld [vmem:[#allocation19 + $0x518] sm:$0xff]  ;;  %4829 = vmatprep.subr.bf16.mxu0 %v4828_v30  ;;  %4703 = vmatpush1.bf16.msra.mxu1 %v4702_v43  ;;  %v2007_v30 = vld [vmem:[#allocation19 + $0x748] sm:$0xff] }
 0x439   :  { %v3918_v29 = vmax.f32 %v6437_v23, %v1221_v52  ;;  %1494 = vmatprep.mubr.f32.mxu1 %v1221_v52  ;;  %1655 = vmatprep.mubr.f32.mxu0 %v1221_v52  ;;  %v4830_v23 = vpack.c.bf16 %v1928_v2, %v1920_v28  ;;  %v4832_v54 = vpack.c.bf16 %v1945_v39, %v1937_v51  ;;  %v1990_v28 = vld [vmem:[#allocation19 + $0x6c0] sm:$0xff] }
 0x43a   :  { %v6447_v37 = vmax.f32 %v3904_v16, %v3905_v5  ;;  %1495 = vmatmul.mubr.f32.gmra.mrb[30].mxu1 %v1220_v36  ;;  %1656 = vmatmul.mubr.f32.gmra.mrb[62].mxu0 %v1220_v36  ;;  %v1967_v16 = vld [vmem:[#allocation19 + $0x608] sm:$0xff]  ;;  %v4840_v52 = vpack.c.bf16 %v1977_v21, %v1969_v18  ;;  %v4844_v39 = vpack.c.bf16 %v1993_v50, %v1985_v12  ;;  %v2017_v18 = vld [vmem:[#allocation19 + $0x798] sm:$0xff] }
 0x43b   :  { %v6449_v42 = vmax.f32 %v3917_v22, %v3918_v29  ;;  %4831 = vmatpush1.bf16.msra.mxu0 %v4830_v23  ;;  %4705 = vmatprep.subr.bf16.mxu1 %v4704_v46  ;;  %v4712_v38 = vpack.c.bf16 %v1975_v17, %v1967_v16  ;;  %v1991_v5 = vld [vmem:[#allocation19 + $0x6c8] sm:$0xff]  ;;  %v4718_v43 = vpack.c.bf16 %v1990_v28, %v1982_v53  ;;  %v1984_v23 = vld [vmem:[#allocation19 + $0x690] sm:$0xff] }
 0x43c   :  { %4833 = vmatprep.subr.bf16.mxu0 %v4832_v54  ;;  %4707 = vmatpush1.bf16.msra.mxu1 %v4706_v1  ;;  %v1999_v29 = vld [vmem:[#allocation19 + $0x708] sm:$0xff]  ;;  %v4716_v33 = vpack.c.bf16 %v1991_v5, %v1983_v3  ;;  %v1992_v46 = vld [vmem:[#allocation19 + $0x6d0] sm:$0xff]  ;;  %v1998_v1 = vld [vmem:[#allocation19 + $0x700] sm:$0xff]  ;;  %v4852_v24 = vpack.c.bf16 %v2025_v47, %v2017_v18 }
 0x43d   :  { %4709 = vmatprep.subr.bf16.mxu1 %v4708_v7  ;;  %v4720_v19 = vpack.c.bf16 %v2007_v30, %v1999_v29  ;;  %v4846_v54 = vpack.c.bf16 %v1992_v46, %v1984_v23  ;;  %v2000_v7 = vld [vmem:[#allocation19 + $0x710] sm:$0xff]  ;;  %v2015_v16 = vld [vmem:[#allocation19 + $0x788] sm:$0xff] }
 0x43e   :  { %v2023_v17 = vld [vmem:[#allocation19 + $0x7c8] sm:$0xff] }
 0x43f   :  { %4835 = vmatpush1.bf16.msra.mxu0 %v4834_v6  ;;  %v2006_v6 = vld [vmem:[#allocation19 + $0x740] sm:$0xff]  ;;  %v4724_v45 = vpack.c.bf16 %v2023_v17, %v2015_v16 }
 0x440   :  { %4837 = vmatprep.subr.bf16.mxu0 %v4836_v10  ;;  %4711 = vmatpush1.bf16.msra.mxu1 %v4710_v15  ;;  %v4722_v9 = vpack.c.bf16 %v2006_v6, %v1998_v1  ;;  %v2008_v10 = vld [vmem:[#allocation19 + $0x750] sm:$0xff]  ;;  %v3920_v6 = vrot.slane %v6449_v42, 4 }
 0x441   :  { %4713 = vmatprep.subr.bf16.mxu1 %v4712_v38  ;;  %v4850_v31 = vpack.c.bf16 %v2008_v10, %v2000_v7 }
 0x442   :  { %v1159_v11 = vpop.f32.mrb[32].mxu0 }
 0x443   :  { %v1160_v44 = vadd.f32 %v1159_v11, %v6362_v26  ;;  %v1161_v14 = vpop.f32.mrb[33].mxu0  ;;  %4839 = vmatpush1.bf16.msra.mxu0 %v4838_v35  ;;  %v2022_v35 = vld [vmem:[#allocation19 + $0x7c0] sm:$0xff] }
 0x444   :  { %v1162_v20 = vadd.f32 %v1161_v14, %v6365_v27  ;;  %4841 = vmatprep.subr.bf16.mxu0 %v4840_v52  ;;  %4715 = vmatpush1.bf16.msra.mxu1 %v4714_v63 }
 0x445   :  { %v6455_v36 = vmax.f32 %v1160_v44, 0.0  ;;  %4717 = vmatprep.subr.bf16.mxu1 %v4716_v33 }
 0x446   :  { %v6453_v58 = vmax.f32 %v1162_v20, 0.0  ;;  %v1165_v22 = vpop.f32.mrb[34].mxu0 }
 0x447   :  { %v1166_v0 = vadd.f32 %v1165_v22, %v6362_v26  ;;  %v1167_v49 = vpop.f32.mrb[35].mxu0  ;;  %4843 = vmatpush1.bf16.msra.mxu0 %v4842_v4  ;;  %v2014_v22 = vld [vmem:[#allocation19 + $0x780] sm:$0xff] }
 0x448   :  { %v1168_v34 = vadd.f32 %v1167_v49, %v6365_v27  ;;  %1500 = vmatprep.mubr.f32.mxu1 %v6453_v58  ;;  %1661 = vmatprep.mubr.f32.mxu0 %v6453_v58  ;;  %v4726_v41 = vpack.c.bf16 %v2022_v35, %v2014_v22  ;;  %v5846_v35 = vmov 1983009808  }
 0x449   :  { %1501 = vmatmul.mubr.f32.gmra.mrb[32].mxu1 %v6455_v36  ;;  %1662 = vmatmul.mubr.f32.gmra.mrb[64].mxu0 %v6455_v36  ;;  %v6465_v51 = vmax.f32 %v1166_v0, 0.0  ;;  %v2024_v0 = vld [vmem:[#allocation19 + $0x7d0] sm:$0xff] }
 0x44a   :  { %v6463_v2 = vmax.f32 %v1168_v34, 0.0  ;;  %4845 = vmatprep.subr.bf16.mxu0 %v4844_v39  ;;  %4719 = vmatpush1.bf16.msra.mxu1 %v4718_v43 }
 0x44b   :  { %4721 = vmatprep.subr.bf16.mxu1 %v4720_v19  ;;  %4847 = vmatpush1.bf16.msra.mxu0 %v4846_v54 }
 0x44c   :  { %1506 = vmatprep.mubr.f32.mxu1 %v6463_v2  ;;  %1667 = vmatprep.mubr.f32.mxu0 %v6463_v2 }
 0x44d   :  { %1507 = vmatmul.mubr.f32.gmra.mrb[34].mxu1 %v6465_v51  ;;  %1668 = vmatmul.mubr.f32.gmra.mrb[66].mxu0 %v6465_v51 }
 0x44e   :  { %4849 = vmatprep.subr.bf16.mxu0 %v4848_v55  ;;  %4723 = vmatpush1.bf16.msra.mxu1 %v4722_v9 }
 0x44f   :  { %4851 = vmatpush1.bf16.msra.mxu0 %v4850_v31  ;;  %4725 = vmatprep.subr.bf16.mxu1 %v4724_v45  ;;  %v3921_v31 = vmax.f32 %v6449_v42, %v3920_v6  ;;  %v4213_v42 = vunpack.c.l.s4 %v5846_v35  ;;  %v2046_v35 = vld [vmem:[#allocation19 + $0x880] sm:$0xff] }
 0x450   :  { %4853 = vmatprep.subr.bf16.mxu0 %v4852_v24 }
 0x451   :  { %v3922_v16 = vrot.slane %v3921_v31, 2 }
 0x452   :  { %4727 = vmatpush1.bf16.msra.mxu1 %v4726_v41 }
 0x453   :  { %v3923_v47 = vmax.f32 %v3921_v31, %v3922_v16 }
 0x455   :  { %v1171_v56 = vpop.f32.mrb[36].mxu0 }
 0x456   :  { %v1172_v57 = vadd.f32 %v1171_v56, %v6362_v26  ;;  %v1173_v59 = vpop.f32.mrb[37].mxu0 }
 0x457   :  { %v1174_v60 = vadd.f32 %v1173_v59, %v6365_v27 }
 0x458   :  { %v1226_v8 = vmax.f32 %v1172_v57, 0.0  ;;  %v3907_v57 = vrot.slane %v6447_v37, 4 }
 0x459   :  { %v1227_v11 = vmax.f32 %v1174_v60, 0.0  ;;  %v1177_v13 = vpop.f32.mrb[38].mxu0 }
 0x45a   :  { %v4095_v44 = vmax.f32 %v6455_v36, %v1226_v8  ;;  %v1178_v14 = vadd.f32 %v1177_v13, %v6362_v26  ;;  %v1179_v15 = vpop.f32.mrb[39].mxu0  ;;  %v2016_v36 = vld [vmem:[#allocation19 + $0x790] sm:$0xff] }
 0x45b   :  { %v4108_v20 = vmax.f32 %v6453_v58, %v1227_v11  ;;  %v1180_v21 = vadd.f32 %v1179_v15, %v6365_v27  ;;  %1512 = vmatprep.mubr.f32.mxu1 %v1227_v11  ;;  %1673 = vmatprep.mubr.f32.mxu0 %v1227_v11  ;;  %v4854_v52 = vpack.c.bf16 %v2024_v0, %v2016_v36  ;;  %v3924_v36 = vrot.slane %v3923_v47, 1 }
 0x45c   :  { %v1228_v38 = vmax.f32 %v1178_v14, 0.0  ;;  %1513 = vmatmul.mubr.f32.gmra.mrb[36].mxu1 %v1226_v8  ;;  %1674 = vmatmul.mubr.f32.gmra.mrb[68].mxu0 %v1226_v8  ;;  %v3908_v11 = vmax.f32 %v6447_v37, %v3907_v57 }
 0x45d   :  { %v1229_v49 = vmax.f32 %v1180_v21, 0.0  ;;  %4855 = vmatpush1.bf16.msra.mxu0 %v4854_v52  ;;  %v4214_v52 = vunpack.c.0.s8 %v4213_v42  ;;  %v2054_v42 = vld [vmem:[#allocation19 + $0x8c0] sm:$0xff] }
 0x45e   :  { %v4096_v58 = vmax.f32 %v6465_v51, %v1228_v38  ;;  %v3909_v15 = vrot.slane %v3908_v11, 2 }
 0x45f   :  { %v4109_v63 = vmax.f32 %v6463_v2, %v1229_v49  ;;  %1518 = vmatprep.mubr.f32.mxu1 %v1229_v49  ;;  %1679 = vmatprep.mubr.f32.mxu0 %v1229_v49 }
 0x460   :  { %1519 = vmatmul.mubr.f32.gmra.mrb[38].mxu1 %v1228_v38  ;;  %1680 = vmatmul.mubr.f32.gmra.mrb[70].mxu0 %v1228_v38  ;;  %v3910_v21 = vmax.f32 %v3908_v11, %v3909_v15  ;;  %v2047_v11 = vld [vmem:[#allocation19 + $0x888] sm:$0xff] }
 0x462   :  { %v3911_v24 = vrot.slane %v3910_v21, 1 }
 0x468   :  { %v1183_v3 = vpop.f32.mrb[40].mxu0 }
 0x469   :  { %v1184_v5 = vadd.f32 %v1183_v3, %v6362_v26  ;;  %v1185_v12 = vpop.f32.mrb[41].mxu0 }
 0x46a   :  { %v1186_v34 = vadd.f32 %v1185_v12, %v6365_v27 }
 0x46b   :  { %v1230_v50 = vmax.f32 %v1184_v5, 0.0  ;;  %v3925_v5 = vmax.f32 %v3923_v47, %v3924_v36 }
 0x46c   :  { %v1231_v53 = vmax.f32 %v1186_v34, 0.0  ;;  %v1189_v28 = vpop.f32.mrb[42].mxu0 }
 0x46d   :  { %v4097_v29 = vmax.f32 %v4095_v44, %v1230_v50  ;;  %v1190_v30 = vadd.f32 %v1189_v28, %v6362_v26  ;;  %v1191_v4 = vpop.f32.mrb[43].mxu0 }
 0x46e   :  { %v4110_v33 = vmax.f32 %v4108_v20, %v1231_v53  ;;  %v1192_v2 = vadd.f32 %v1191_v4, %v6365_v27  ;;  %1524 = vmatprep.mubr.f32.mxu1 %v1231_v53  ;;  %1685 = vmatprep.mubr.f32.mxu0 %v1231_v53 }
 0x46f   :  { %v1232_v51 = vmax.f32 %v1190_v30, 0.0  ;;  %1525 = vmatmul.mubr.f32.gmra.mrb[40].mxu1 %v1230_v50  ;;  %1686 = vmatmul.mubr.f32.gmra.mrb[72].mxu0 %v1230_v50  ;;  %v6493_v50 = vsub.s32 %v4214_v52, %v6353_v32  ;;  %v2071_v52 = vld [vmem:[#allocation19 + $0x948] sm:$0xff] }
 0x470   :  { %v1233_v39 = vmax.f32 %v1192_v2, 0.0  ;;  %v2039_v2 = vld [vmem:[#allocation19 + $0x848] sm:$0xff] }
 0x471   :  { %v4098_v43 = vmax.f32 %v4096_v58, %v1232_v51  ;;  %7708 = vst [vmem:[#allocation34_spill] sm:$0xff] %v6493_v50  ;;  %v4275_v30 = vrot.slane %v6351_v25, %v6493_v50 }
 0x472   :  { %v4111_v23 = vmax.f32 %v4109_v63, %v1233_v39  ;;  %1530 = vmatprep.mubr.f32.mxu1 %v1233_v39  ;;  %1691 = vmatprep.mubr.f32.mxu0 %v1233_v39  ;;  %v3912_v63 = vmax.f32 %v3910_v21, %v3911_v24  ;;  %v2048_v24 = vld [vmem:[#allocation19 + $0x890] sm:$0xff] }
 0x473   :  { %1531 = vmatmul.mubr.f32.gmra.mrb[42].mxu1 %v1232_v51  ;;  %1692 = vmatmul.mubr.f32.gmra.mrb[74].mxu0 %v1232_v51  ;;  %v2033_v51 = vld [vmem:[#allocation19 + $0x818] sm:$0xff] }
 0x47b   :  { %v1195_v46 = vpop.f32.mrb[44].mxu0 }
 0x47c   :  { %v1196_v19 = vadd.f32 %v1195_v46, %v6362_v26  ;;  %v1197_v62 = vpop.f32.mrb[45].mxu0  ;;  %v7598_v46 = vsub.s32 2, %v6353_v32 }
 0x47d   :  { %v1198_v48 = vadd.f32 %v1197_v62, %v6365_v27  ;;  %v7597_v62 = vsub.s32 3, %v6353_v32 }
 0x47e   :  { %v1234_v54 = vmax.f32 %v1196_v19, 0.0  ;;  %v1366_v19 = vld [vmem:[#allocation17] sm:$0xf] }
 0x47f   :  { %v1235_v55 = vmax.f32 %v1198_v48, 0.0  ;;  %v1201_v56 = vpop.f32.mrb[46].mxu0  ;;  %v6502_v48 = vrot.slane %v1366_v19, %v6356_v61  ;;  %v6506_v25 = vrot.slane %v1366_v19, %v7598_v46  ;;  %v2271_v46 = vld [vmem:[#allocation19 + $0xf88] sm:$0xff] }
 0x480   :  { %v4099_v59 = vmax.f32 %v4097_v29, %v1234_v54  ;;  %v1202_v60 = vadd.f32 %v1201_v56, %v6362_v26  ;;  %v1203_v1 = vpop.f32.mrb[47].mxu0 }
 0x481   :  { %v4112_v7 = vmax.f32 %v4110_v33, %v1235_v55  ;;  %v1204_v8 = vadd.f32 %v1203_v1, %v6365_v27  ;;  %1536 = vmatprep.mubr.f32.mxu1 %v1235_v55  ;;  %1697 = vmatprep.mubr.f32.mxu0 %v1235_v55  ;;  %v2031_v33 = vld [vmem:[#allocation19 + $0x808] sm:$0xff]  ;;  %v6513_v55 = vrot.slane %v1366_v19, %v7597_v62  ;;  %v2032_v1 = vld [vmem:[#allocation19 + $0x810] sm:$0xff] }
 0x482   :  { %v1236_v9 = vmax.f32 %v1202_v60, 0.0  ;;  %1537 = vmatmul.mubr.f32.gmra.mrb[44].mxu1 %v1234_v54  ;;  %1698 = vmatmul.mubr.f32.gmra.mrb[76].mxu0 %v1234_v54  ;;  %v4728_v39 = vpack.c.bf16 %v2039_v2, %v2031_v33  ;;  %v6509_v54 = vrot.slane %v1366_v19, %v6359_v40  ;;  %v2038_v60 = vld [vmem:[#allocation19 + $0x840] sm:$0xff]  ;;  %v2072_v19 = vld [vmem:[#allocation19 + $0x950] sm:$0xff]  ;;  %v2263_v62 = vld [vmem:[#allocation19 + $0xf48] sm:$0xff] }
 0x483   :  { %v1237_v10 = vmax.f32 %v1204_v8, 0.0 }
 0x484   :  { %v4100_v13 = vmax.f32 %v4098_v43, %v1236_v9  ;;  %v2041_v43 = vld [vmem:[#allocation19 + $0x858] sm:$0xff]  ;;  %4729 = vmatprep.subr.bf16.mxu1 %v4728_v39  ;;  %v2070_v39 = vld [vmem:[#allocation19 + $0x940] sm:$0xff] }
 0x485   :  { %v4113_v44 = vmax.f32 %v4111_v23, %v1237_v10  ;;  %1542 = vmatprep.mubr.f32.mxu1 %v1237_v10  ;;  %1703 = vmatprep.mubr.f32.mxu0 %v1237_v10  ;;  %v4856_v23 = vpack.c.bf16 %v2041_v43, %v2033_v51  ;;  %v2040_v10 = vld [vmem:[#allocation19 + $0x850] sm:$0xff] }
 0x486   :  { %v4101_v26 = vmax.f32 %v4099_v59, %v4100_v13  ;;  %1543 = vmatmul.mubr.f32.gmra.mrb[46].mxu1 %v1236_v9  ;;  %1704 = vmatmul.mubr.f32.gmra.mrb[78].mxu0 %v1236_v9  ;;  %v2030_v59 = vld [vmem:[#allocation19 + $0x800] sm:$0xff]  ;;  %v2055_v13 = vld [vmem:[#allocation19 + $0x8c8] sm:$0xff] }
 0x487   :  { %v4114_v14 = vmax.f32 %v4112_v7, %v4113_v44  ;;  %4857 = vmatprep.subr.bf16.mxu0 %v4856_v23  ;;  %v2064_v23 = vld [vmem:[#allocation19 + $0x910] sm:$0xff] }
 0x488   :  { %v4102_v27 = vrot.slane %v4101_v26, 4 }
 0x489   :  { %v4115_v17 = vrot.slane %v4114_v14, 4 }
 0x48a   :  { %v4103_v18 = vmax.f32 %v4101_v26, %v4102_v27  ;;  %v2049_v26 = vld [vmem:[#allocation19 + $0x898] sm:$0xff] }
 0x48b   :  { %v4116_v20 = vmax.f32 %v4114_v14, %v4115_v17  ;;  %v2057_v14 = vld [vmem:[#allocation19 + $0x8d8] sm:$0xff]  ;;  %v4730_v17 = vpack.c.bf16 %v2038_v60, %v2030_v59  ;;  %v2079_v59 = vld [vmem:[#allocation19 + $0x988] sm:$0xff] }
 0x48c   :  { %v4104_v45 = vrot.slane %v4103_v18, 2  ;;  %v2087_v60 = vld [vmem:[#allocation19 + $0x9c8] sm:$0xff] }
 0x48d   :  { %v4117_v37 = vrot.slane %v4116_v20, 2 }
 0x48e   :  { %v4105_v22 = vmax.f32 %v4103_v18, %v4104_v45  ;;  %v4858_v18 = vpack.c.bf16 %v2040_v10, %v2032_v1  ;;  %v4866_v10 = vpack.c.bf16 %v2072_v19, %v2064_v23 }
 0x48f   :  { %v4118_v38 = vmax.f32 %v4116_v20, %v4117_v37  ;;  %v4732_v20 = vpack.c.bf16 %v2055_v13, %v2047_v11  ;;  %v2081_v11 = vld [vmem:[#allocation19 + $0x998] sm:$0xff] }
 0x490   :  { %v4106_v41 = vrot.slane %v4105_v22, 1  ;;  %v2089_v13 = vld [vmem:[#allocation19 + $0x9d8] sm:$0xff] }
 0x491   :  { %v4119_v0 = vrot.slane %v4118_v38, 1 }
 0x492   :  { %v4107_v49 = vmax.f32 %v4105_v22, %v4106_v41 }
 0x493   :  { %v4120_v58 = vmax.f32 %v4118_v38, %v4119_v0  ;;  %v4860_v38 = vpack.c.bf16 %v2057_v14, %v2049_v26  ;;  %v2056_v0 = vld [vmem:[#allocation19 + $0x8d0] sm:$0xff] }
 0x494   :  { %v4161_v3 = vrot.slane %v4107_v49, 7  ;;  %v2063_v49 = vld [vmem:[#allocation19 + $0x908] sm:$0xff] }
 0x495   :  { %v4162_v12 = vrot.slane %v4120_v58, 7  ;;  %v2065_v58 = vld [vmem:[#allocation19 + $0x918] sm:$0xff] }
 0x496   :  { %v4192_v34 = vsel %vm4179_vm1, %v3912_v63, %v4161_v3  ;;  %v2073_v63 = vld [vmem:[#allocation19 + $0x958] sm:$0xff] }
 0x497   :  { %v4193_v53 = vsel %vm4179_vm1, %v3925_v5, %v4162_v12  ;;  %v4734_v5 = vpack.c.bf16 %v2054_v42, %v2046_v35  ;;  %v4864_v43 = vpack.c.bf16 %v2073_v63, %v2065_v58  ;;  %v2088_v35 = vld [vmem:[#allocation19 + $0x9d0] sm:$0xff]  ;;  %v2095_v42 = vld [vmem:[#allocation19 + $0xa08] sm:$0xff] }
 0x498   :  { %v4261_v28 = vcombine.low %v4192_v34, %v4193_v53 }
 0x49a   :  { %v4268_v29 = vrot.slane %v4261_v28, %v6493_v50  ;;  %v4862_v28 = vpack.c.bf16 %v2056_v0, %v2048_v24  ;;  %v4868_v24 = vpack.c.bf16 %v2089_v13, %v2081_v11  ;;  %v2105_v0 = vld [vmem:[#allocation19 + $0xa58] sm:$0xff] }
 0x49b   :  { %v2129_v11 = vld [vmem:[#allocation19 + $0xb18] sm:$0xff] }
 0x49c   :  { %v4276_v4 = vcombine.low %v4268_v29, %v4275_v30  ;;  %v4736_v29 = vpack.c.bf16 %v2071_v52, %v2063_v49  ;;  %v2062_v30 = vld [vmem:[#allocation19 + $0x900] sm:$0xff]  ;;  %v2137_v13 = vld [vmem:[#allocation19 + $0xb58] sm:$0xff] }
 0x49e   :  { %4284 = vst [vmem:[#allocation22 + $0x18] sm:$0x3f] %v4276_v4 }
 0x4da   :  { %v1454_v56 = vpop.f32.mrb[16].mxu1  ;;  %v1615_v57 = vpop.f32.mrb[48].mxu0 }
 0x4db   :  { %v1455_v6 = vadd.f32 %v1454_v56, %v6502_v48  ;;  %v6517_v7 = vadd.f32 %v1615_v57, %v6506_v25  ;;  %v1456_v8 = vpop.f32.mrb[17].mxu1  ;;  %v1617_v9 = vpop.f32.mrb[49].mxu0 }
 0x4dc   :  { %v1457_v31 = vadd.f32 %v1456_v8, %v6509_v54  ;;  %v6521_v44 = vadd.f32 %v1617_v9, %v6513_v55  ;;  %v4738_v9 = vpack.c.bf16 %v2070_v39, %v2062_v30  ;;  %v2104_v30 = vld [vmem:[#allocation19 + $0xa50] sm:$0xff]  ;;  %v2121_v39 = vld [vmem:[#allocation19 + $0xad8] sm:$0xff] }
 0x4dd   :  { %v6525_v21 = vmax.f32 %v1455_v6, 0.0 }
 0x4de   :  { %v6523_v15 = vmax.f32 %v1457_v31, 0.0  ;;  %v1460_v27 = vpop.f32.mrb[18].mxu1  ;;  %v1621_v16 = vpop.f32.mrb[50].mxu0 }
 0x4df   :  { %7710 = vst [vmem:[#allocation36_spill] sm:$0xff] %v6525_v21  ;;  %v1461_v45 = vadd.f32 %v1460_v27, %v6502_v48  ;;  %v6529_v47 = vadd.f32 %v1621_v16, %v6506_v25  ;;  %v1462_v37 = vpop.f32.mrb[19].mxu1  ;;  %v1623_v22 = vpop.f32.mrb[51].mxu0 }
 0x4e0   :  { %7709 = vst [vmem:[#allocation35_spill] sm:$0xff] %v6523_v15  ;;  %v1463_v41 = vadd.f32 %v1462_v37, %v6509_v54  ;;  %v6533_v36 = vadd.f32 %v1623_v22, %v6513_v55  ;;  %2392 = vmatprep.mubr.f32.mxu1 %v6523_v15  ;;  %2714 = vmatprep.mubr.f32.mxu0 %v6523_v15 }
 0x4e1   :  { %2393 = vmatmul.mubr.f32.vlgmr.msra.gmra.mrb[48].mxu1 %v6525_v21  ;;  %2715 = vmatmul.mubr.f32.vlgmr.msra.gmra.mrb[80].mxu0 %v6525_v21  ;;  %v6541_v12 = vmax.f32 %v1461_v45, 0.0  ;;  %v2080_v45 = vld [vmem:[#allocation19 + $0x990] sm:$0xff] }
 0x4e2   :  { %v6539_v3 = vmax.f32 %v1463_v41, 0.0  ;;  %4731 = vmatpush1.bf16.msra.mxu1 %v4730_v17  ;;  %4859 = vmatpush1.bf16.msra.mxu0 %v4858_v18  ;;  %v4740_v17 = vpack.c.bf16 %v2087_v60, %v2079_v59  ;;  %v2078_v18 = vld [vmem:[#allocation19 + $0x980] sm:$0xff]  ;;  %v2097_v41 = vld [vmem:[#allocation19 + $0xa18] sm:$0xff]  ;;  %v4870_v63 = vpack.c.bf16 %v2088_v35, %v2080_v45  ;;  %v2112_v60 = vld [vmem:[#allocation19 + $0xa90] sm:$0xff] }
 0x4e3   :  { %7712 = vst [vmem:[#allocation38_spill] sm:$0xff] %v6541_v12  ;;  %v1466_v34 = vpop.f32.mrb[20].mxu1  ;;  %v1627_v53 = vpop.f32.mrb[52].mxu0  ;;  %4733 = vmatprep.subr.bf16.mxu1 %v4732_v20  ;;  %4861 = vmatprep.subr.bf16.mxu0 %v4860_v38  ;;  %v2086_v20 = vld [vmem:[#allocation19 + $0x9c0] sm:$0xff]  ;;  %v2103_v38 = vld [vmem:[#allocation19 + $0xa48] sm:$0xff]  ;;  %v2128_v35 = vld [vmem:[#allocation19 + $0xb10] sm:$0xff] }
 0x4e4   :  { %7711 = vst [vmem:[#allocation37_spill] sm:$0xff] %v6539_v3  ;;  %v1467_v4 = vadd.f32 %v1466_v34, %v6502_v48  ;;  %v6545_v33 = vadd.f32 %v1627_v53, %v6506_v25  ;;  %v1468_v2 = vpop.f32.mrb[21].mxu1  ;;  %v1629_v51 = vpop.f32.mrb[53].mxu0  ;;  %2398 = vmatprep.mubr.f32.mxu1 %v6539_v3  ;;  %2720 = vmatprep.mubr.f32.mxu0 %v6539_v3  ;;  %v2094_v34 = vld [vmem:[#allocation19 + $0xa00] sm:$0xff] }
 0x4e5   :  { %v1469_v56 = vadd.f32 %v1468_v2, %v6509_v54  ;;  %v6550_v57 = vadd.f32 %v1629_v51, %v6513_v55  ;;  %2399 = vmatmul.mubr.f32.gmra.mrb[50].mxu1 %v6541_v12  ;;  %2721 = vmatmul.mubr.f32.gmra.mrb[82].mxu0 %v6541_v12  ;;  %v4742_v52 = vpack.c.bf16 %v2086_v20, %v2078_v18  ;;  %v2102_v53 = vld [vmem:[#allocation19 + $0xa40] sm:$0xff]  ;;  %v2119_v2 = vld [vmem:[#allocation19 + $0xac8] sm:$0xff]  ;;  %v2113_v51 = vld [vmem:[#allocation19 + $0xa98] sm:$0xff] }
 0x4e6   :  { %4735 = vmatpush1.bf16.msra.mxu1 %v4734_v5  ;;  %4863 = vmatpush1.bf16.msra.mxu0 %v4862_v28  ;;  %v6557_v31 = vmax.f32 %v1467_v4, 0.0  ;;  %v4744_v5 = vpack.c.bf16 %v2103_v38, %v2095_v42  ;;  %v2096_v28 = vld [vmem:[#allocation19 + $0xa10] sm:$0xff]  ;;  %v2111_v4 = vld [vmem:[#allocation19 + $0xa88] sm:$0xff]  ;;  %v2118_v59 = vld [vmem:[#allocation19 + $0xac0] sm:$0xff]  ;;  %v4880_v20 = vpack.c.bf16 %v2137_v13, %v2129_v11 }
 0x4e7   :  { %v6555_v1 = vmax.f32 %v1469_v56, 0.0  ;;  %v1472_v6 = vpop.f32.mrb[22].mxu1  ;;  %v1633_v8 = vpop.f32.mrb[54].mxu0  ;;  %4737 = vmatprep.subr.bf16.mxu1 %v4736_v29  ;;  %4865 = vmatprep.subr.bf16.mxu0 %v4864_v43  ;;  %v4872_v29 = vpack.c.bf16 %v2105_v0, %v2097_v41  ;;  %v4746_v43 = vpack.c.bf16 %v2102_v53, %v2094_v34  ;;  %v4874_v23 = vpack.c.bf16 %v2104_v30, %v2096_v28  ;;  %v2110_v56 = vld [vmem:[#allocation19 + $0xa80] sm:$0xff]  ;;  %v2159_v11 = vld [vmem:[#allocation19 + $0xc08] sm:$0xff] }
 0x4e8   :  { %7714 = vst [vmem:[#allocation40_spill] sm:$0xff] %v6557_v31  ;;  %v1473_v26 = vadd.f32 %v1472_v6, %v6502_v48  ;;  %v6561_v14 = vadd.f32 %v1633_v8, %v6506_v25  ;;  %v1474_v27 = vpop.f32.mrb[23].mxu1  ;;  %v1635_v16 = vpop.f32.mrb[55].mxu0  ;;  %v4748_v19 = vpack.c.bf16 %v2119_v2, %v2111_v4  ;;  %v4876_v6 = vpack.c.bf16 %v2121_v39, %v2113_v51  ;;  %v2120_v8 = vld [vmem:[#allocation19 + $0xad0] sm:$0xff]  ;;  %v2134_v18 = vld [vmem:[#allocation19 + $0xb40] sm:$0xff]  ;;  %v2167_v13 = vld [vmem:[#allocation19 + $0xc48] sm:$0xff] }
 0x4e9   :  { %7713 = vst [vmem:[#allocation39_spill] sm:$0xff] %v6555_v1  ;;  %v1475_v37 = vadd.f32 %v1474_v27, %v6509_v54  ;;  %v6565_v22 = vadd.f32 %v1635_v16, %v6513_v55  ;;  %2404 = vmatprep.mubr.f32.mxu1 %v6555_v1  ;;  %2726 = vmatprep.mubr.f32.mxu0 %v6555_v1  ;;  %v2142_v28 = vld [vmem:[#allocation19 + $0xb80] sm:$0xff] }
 0x4ea   :  { %2405 = vmatmul.mubr.f32.gmra.mrb[52].mxu1 %v6557_v31  ;;  %2727 = vmatmul.mubr.f32.gmra.mrb[84].mxu0 %v6557_v31  ;;  %v6573_v58 = vmax.f32 %v1473_v26, 0.0  ;;  %v4750_v26 = vpack.c.bf16 %v2118_v59, %v2110_v56  ;;  %v4878_v27 = vpack.c.bf16 %v2120_v8, %v2112_v60 }
 0x4eb   :  { %v6570_v49 = vmax.f32 %v1475_v37, 0.0  ;;  %4739 = vmatpush1.bf16.msra.mxu1 %v4738_v9  ;;  %4867 = vmatpush1.bf16.msra.mxu0 %v4866_v10  ;;  %v2127_v9 = vld [vmem:[#allocation19 + $0xb08] sm:$0xff] }
 0x4ec   :  { %7716 = vst [vmem:[#allocation42_spill] sm:$0xff] %v6573_v58  ;;  %4741 = vmatprep.subr.bf16.mxu1 %v4740_v17  ;;  %4869 = vmatprep.subr.bf16.mxu0 %v4868_v24  ;;  %v2135_v10 = vld [vmem:[#allocation19 + $0xb48] sm:$0xff]  ;;  %v2126_v17 = vld [vmem:[#allocation19 + $0xb00] sm:$0xff] }
 0x4ed   :  { %7715 = vst [vmem:[#allocation41_spill] sm:$0xff] %v6570_v49  ;;  %2410 = vmatprep.mubr.f32.mxu1 %v6570_v49  ;;  %2732 = vmatprep.mubr.f32.mxu0 %v6570_v49  ;;  %v4752_v16 = vpack.c.bf16 %v2135_v10, %v2127_v9  ;;  %v4754_v0 = vpack.c.bf16 %v2134_v18, %v2126_v17  ;;  %v2152_v10 = vld [vmem:[#allocation19 + $0xbd0] sm:$0xff]  ;;  %v2166_v17 = vld [vmem:[#allocation19 + $0xc40] sm:$0xff]  ;;  %v2161_v18 = vld [vmem:[#allocation19 + $0xc18] sm:$0xff] }
 0x4ee   :  { %2411 = vmatmul.mubr.f32.gmra.mrb[54].mxu1 %v6573_v58  ;;  %2733 = vmatmul.mubr.f32.gmra.mrb[86].mxu0 %v6573_v58 }
 0x4ef   :  { %4743 = vmatpush1.bf16.msra.mxu1 %v4742_v52  ;;  %4871 = vmatpush1.bf16.msra.mxu0 %v4870_v63  ;;  %v2136_v52 = vld [vmem:[#allocation19 + $0xb50] sm:$0xff]  ;;  %v2143_v63 = vld [vmem:[#allocation19 + $0xb88] sm:$0xff] }
 0x4f0   :  { %4745 = vmatprep.subr.bf16.mxu1 %v4744_v5  ;;  %4873 = vmatprep.subr.bf16.mxu0 %v4872_v29  ;;  %v2151_v5 = vld [vmem:[#allocation19 + $0xbc8] sm:$0xff]  ;;  %v2150_v29 = vld [vmem:[#allocation19 + $0xbc0] sm:$0xff]  ;;  %v4882_v51 = vpack.c.bf16 %v2136_v52, %v2128_v35 }
 0x4f1   :  { %v4756_v39 = vpack.c.bf16 %v2151_v5, %v2143_v63  ;;  %v4758_v9 = vpack.c.bf16 %v2150_v29, %v2142_v28  ;;  %v2183_v35 = vld [vmem:[#allocation19 + $0xcc8] sm:$0xff]  ;;  %v2160_v63 = vld [vmem:[#allocation19 + $0xc10] sm:$0xff]  ;;  %v2174_v29 = vld [vmem:[#allocation19 + $0xc80] sm:$0xff] }
 0x4f2   :  { %v2168_v5 = vld [vmem:[#allocation19 + $0xc50] sm:$0xff] }
 0x4f3   :  { %4747 = vmatpush1.bf16.msra.mxu1 %v4746_v43  ;;  %4875 = vmatpush1.bf16.msra.mxu0 %v4874_v23  ;;  %v2145_v43 = vld [vmem:[#allocation19 + $0xb98] sm:$0xff] }
 0x4f4   :  { %4749 = vmatprep.subr.bf16.mxu1 %v4748_v19  ;;  %4877 = vmatprep.subr.bf16.mxu0 %v4876_v6  ;;  %v2153_v23 = vld [vmem:[#allocation19 + $0xbd8] sm:$0xff]  ;;  %v2144_v19 = vld [vmem:[#allocation19 + $0xb90] sm:$0xff] }
 0x4f6   :  { %v1478_v45 = vpop.f32.mrb[24].mxu1  ;;  %v1639_v37 = vpop.f32.mrb[56].mxu0 }
 0x4f7   :  { %v1479_v42 = vadd.f32 %v1478_v45, %v6502_v48  ;;  %v6581_v38 = vadd.f32 %v1639_v37, %v6506_v25  ;;  %v1480_v24 = vpop.f32.mrb[25].mxu1  ;;  %v1641_v41 = vpop.f32.mrb[57].mxu0  ;;  %4751 = vmatpush1.bf16.msra.mxu1 %v4750_v26  ;;  %4879 = vmatpush1.bf16.msra.mxu0 %v4878_v27  ;;  %v2169_v45 = vld [vmem:[#allocation19 + $0xc58] sm:$0xff]  ;;  %v2175_v37 = vld [vmem:[#allocation19 + $0xc88] sm:$0xff] }
 0x4f8   :  { %v1481_v34 = vadd.f32 %v1480_v24, %v6509_v54  ;;  %v6585_v53 = vadd.f32 %v1641_v41, %v6513_v55  ;;  %4753 = vmatprep.subr.bf16.mxu1 %v4752_v16  ;;  %4881 = vmatprep.subr.bf16.mxu0 %v4880_v20  ;;  %v2158_v16 = vld [vmem:[#allocation19 + $0xc00] sm:$0xff]  ;;  %v4884_v20 = vpack.c.bf16 %v2153_v23, %v2145_v43  ;;  %v2191_v43 = vld [vmem:[#allocation19 + $0xd08] sm:$0xff] }
 0x4f9   :  { %v6589_v56 = vmax.f32 %v1479_v42, 0.0  ;;  %v4760_v24 = vpack.c.bf16 %v2167_v13, %v2159_v11  ;;  %v4762_v52 = vpack.c.bf16 %v2166_v17, %v2158_v16  ;;  %v4764_v28 = vpack.c.bf16 %v2183_v35, %v2175_v37  ;;  %v2198_v11 = vld [vmem:[#allocation19 + $0xd40] sm:$0xff]  ;;  %v2193_v13 = vld [vmem:[#allocation19 + $0xd18] sm:$0xff]  ;;  %v2207_v16 = vld [vmem:[#allocation19 + $0xd88] sm:$0xff] }
 0x4fa   :  { %v6587_v30 = vmax.f32 %v1481_v34, 0.0  ;;  %v1484_v4 = vpop.f32.mrb[26].mxu1  ;;  %v1645_v2 = vpop.f32.mrb[58].mxu0  ;;  %v4888_v34 = vpack.c.bf16 %v2169_v45, %v2161_v18  ;;  %v4890_v23 = vpack.c.bf16 %v2168_v5, %v2160_v63  ;;  %v2215_v17 = vld [vmem:[#allocation19 + $0xdc8] sm:$0xff] }
 0x4fb   :  { %7718 = vst [vmem:[#allocation44_spill] sm:$0xff] %v6589_v56  ;;  %v1485_v59 = vadd.f32 %v1484_v4, %v6502_v48  ;;  %v6593_v60 = vadd.f32 %v1645_v2, %v6506_v25  ;;  %v1486_v6 = vpop.f32.mrb[27].mxu1  ;;  %v1647_v8 = vpop.f32.mrb[59].mxu0  ;;  %4755 = vmatpush1.bf16.msra.mxu1 %v4754_v0  ;;  %4883 = vmatpush1.bf16.msra.mxu0 %v4882_v51  ;;  %v2182_v4 = vld [vmem:[#allocation19 + $0xcc0] sm:$0xff]  ;;  %v2177_v2 = vld [vmem:[#allocation19 + $0xc98] sm:$0xff]  ;;  %v2199_v51 = vld [vmem:[#allocation19 + $0xd48] sm:$0xff] }
 0x4fc   :  { %7717 = vst [vmem:[#allocation43_spill] sm:$0xff] %v6587_v30  ;;  %v1487_v26 = vadd.f32 %v1486_v6, %v6509_v54  ;;  %v6597_v27 = vadd.f32 %v1647_v8, %v6513_v55  ;;  %2416 = vmatprep.mubr.f32.mxu1 %v6587_v30  ;;  %2738 = vmatprep.mubr.f32.mxu0 %v6587_v30  ;;  %v2184_v6 = vld [vmem:[#allocation19 + $0xcd0] sm:$0xff] }
 0x4fd   :  { %2417 = vmatmul.mubr.f32.gmra.mrb[56].mxu1 %v6589_v56  ;;  %2739 = vmatmul.mubr.f32.gmra.mrb[88].mxu0 %v6589_v56  ;;  %v6605_v41 = vmax.f32 %v1485_v59, 0.0  ;;  %v4886_v0 = vpack.c.bf16 %v2152_v10, %v2144_v19  ;;  %v4766_v19 = vpack.c.bf16 %v2182_v4, %v2174_v29  ;;  %v2176_v59 = vld [vmem:[#allocation19 + $0xc90] sm:$0xff]  ;;  %v2190_v10 = vld [vmem:[#allocation19 + $0xd00] sm:$0xff]  ;;  %v4772_v37 = vpack.c.bf16 %v2215_v17, %v2207_v16 }
 0x4fe   :  { %v6602_v42 = vmax.f32 %v1487_v26, 0.0  ;;  %4757 = vmatprep.subr.bf16.mxu1 %v4756_v39  ;;  %4885 = vmatprep.subr.bf16.mxu0 %v4884_v20  ;;  %v2185_v39 = vld [vmem:[#allocation19 + $0xcd8] sm:$0xff]  ;;  %v4894_v18 = vpack.c.bf16 %v2184_v6, %v2176_v59  ;;  %v4770_v20 = vpack.c.bf16 %v2198_v11, %v2190_v10  ;;  %v2206_v29 = vld [vmem:[#allocation19 + $0xd80] sm:$0xff] }
 0x4ff   :  { %7720 = vst [vmem:[#allocation46_spill] sm:$0xff] %v6605_v41  ;;  %4759 = vmatpush1.bf16.msra.mxu1 %v4758_v9  ;;  %4887 = vmatpush1.bf16.msra.mxu0 %v4886_v0  ;;  %v4892_v8 = vpack.c.bf16 %v2185_v39, %v2177_v2  ;;  %v4768_v9 = vpack.c.bf16 %v2199_v51, %v2191_v43  ;;  %v2201_v26 = vld [vmem:[#allocation19 + $0xd58] sm:$0xff]  ;;  %v2192_v0 = vld [vmem:[#allocation19 + $0xd10] sm:$0xff]  ;;  %v2214_v4 = vld [vmem:[#allocation19 + $0xdc0] sm:$0xff] }
 0x500   :  { %7719 = vst [vmem:[#allocation45_spill] sm:$0xff] %v6602_v42  ;;  %2422 = vmatprep.mubr.f32.mxu1 %v6602_v42  ;;  %2744 = vmatprep.mubr.f32.mxu0 %v6602_v42  ;;  %v4896_v45 = vpack.c.bf16 %v2201_v26, %v2193_v13  ;;  %v2223_v43 = vld [vmem:[#allocation19 + $0xe08] sm:$0xff]  ;;  %v2217_v10 = vld [vmem:[#allocation19 + $0xdd8] sm:$0xff] }
 0x501   :  { %2423 = vmatmul.mubr.f32.gmra.mrb[58].mxu1 %v6605_v41  ;;  %2745 = vmatmul.mubr.f32.gmra.mrb[90].mxu0 %v6605_v41  ;;  %v2231_v51 = vld [vmem:[#allocation19 + $0xe48] sm:$0xff] }
 0x502   :  { %4761 = vmatprep.subr.bf16.mxu1 %v4760_v24  ;;  %4889 = vmatprep.subr.bf16.mxu0 %v4888_v34 }
 0x503   :  { %4763 = vmatpush1.bf16.msra.mxu1 %v4762_v52  ;;  %4891 = vmatpush1.bf16.msra.mxu0 %v4890_v23 }
 0x504   :  { %4765 = vmatprep.subr.bf16.mxu1 %v4764_v28  ;;  %4893 = vmatprep.subr.bf16.mxu0 %v4892_v8  ;;  %v2200_v28 = vld [vmem:[#allocation19 + $0xd50] sm:$0xff]  ;;  %v4774_v8 = vpack.c.bf16 %v2214_v4, %v2206_v29  ;;  %v2233_v29 = vld [vmem:[#allocation19 + $0xe58] sm:$0xff] }
 0x505   :  { %v4898_v6 = vpack.c.bf16 %v2200_v28, %v2192_v0  ;;  %v2216_v0 = vld [vmem:[#allocation19 + $0xdd0] sm:$0xff]  ;;  %v2225_v28 = vld [vmem:[#allocation19 + $0xe18] sm:$0xff] }
 0x507   :  { %4767 = vmatpush1.bf16.msra.mxu1 %v4766_v19  ;;  %4895 = vmatpush1.bf16.msra.mxu0 %v4894_v18  ;;  %v2208_v18 = vld [vmem:[#allocation19 + $0xd90] sm:$0xff] }
 0x508   :  { %4769 = vmatprep.subr.bf16.mxu1 %v4768_v9  ;;  %4897 = vmatprep.subr.bf16.mxu0 %v4896_v45  ;;  %v2209_v9 = vld [vmem:[#allocation19 + $0xd98] sm:$0xff]  ;;  %v2222_v45 = vld [vmem:[#allocation19 + $0xe00] sm:$0xff] }
 0x509   :  { %v1490_v35 = vpop.f32.mrb[28].mxu1  ;;  %v1651_v24 = vpop.f32.mrb[60].mxu0 }
 0x50a   :  { %v1491_v52 = vadd.f32 %v1490_v35, %v6502_v48  ;;  %v6613_v63 = vadd.f32 %v1651_v24, %v6506_v25  ;;  %v1492_v5 = vpop.f32.mrb[29].mxu1  ;;  %v1653_v34 = vpop.f32.mrb[61].mxu0 }
 0x50b   :  { %v1493_v2 = vadd.f32 %v1492_v5, %v6509_v54  ;;  %v6617_v39 = vadd.f32 %v1653_v34, %v6513_v55  ;;  %4771 = vmatpush1.bf16.msra.mxu1 %v4770_v20  ;;  %v4776_v20 = vpack.c.bf16 %v2231_v51, %v2223_v43  ;;  %v2247_v5 = vld [vmem:[#allocation19 + $0xec8] sm:$0xff]  ;;  %v4900_v34 = vpack.c.bf16 %v2217_v10, %v2209_v9  ;;  %v2232_v10 = vld [vmem:[#allocation19 + $0xe50] sm:$0xff] }
 0x50c   :  { %4773 = vmatprep.subr.bf16.mxu1 %v4772_v37  ;;  %v6621_v11 = vmax.f32 %v1491_v52, 0.0  ;;  %v2230_v37 = vld [vmem:[#allocation19 + $0xe40] sm:$0xff]  ;;  %v2239_v52 = vld [vmem:[#allocation19 + $0xe88] sm:$0xff]  ;;  %4899 = vmatpush1.bf16.msra.mxu0 %v4898_v6  ;;  %v4902_v51 = vpack.c.bf16 %v2216_v0, %v2208_v18  ;;  %v4904_v9 = vpack.c.bf16 %v2233_v29, %v2225_v28  ;;  %v2257_v28 = vld [vmem:[#allocation19 + $0xf18] sm:$0xff] }
 0x50d   :  { %v6619_v23 = vmax.f32 %v1493_v2, 0.0  ;;  %v1496_v19 = vpop.f32.mrb[30].mxu1  ;;  %v1657_v59 = vpop.f32.mrb[62].mxu0  ;;  %v4778_v2 = vpack.c.bf16 %v2230_v37, %v2222_v45  ;;  %4901 = vmatprep.subr.bf16.mxu0 %v4900_v34  ;;  %v2254_v45 = vld [vmem:[#allocation19 + $0xf00] sm:$0xff]  ;;  %v2265_v29 = vld [vmem:[#allocation19 + $0xf58] sm:$0xff]  ;;  %v2279_v34 = vld [vmem:[#allocation19 + $0xfc8] sm:$0xff] }
 0x50e   :  { %7722 = vst [vmem:[#allocation48_spill] sm:$0xff] %v6621_v11  ;;  %v1497_v13 = vadd.f32 %v1496_v19, %v6502_v48  ;;  %v6625_v26 = vadd.f32 %v1657_v59, %v6506_v25  ;;  %v1498_v16 = vpop.f32.mrb[31].mxu1  ;;  %v1659_v17 = vpop.f32.mrb[63].mxu0  ;;  %v2224_v19 = vld [vmem:[#allocation19 + $0xe10] sm:$0xff]  ;;  %v4780_v59 = vpack.c.bf16 %v2247_v5, %v2239_v52  ;;  %v2262_v37 = vld [vmem:[#allocation19 + $0xf40] sm:$0xff] }
 0x50f   :  { %7721 = vst [vmem:[#allocation47_spill] sm:$0xff] %v6619_v23  ;;  %v1499_v35 = vadd.f32 %v1498_v16, %v6509_v54  ;;  %v6629_v24 = vadd.f32 %v1659_v17, %v6513_v55  ;;  %2428 = vmatprep.mubr.f32.mxu1 %v6619_v23  ;;  %2750 = vmatprep.mubr.f32.mxu0 %v6619_v23  ;;  %v2238_v16 = vld [vmem:[#allocation19 + $0xe80] sm:$0xff]  ;;  %v2240_v52 = vld [vmem:[#allocation19 + $0xe90] sm:$0xff] }
 0x510   :  { %2429 = vmatmul.mubr.f32.gmra.mrb[60].mxu1 %v6621_v11  ;;  %2751 = vmatmul.mubr.f32.gmra.mrb[92].mxu0 %v6621_v11  ;;  %v6637_v43 = vmax.f32 %v1497_v13, 0.0  ;;  %v2246_v17 = vld [vmem:[#allocation19 + $0xec0] sm:$0xff]  ;;  %v2249_v13 = vld [vmem:[#allocation19 + $0xed8] sm:$0xff]  ;;  %v4906_v18 = vpack.c.bf16 %v2232_v10, %v2224_v19  ;;  %v2248_v5 = vld [vmem:[#allocation19 + $0xed0] sm:$0xff]  ;;  %v4786_v40 = vpack.c.bf16 %v2262_v37, %v2254_v45  ;;  %v4912_v19 = vpack.c.bf16 %v2265_v29, %v2257_v28 }
 0x511   :  { %v6634_v4 = vmax.f32 %v1499_v35, 0.0  ;;  %4775 = vmatpush1.bf16.msra.mxu1 %v4774_v8  ;;  %v2255_v35 = vld [vmem:[#allocation19 + $0xf08] sm:$0xff]  ;;  %v2241_v8 = vld [vmem:[#allocation19 + $0xe98] sm:$0xff]  ;;  %v4782_v6 = vpack.c.bf16 %v2246_v17, %v2238_v16  ;;  %4903 = vmatpush1.bf16.msra.mxu0 %v4902_v51  ;;  %v4910_v32 = vpack.c.bf16 %v2248_v5, %v2240_v52  ;;  %v2278_v51 = vld [vmem:[#allocation19 + $0xfc0] sm:$0xff] }
 0x512   :  { %7724 = vst [vmem:[#allocation50_spill] sm:$0xff] %v6637_v43  ;;  %4777 = vmatprep.subr.bf16.mxu1 %v4776_v20  ;;  %v4784_v20 = vpack.c.bf16 %v2263_v62, %v2255_v35  ;;  %4905 = vmatprep.subr.bf16.mxu0 %v4904_v9  ;;  %v4908_v0 = vpack.c.bf16 %v2249_v13, %v2241_v8  ;;  %v2256_v17 = vld [vmem:[#allocation19 + $0xf10] sm:$0xff] }
 0x513   :  { %7723 = vst [vmem:[#allocation49_spill] sm:$0xff] %v6634_v4  ;;  %2434 = vmatprep.mubr.f32.mxu1 %v6634_v4  ;;  %2756 = vmatprep.mubr.f32.mxu0 %v6634_v4  ;;  %v4788_v62 = vpack.c.bf16 %v2279_v34, %v2271_v46  ;;  %v2264_v13 = vld [vmem:[#allocation19 + $0xf50] sm:$0xff]  ;;  %v2273_v46 = vld [vmem:[#allocation19 + $0xf98] sm:$0xff] }
 0x514   :  { %2435 = vmatmul.mubr.f32.gmra.mrb[62].mxu1 %v6637_v43  ;;  %2757 = vmatmul.mubr.f32.gmra.mrb[94].mxu0 %v6637_v43  ;;  %v4914_v29 = vpack.c.bf16 %v2264_v13, %v2256_v17  ;;  %v1781_v17 = vld [vmem:[#allocation19 + $0x38] sm:$0xff] }
 0x515   :  { %4779 = vmatpush1.bf16.msra.mxu1 %v4778_v2  ;;  %4907 = vmatpush1.bf16.msra.mxu0 %v4906_v18  ;;  %v2270_v2 = vld [vmem:[#allocation19 + $0xf80] sm:$0xff]  ;;  %v1779_v18 = vld [vmem:[#allocation19 + $0x28] sm:$0xff] }
 0x516   :  { %4781 = vmatprep.subr.bf16.mxu1 %v4780_v59  ;;  %4909 = vmatprep.subr.bf16.mxu0 %v4908_v0  ;;  %v2281_v0 = vld [vmem:[#allocation19 + $0xfd8] sm:$0xff] }
 0x519   :  { %4783 = vmatpush1.bf16.msra.mxu1 %v4782_v6  ;;  %v4790_v6 = vpack.c.bf16 %v2278_v51, %v2270_v2  ;;  %4911 = vmatpush1.bf16.msra.mxu0 %v4910_v32  ;;  %v4916_v32 = vpack.c.bf16 %v2281_v0, %v2273_v46 }
 0x51a   :  { %4785 = vmatprep.subr.bf16.mxu1 %v4784_v20  ;;  %v1787_v20 = vld [vmem:[#allocation19 + $0x68] sm:$0xff]  ;;  %4913 = vmatprep.subr.bf16.mxu0 %v4912_v19  ;;  %v2280_v19 = vld [vmem:[#allocation19 + $0xfd0] sm:$0xff] }
 0x51c   :  { %v1502_v59 = vpop.f32.mrb[32].mxu1  ;;  %v1663_v16 = vpop.f32.mrb[64].mxu0 }
 0x51d   :  { %v1503_v9 = vadd.f32 %v1502_v59, %v6502_v48  ;;  %v6645_v10 = vadd.f32 %v1663_v16, %v6506_v25  ;;  %v1504_v35 = vpop.f32.mrb[33].mxu1  ;;  %v1665_v8 = vpop.f32.mrb[65].mxu0  ;;  %4787 = vmatpush1.bf16.msra.mxu1 %v4786_v40  ;;  %v4920_v40 = vpack.c.bf16 %v1787_v20, %v1779_v18  ;;  %4915 = vmatpush1.bf16.msra.mxu0 %v4914_v29 }
 0x51e   :  { %v1505_v45 = vadd.f32 %v1504_v35, %v6509_v54  ;;  %v6649_v37 = vadd.f32 %v1665_v8, %v6513_v55  ;;  %4789 = vmatprep.subr.bf16.mxu1 %v4788_v62  ;;  %v2272_v35 = vld [vmem:[#allocation19 + $0xf90] sm:$0xff]  ;;  %4917 = vmatprep.subr.bf16.mxu0 %v4916_v32 }
 0x51f   :  { %v6653_v34 = vmax.f32 %v1503_v9, 0.0  ;;  %v1789_v9 = vld [vmem:[#allocation19 + $0x78] sm:$0xff] }
 0x520   :  { %v6651_v52 = vmax.f32 %v1505_v45, 0.0  ;;  %v1508_v5 = vpop.f32.mrb[34].mxu1  ;;  %v1669_v28 = vpop.f32.mrb[66].mxu0  ;;  %v5048_v20 = vpack.c.bf16 %v1789_v9, %v1781_v17 }
 0x521   :  { %7726 = vst [vmem:[#allocation52_spill] sm:$0xff] %v6653_v34  ;;  %v1509_v2 = vadd.f32 %v1508_v5, %v6502_v48  ;;  %v6657_v51 = vadd.f32 %v1669_v28, %v6506_v25  ;;  %v1510_v59 = vpop.f32.mrb[35].mxu1  ;;  %v1671_v16 = vpop.f32.mrb[67].mxu0  ;;  %4791 = vmatpush1.bf16.msra.mxu1 %v4790_v6  ;;  %v4918_v6 = vpack.c.bf16 %v2280_v19, %v2272_v35 }
 0x522   :  { %7725 = vst [vmem:[#allocation51_spill] sm:$0xff] %v6651_v52  ;;  %v1511_v62 = vadd.f32 %v1510_v59, %v6509_v54  ;;  %v6661_v8 = vadd.f32 %v1671_v16, %v6513_v55  ;;  %2440 = vmatprep.mubr.f32.mxu1 %v6651_v52  ;;  %2762 = vmatprep.mubr.f32.mxu0 %v6651_v52 }
 0x523   :  { %2441 = vmatmul.mubr.f32.gmra.mrb[64].mxu1 %v6653_v34  ;;  %2763 = vmatmul.mubr.f32.gmra.mrb[96].mxu0 %v6653_v34  ;;  %v6669_v18 = vmax.f32 %v1509_v2, 0.0 }
 0x524   :  { %v6667_v13 = vmax.f32 %v1511_v62, 0.0  ;;  %4921 = vmatprep.subr.bf16.mxu1 %v4920_v40  ;;  %4919 = vmatpush1.bf16.msra.mxu0 %v4918_v6 }
 0x525   :  { %7728 = vst [vmem:[#allocation54_spill] sm:$0xff] %v6669_v18  ;;  %5049 = vmatprep.subr.bf16.mxu0 %v5048_v20 }
 0x526   :  { %7727 = vst [vmem:[#allocation53_spill] sm:$0xff] %v6667_v13  ;;  %2446 = vmatprep.mubr.f32.mxu1 %v6667_v13  ;;  %2768 = vmatprep.mubr.f32.mxu0 %v6667_v13 }
 0x527   :  { %2447 = vmatmul.mubr.f32.gmra.mrb[66].mxu1 %v6669_v18  ;;  %2769 = vmatmul.mubr.f32.gmra.mrb[98].mxu0 %v6669_v18 }
 0x52f   :  { %v1514_v45 = vpop.f32.mrb[36].mxu1  ;;  %v1675_v46 = vpop.f32.mrb[68].mxu0 }
 0x530   :  { %v1515_v0 = vadd.f32 %v1514_v45, %v6502_v48  ;;  %v6677_v5 = vadd.f32 %v1675_v46, %v6506_v25  ;;  %v1516_v28 = vpop.f32.mrb[37].mxu1  ;;  %v1677_v29 = vpop.f32.mrb[69].mxu0 }
 0x531   :  { %v1517_v40 = vadd.f32 %v1516_v28, %v6509_v54  ;;  %v6681_v2 = vadd.f32 %v1677_v29, %v6513_v55  ;;  %v6709_v28 = vmax.f32 %v6533_v36, 0.0  ;;  %v6713_v29 = vmax.f32 %v6517_v7, 0.0 }
 0x532   :  { %v6685_v35 = vmax.f32 %v1515_v0, 0.0  ;;  %v6704_v0 = vmax.f32 %v6529_v47, 0.0  ;;  %v6720_v47 = vmax.f32 %v6521_v44, 0.0  ;;  %v3861_v7 = vmax.f32 %v6523_v15, %v6539_v3 }
 0x533   :  { %v6683_v59 = vmax.f32 %v1517_v40, 0.0  ;;  %v1520_v16 = vpop.f32.mrb[38].mxu1  ;;  %v1681_v32 = vpop.f32.mrb[70].mxu0  ;;  %v6716_v40 = vmax.f32 %v6545_v33, 0.0  ;;  %v6732_v33 = vmax.f32 %v6561_v14, 0.0 }
 0x534   :  { %7730 = vst [vmem:[#allocation56_spill] sm:$0xff] %v6685_v35  ;;  %v1521_v19 = vadd.f32 %v1520_v16, %v6502_v48  ;;  %v6689_v62 = vadd.f32 %v1681_v32, %v6506_v25  ;;  %v1522_v17 = vpop.f32.mrb[39].mxu1  ;;  %v1683_v9 = vpop.f32.mrb[71].mxu0  ;;  %v3848_v16 = vmax.f32 %v6525_v21, %v6541_v12  ;;  %v6725_v32 = vmax.f32 %v6550_v57, 0.0 }
 0x535   :  { %7729 = vst [vmem:[#allocation55_spill] sm:$0xff] %v6683_v59  ;;  %v1523_v6 = vadd.f32 %v1522_v17, %v6509_v54  ;;  %v6693_v20 = vadd.f32 %v1683_v9, %v6513_v55  ;;  %2452 = vmatprep.mubr.f32.mxu1 %v6683_v59  ;;  %2774 = vmatprep.mubr.f32.mxu0 %v6683_v59  ;;  %v6738_v17 = vmax.f32 %v6565_v22, 0.0  ;;  %v6748_v12 = vmax.f32 %v6585_v53, 0.0 }
 0x536   :  { %2453 = vmatmul.mubr.f32.gmra.mrb[68].mxu1 %v6685_v35  ;;  %2775 = vmatmul.mubr.f32.gmra.mrb[100].mxu0 %v6685_v35  ;;  %v6701_v46 = vmax.f32 %v1521_v19, 0.0  ;;  %v3874_v36 = vmax.f32 %v6713_v29, %v6704_v0  ;;  %v3887_v19 = vmax.f32 %v6720_v47, %v6709_v28  ;;  %v3849_v44 = vmax.f32 %v3848_v16, %v6557_v31 }
 0x537   :  { %v6698_v45 = vmax.f32 %v1523_v6, 0.0  ;;  %v3862_v9 = vmax.f32 %v3861_v7, %v6555_v1  ;;  %v6743_v6 = vmax.f32 %v6581_v38, 0.0  ;;  %v6753_v22 = vmax.f32 %v6593_v60, 0.0 }
 0x538   :  { %7732 = vst [vmem:[#allocation58_spill] sm:$0xff] %v6701_v46  ;;  %v3875_v57 = vmax.f32 %v3874_v36, %v6716_v40  ;;  %v3888_v61 = vmax.f32 %v3887_v19, %v6725_v32  ;;  %v3850_v14 = vmax.f32 %v3849_v44, %v6573_v58  ;;  %v6758_v38 = vmax.f32 %v6597_v27, 0.0 }
 0x539   :  { %7731 = vst [vmem:[#allocation57_spill] sm:$0xff] %v6698_v45  ;;  %2458 = vmatprep.mubr.f32.mxu1 %v6698_v45  ;;  %2780 = vmatprep.mubr.f32.mxu0 %v6698_v45  ;;  %v3863_v16 = vmax.f32 %v3862_v9, %v6570_v49  ;;  %v6848_v21 = vmax.f32 %v6689_v62, 0.0  ;;  %v6863_v62 = vmax.f32 %v6693_v20, 0.0 }
 0x53a   :  { %2459 = vmatmul.mubr.f32.gmra.mrb[70].mxu1 %v6701_v46  ;;  %2781 = vmatmul.mubr.f32.gmra.mrb[102].mxu0 %v6701_v46  ;;  %v3876_v3 = vmax.f32 %v3875_v57, %v6732_v33  ;;  %v3889_v36 = vmax.f32 %v3888_v61, %v6738_v17  ;;  %v3851_v7 = vmax.f32 %v3850_v14, %v6589_v56  ;;  %v6768_v14 = vmax.f32 %v6613_v63, 0.0 }
 0x53b   :  { %v3864_v53 = vmax.f32 %v3863_v16, %v6587_v30  ;;  %v6779_v30 = vmax.f32 %v6617_v39, 0.0  ;;  %7738 = vst [vmem:[#allocation64_spill] sm:$0xff] %v6848_v21  ;;  %7739 = vst [vmem:[#allocation65_spill] sm:$0xff] %v6863_v62 }
 0x53c   :  { %v3877_v44 = vmax.f32 %v3876_v3, %v6743_v6  ;;  %v3890_v61 = vmax.f32 %v3889_v36, %v6748_v12  ;;  %v3852_v3 = vmax.f32 %v3851_v7, %v6605_v41  ;;  %v6782_v36 = vmax.f32 %v6625_v26, 0.0 }
 0x53d   :  { %v6793_v41 = vmax.f32 %v6629_v24, 0.0 }
 0x53e   :  { %v3878_v16 = vmax.f32 %v3877_v44, %v6753_v22  ;;  %7733 = vst [vmem:[#allocation59_spill] sm:$0xff] %v6782_v36 }
 0x540   :  { %v3879_v39 = vmax.f32 %v3878_v16, %v6768_v14 }
 0x542   :  { %v1526_v19 = vpop.f32.mrb[40].mxu1  ;;  %v1687_v31 = vpop.f32.mrb[72].mxu0  ;;  %v3880_v16 = vmax.f32 %v3879_v39, %v6782_v36 }
 0x543   :  { %v1527_v57 = vadd.f32 %v1526_v19, %v6502_v48  ;;  %v6764_v9 = vadd.f32 %v1687_v31, %v6506_v25  ;;  %v1528_v60 = vpop.f32.mrb[41].mxu1  ;;  %v1689_v58 = vpop.f32.mrb[73].mxu0  ;;  %v3865_v19 = vmax.f32 %v3864_v53, %v6602_v42  ;;  %v3891_v31 = vmax.f32 %v3890_v61, %v6758_v38 }
 0x544   :  { %v1529_v27 = vadd.f32 %v1528_v60, %v6509_v54  ;;  %v6772_v56 = vadd.f32 %v1689_v58, %v6513_v55  ;;  %v3853_v58 = vmax.f32 %v3852_v3, %v6621_v11 }
 0x545   :  { %v6787_v1 = vmax.f32 %v1527_v57, 0.0  ;;  %v3866_v57 = vmax.f32 %v3865_v19, %v6619_v23  ;;  %v6836_v23 = vmax.f32 %v6649_v37, 0.0  ;;  %v4056_v37 = vmax.f32 %v6651_v52, %v6667_v13  ;;  %v6905_v52 = vld [vmem:[#allocation19 + $0xa8] sm:$0xff] }
 0x546   :  { %v6784_v63 = vmax.f32 %v1529_v27, 0.0  ;;  %v1532_v60 = vpop.f32.mrb[42].mxu1  ;;  %v1693_v49 = vpop.f32.mrb[74].mxu0  ;;  %v3854_v3 = vmax.f32 %v3853_v58, %v6637_v43  ;;  %v6817_v58 = vld [vmem:[#allocation19 + $0x20] sm:$0xff]  ;;  %v6833_v43 = vld [vmem:[#allocation19 + $0x70] sm:$0xff] }
 0x547   :  { %7735 = vst [vmem:[#allocation61_spill] sm:$0xff] %v6787_v1  ;;  %v1533_v7 = vadd.f32 %v1532_v60, %v6502_v48  ;;  %v1694_v44 = vadd.f32 %v1693_v49, %v6506_v25  ;;  %v1534_v53 = vpop.f32.mrb[43].mxu1  ;;  %v1695_v61 = vpop.f32.mrb[75].mxu0  ;;  %v3892_v49 = vmax.f32 %v3891_v31, %v6779_v30  ;;  %v6814_v31 = vmax.f32 %v6657_v51, 0.0  ;;  %v6831_v51 = vld [vmem:[#allocation19 + $0x30] sm:$0xff] }
 0x548   :  { %7734 = vst [vmem:[#allocation60_spill] sm:$0xff] %v6784_v63  ;;  %v1535_v26 = vadd.f32 %v1534_v53, %v6509_v54  ;;  %v1696_v27 = vadd.f32 %v1695_v61, %v6513_v55  ;;  %2464 = vmatprep.mubr.f32.mxu1 %v6784_v63  ;;  %2786 = vmatprep.mubr.f32.mxu0 %v6784_v63  ;;  %v6819_v61 = vld [vmem:[#allocation19 + $0x60] sm:$0xff]  ;;  %v3855_v39 = vrot.slane %v3854_v3, 4 }
 0x549   :  { %2465 = vmatmul.mubr.f32.gmra.mrb[72].mxu1 %v6787_v1  ;;  %2787 = vmatmul.mubr.f32.gmra.mrb[104].mxu0 %v6787_v1  ;;  %v6807_v60 = vmax.f32 %v1533_v7, 0.0  ;;  %v3867_v53 = vmax.f32 %v3866_v57, %v6634_v4  ;;  %v3893_v19 = vmax.f32 %v3892_v49, %v6793_v41  ;;  %v3881_v7 = vrot.slane %v3880_v16, 4 }
 0x54a   :  { %v6804_v24 = vmax.f32 %v1535_v26, 0.0  ;;  %v6823_v26 = vmax.f32 %v6645_v10, 0.0  ;;  %v6826_v57 = vmax.f32 %v6661_v8, 0.0  ;;  %v6829_v49 = vmax.f32 %v6677_v5, 0.0 }
 0x54b   :  { %7737 = vst [vmem:[#allocation63_spill] sm:$0xff] %v6807_v60  ;;  %v3868_v4 = vrot.slane %v3867_v53, 4  ;;  %v3894_v11 = vrot.slane %v3893_v19, 4  ;;  %v4043_v10 = vmax.f32 %v6653_v34, %v6669_v18  ;;  %v6845_v5 = vmax.f32 %v6681_v2, 0.0 }
 0x54c   :  { %7736 = vst [vmem:[#allocation62_spill] sm:$0xff] %v6804_v24  ;;  %2470 = vmatprep.mubr.f32.mxu1 %v6804_v24  ;;  %2792 = vmatprep.mubr.f32.mxu0 %v6804_v24  ;;  %v4069_v8 = vmax.f32 %v6823_v26, %v6814_v31  ;;  %v6850_v15 = vmax.f32 %v3854_v3, %v3855_v39 }
 0x54d   :  { %2471 = vmatmul.mubr.f32.gmra.mrb[74].mxu1 %v6807_v60  ;;  %2793 = vmatmul.mubr.f32.gmra.mrb[106].mxu0 %v6807_v60  ;;  %v6852_v36 = vmax.f32 %v3880_v16, %v3881_v7  ;;  %v4082_v18 = vmax.f32 %v6836_v23, %v6826_v57  ;;  %v4044_v34 = vmax.f32 %v4043_v10, %v6685_v35  ;;  %v6871_v7 = vmax.f32 %v6764_v9, 0.0 }
 0x54e   :  { %v4070_v2 = vmax.f32 %v4069_v8, %v6829_v49  ;;  %v6865_v3 = vmax.f32 %v3867_v53, %v3868_v4  ;;  %v6867_v16 = vmax.f32 %v3893_v19, %v3894_v11  ;;  %v4057_v39 = vmax.f32 %v4056_v37, %v6683_v59 }
 0x54f   :  { %7740 = vst [vmem:[#allocation66_spill] sm:$0xff] %v6871_v7  ;;  %v4083_v42 = vmax.f32 %v4082_v18, %v6845_v5  ;;  %v4045_v13 = vmax.f32 %v4044_v34, %v6701_v46  ;;  %v6877_v8 = vmax.f32 %v6772_v56, 0.0  ;;  %v6880_v11 = vmax.f32 %v1694_v44, 0.0 }
 0x550   :  { %v4071_v10 = vmax.f32 %v4070_v2, %v6848_v21  ;;  %v4058_v4 = vmax.f32 %v4057_v39, %v6698_v45  ;;  %v6885_v34 = vmax.f32 %v1696_v27, 0.0  ;;  %v6981_v21 = vld [vmem:[#allocation19 + $0x130] sm:$0xff] }
 0x551   :  { %7741 = vst [vmem:[#allocation67_spill] sm:$0xff] %v6877_v8  ;;  %7742 = vst [vmem:[#allocation68_spill] sm:$0xff] %v6880_v11  ;;  %v4084_v18 = vmax.f32 %v4083_v42, %v6863_v62  ;;  %v4046_v46 = vmax.f32 %v4045_v13, %v6787_v1 }
 0x552   :  { %7743 = vst [vmem:[#allocation69_spill] sm:$0xff] %v6885_v34  ;;  %v4072_v39 = vmax.f32 %v4071_v10, %v6871_v7 }
 0x554   :  { %v4073_v13 = vmax.f32 %v4072_v39, %v6880_v11  ;;  %v6914_v39 = vld [vmem:[#allocation19 + $0xa0] sm:$0xff] }
 0x555   :  { %v1538_v20 = vpop.f32.mrb[44].mxu1  ;;  %v1699_v35 = vpop.f32.mrb[76].mxu0 }
 0x556   :  { %v1539_v53 = vadd.f32 %v1538_v20, %v6502_v48  ;;  %v1700_v9 = vadd.f32 %v1699_v35, %v6506_v25  ;;  %v1540_v19 = vpop.f32.mrb[45].mxu1  ;;  %v1701_v37 = vpop.f32.mrb[77].mxu0  ;;  %v4059_v35 = vmax.f32 %v4058_v4, %v6784_v63  ;;  %v4085_v20 = vmax.f32 %v4084_v18, %v6877_v8 }
 0x557   :  { %v1541_v2 = vadd.f32 %v1540_v19, %v6509_v54  ;;  %v1702_v56 = vadd.f32 %v1701_v37, %v6513_v55  ;;  %v4047_v37 = vmax.f32 %v4046_v46, %v6807_v60  ;;  %v6912_v46 = vld [vmem:[#allocation19 + $0xe8] sm:$0xff]  ;;  %v3857_v60 = vrot.slane %v6850_v15, 2 }
 0x558   :  { %v6891_v44 = vmax.f32 %v1539_v53, 0.0  ;;  %v6893_v45 = vmax.f32 %v1700_v9, 0.0  ;;  %v4060_v4 = vmax.f32 %v4059_v35, %v6804_v24  ;;  %v4086_v18 = vmax.f32 %v4085_v20, %v6885_v34  ;;  %v6943_v24 = vld [vmem:[#allocation19 + $0xb0] sm:$0xff] }
 0x559   :  { %v6897_v59 = vmax.f32 %v1541_v2, 0.0  ;;  %v6899_v42 = vmax.f32 %v1702_v56, 0.0  ;;  %v1544_v27 = vpop.f32.mrb[46].mxu1  ;;  %v1705_v19 = vpop.f32.mrb[78].mxu0 }
 0x55a   :  { %7744 = vst [vmem:[#allocation70_spill] sm:$0xff] %v6891_v44  ;;  %7745 = vst [vmem:[#allocation71_spill] sm:$0xff] %v6893_v45  ;;  %v1545_v10 = vadd.f32 %v1544_v27, %v6502_v48  ;;  %v1706_v53 = vadd.f32 %v1705_v19, %v6506_v25  ;;  %v1546_v9 = vpop.f32.mrb[47].mxu1  ;;  %v1707_v1 = vpop.f32.mrb[79].mxu0  ;;  %v6916_v48 = vld [vmem:[#allocation19 + $0xe0] sm:$0xff]  ;;  %v4048_v25 = vmax.f32 %v4047_v37, %v6891_v44 }
 0x55b   :  { %7746 = vst [vmem:[#allocation72_spill] sm:$0xff] %v6897_v59  ;;  %7747 = vst [vmem:[#allocation73_spill] sm:$0xff] %v6899_v42  ;;  %v1547_v2 = vadd.f32 %v1546_v9, %v6509_v54  ;;  %v1708_v56 = vadd.f32 %v1707_v1, %v6513_v55  ;;  %2476 = vmatprep.mubr.f32.mxu1 %v6897_v59  ;;  %v4074_v27 = vmax.f32 %v4073_v13, %v6893_v45  ;;  %v6926_v54 = vld [vmem:[#allocation19 + $0xb8] sm:$0xff] }
 0x55c   :  { %v6920_v19 = vmax.f32 %v1545_v10, 0.0  ;;  %v6922_v35 = vmax.f32 %v1706_v53, 0.0  ;;  %2798 = vmatprep.mubr.f32.mxu0 %v6897_v59  ;;  %2477 = vmatmul.mubr.f32.gmra.mrb[76].mxu1 %v6891_v44  ;;  %v6928_v55 = vld [vmem:[#allocation19 + $0xf8] sm:$0xff]  ;;  %v4061_v1 = vmax.f32 %v4060_v4, %v6897_v59  ;;  %v4087_v20 = vmax.f32 %v4086_v18, %v6899_v42  ;;  %v6945_v4 = vld [vmem:[#allocation19 + $0xf0] sm:$0xff]  ;;  %v6947_v18 = vld [vmem:[#allocation19 + $0x128] sm:$0xff] }
 0x55d   :  { %v6932_v9 = vmax.f32 %v1547_v2, 0.0  ;;  %v6934_v37 = vmax.f32 %v1708_v56, 0.0  ;;  %2799 = vmatmul.mubr.f32.gmra.mrb[108].mxu0 %v6891_v44  ;;  %v4924_v53 = vpack.c.bf16 %v6912_v46, %v6905_v52  ;;  %v5052_v52 = vpack.c.bf16 %v6928_v55, %v6926_v54  ;;  %v6955_v46 = vld [vmem:[#allocation19 + $0x168] sm:$0xff] }
 0x55e   :  { %7748 = vst [vmem:[#allocation74_spill] sm:$0xff] %v6920_v19  ;;  %7749 = vst [vmem:[#allocation75_spill] sm:$0xff] %v6922_v35  ;;  %v4049_v13 = vmax.f32 %v4048_v25, %v6920_v19  ;;  %v4075_v10 = vmax.f32 %v4074_v27, %v6922_v35  ;;  %v6957_v25 = vld [vmem:[#allocation19 + $0x120] sm:$0xff]  ;;  %v6959_v27 = vld [vmem:[#allocation19 + $0x138] sm:$0xff]  ;;  %v3883_v44 = vrot.slane %v6852_v36, 2  ;;  %v3870_v54 = vrot.slane %v6865_v3, 2 }
 0x55f   :  { %7750 = vst [vmem:[#allocation76_spill] sm:$0xff] %v6932_v9  ;;  %7751 = vst [vmem:[#allocation77_spill] sm:$0xff] %v6934_v37  ;;  %v4062_v2 = vmax.f32 %v4061_v1, %v6932_v9  ;;  %v4088_v56 = vmax.f32 %v4087_v20, %v6934_v37  ;;  %2482 = vmatprep.mubr.f32.mxu1 %v6932_v9  ;;  %2804 = vmatprep.mubr.f32.mxu0 %v6932_v9  ;;  %v6964_v20 = vld [vmem:[#allocation19 + $0x160] sm:$0xff]  ;;  %v6966_v9 = vld [vmem:[#allocation19 + $0x178] sm:$0xff]  ;;  %v3896_v55 = vrot.slane %v6867_v16, 2 }
 0x560   :  { %v4050_v1 = vrot.slane %v4049_v13, 4  ;;  %v4076_v59 = vrot.slane %v4075_v10, 4  ;;  %2483 = vmatmul.mubr.f32.gmra.mrb[78].mxu1 %v6920_v19  ;;  %v5054_v42 = vpack.c.bf16 %v6945_v4, %v6943_v24  ;;  %v4928_v11 = vpack.c.bf16 %v6955_v46, %v6947_v18 }
 0x561   :  { %v4063_v63 = vrot.slane %v4062_v2, 4  ;;  %v4089_v35 = vrot.slane %v4088_v56, 4  ;;  %2805 = vmatmul.mubr.f32.gmra.mrb[110].mxu0 %v6920_v19  ;;  %2553 = vmatprep.mubr.f32.mxu1 %v6720_v47  ;;  %v4930_v8 = vpack.c.bf16 %v6964_v20, %v6957_v25  ;;  %v5056_v19 = vpack.c.bf16 %v6966_v9, %v6959_v27  ;;  %v1844_v25 = vld [vmem:[#allocation19 + $0x230] sm:$0xff] }
 0x562   :  { %v4051_v37 = vmax.f32 %v4049_v13, %v4050_v1  ;;  %v4077_v45 = vmax.f32 %v4075_v10, %v4076_v59  ;;  %2875 = vmatprep.mubr.f32.mxu0 %v6720_v47  ;;  %v6983_v13 = vld [vmem:[#allocation19 + $0x170] sm:$0xff]  ;;  %v3858_v59 = vmax.f32 %v6850_v15, %v3857_v60  ;;  %v3884_v10 = vmax.f32 %v6852_v36, %v3883_v44 }
 0x563   :  { %v4064_v34 = vmax.f32 %v4062_v2, %v4063_v63  ;;  %v4090_v7 = vmax.f32 %v4088_v56, %v4089_v35  ;;  %v6988_v63 = vld [vmem:[#allocation19 + $0x1a8] sm:$0xff]  ;;  %v3871_v18 = vmax.f32 %v6865_v3, %v3870_v54  ;;  %v3897_v9 = vmax.f32 %v6867_v16, %v3896_v55 }
 0x564   :  { %v4052_v24 = vrot.slane %v4051_v37, 2  ;;  %v4078_v4 = vrot.slane %v4077_v45, 2  ;;  %2554 = vmatmul.mubr.f32.vlgmr.msra.gmra.mrb[48].mxu1 %v6713_v29  ;;  %v6990_v35 = vld [vmem:[#allocation19 + $0x1e8] sm:$0xff]  ;;  %v7752_v15 = vpack.c.bf16 %v6819_v61, %v6817_v58  ;;  %v5058_v44 = vpack.c.bf16 %v6983_v13, %v6981_v21  ;;  %v7007_v61 = vld [vmem:[#allocation19 + $0x1a0] sm:$0xff]  ;;  %v1829_v21 = vld [vmem:[#allocation19 + $0x1b8] sm:$0xff] }
 0x565   :  { %v4065_v2 = vrot.slane %v4064_v34, 2  ;;  %v4091_v56 = vrot.slane %v4090_v7, 2  ;;  %2876 = vmatmul.mubr.f32.vlgmr.msra.gmra.mrb[80].mxu0 %v6713_v29  ;;  %2559 = vmatprep.mubr.f32.mxu1 %v6709_v28  ;;  %v7753_v16 = vpack.c.bf16 %v6833_v43, %v6831_v51  ;;  %v4932_v58 = vpack.c.bf16 %v6990_v35, %v6988_v63 }
 0x566   :  { %4923 = vmatpush1.bf16.msra.mxu1 %v7752_v15  ;;  %v4053_v36 = vmax.f32 %v4051_v37, %v4052_v24  ;;  %v4079_v60 = vmax.f32 %v4077_v45, %v4078_v4  ;;  %2881 = vmatprep.mubr.f32.mxu0 %v6709_v28  ;;  %v7009_v45 = vld [vmem:[#allocation19 + $0x1e0] sm:$0xff]  ;;  %v3859_v37 = vrot.slane %v3858_v59, 1  ;;  %v3885_v27 = vrot.slane %v3884_v10, 1 }
 0x567   :  { %v4066_v3 = vmax.f32 %v4064_v34, %v4065_v2  ;;  %v4092_v46 = vmax.f32 %v4090_v7, %v4091_v56  ;;  %5051 = vmatpush1.bf16.msra.mxu0 %v7753_v16  ;;  %4925 = vmatprep.subr.bf16.mxu1 %v4924_v53  ;;  %v1837_v7 = vld [vmem:[#allocation19 + $0x1f8] sm:$0xff]  ;;  %v3872_v34 = vrot.slane %v3871_v18, 1  ;;  %v3898_v43 = vrot.slane %v3897_v9, 1  ;;  %v1828_v2 = vld [vmem:[#allocation19 + $0x1b0] sm:$0xff] }
 0x568   :  { %v4054_v1 = vrot.slane %v4053_v36, 1  ;;  %v4080_v54 = vrot.slane %v4079_v60, 1  ;;  %2560 = vmatmul.mubr.f32.gmra.mrb[50].mxu1 %v6704_v0  ;;  %5053 = vmatprep.subr.bf16.mxu0 %v5052_v52  ;;  %v7754_v55 = vpack.c.bf16 %v6916_v48, %v6914_v39  ;;  %v4934_v52 = vpack.c.bf16 %v7009_v45, %v7007_v61  ;;  %v1836_v56 = vld [vmem:[#allocation19 + $0x1f0] sm:$0xff]  ;;  %v1843_v39 = vld [vmem:[#allocation19 + $0x228] sm:$0xff] }
 0x569   :  { %v4067_v51 = vrot.slane %v4066_v3, 1  ;;  %v4093_v53 = vrot.slane %v4092_v46, 1  ;;  %2882 = vmatmul.mubr.f32.gmra.mrb[82].mxu0 %v6704_v0  ;;  %2565 = vmatprep.mubr.f32.mxu1 %v6725_v32  ;;  %v5060_v35 = vpack.c.bf16 %v1837_v7, %v1829_v21  ;;  %v3860_v15 = vmax.f32 %v3858_v59, %v3859_v37  ;;  %v1851_v48 = vld [vmem:[#allocation19 + $0x268] sm:$0xff]  ;;  %v1852_v37 = vld [vmem:[#allocation19 + $0x270] sm:$0xff] }
 0x56a   :  { %4927 = vmatpush1.bf16.msra.mxu1 %v7754_v55  ;;  %v4055_v13 = vmax.f32 %v4053_v36, %v4054_v1  ;;  %v4081_v24 = vmax.f32 %v4079_v60, %v4080_v54  ;;  %2887 = vmatprep.mubr.f32.mxu0 %v6725_v32  ;;  %v3886_v16 = vmax.f32 %v3884_v10, %v3885_v27  ;;  %v1842_v10 = vld [vmem:[#allocation19 + $0x220] sm:$0xff]  ;;  %v1859_v27 = vld [vmem:[#allocation19 + $0x2a8] sm:$0xff] }
 0x56b   :  { %v4068_v4 = vmax.f32 %v4066_v3, %v4067_v51  ;;  %v4094_v63 = vmax.f32 %v4092_v46, %v4093_v53  ;;  %5055 = vmatpush1.bf16.msra.mxu0 %v5054_v42  ;;  %4929 = vmatprep.subr.bf16.mxu1 %v4928_v11  ;;  %v3873_v1 = vmax.f32 %v3871_v18, %v3872_v34  ;;  %v1845_v11 = vld [vmem:[#allocation19 + $0x238] sm:$0xff]  ;;  %v1850_v46 = vld [vmem:[#allocation19 + $0x260] sm:$0xff]  ;;  %v1867_v21 = vld [vmem:[#allocation19 + $0x2e8] sm:$0xff] }
 0x56c   :  { %2566 = vmatmul.mubr.f32.gmra.mrb[52].mxu1 %v6716_v40  ;;  %5057 = vmatprep.subr.bf16.mxu0 %v5056_v19  ;;  %v4157_v36 = vrot.slane %v4055_v13, 7  ;;  %v4159_v60 = vrot.slane %v4081_v24, 7  ;;  %v3899_v54 = vmax.f32 %v3897_v9, %v3898_v43  ;;  %v1853_v42 = vld [vmem:[#allocation19 + $0x278] sm:$0xff]  ;;  %v5062_v19 = vpack.c.bf16 %v1836_v56, %v1828_v2  ;;  %v1858_v51 = vld [vmem:[#allocation19 + $0x2a0] sm:$0xff]  ;;  %v1875_v2 = vld [vmem:[#allocation19 + $0x328] sm:$0xff] }
 0x56d   :  { %2888 = vmatmul.mubr.f32.gmra.mrb[84].mxu0 %v6716_v40  ;;  %v4158_v3 = vrot.slane %v4068_v4, 7  ;;  %v4160_v59 = vrot.slane %v4094_v63, 7  ;;  %2571 = vmatprep.mubr.f32.mxu1 %v6738_v17  ;;  %v4936_v61 = vpack.c.bf16 %v1851_v48, %v1843_v39  ;;  %v5064_v45 = vpack.c.bf16 %v1853_v42, %v1845_v11  ;;  %v1869_v43 = vld [vmem:[#allocation19 + $0x2f8] sm:$0xff]  ;;  %v1866_v53 = vld [vmem:[#allocation19 + $0x2e0] sm:$0xff]  ;;  %v1860_v63 = vld [vmem:[#allocation19 + $0x2b0] sm:$0xff] }
 0x56e   :  { %4931 = vmatpush1.bf16.msra.mxu1 %v4930_v8  ;;  %2893 = vmatprep.mubr.f32.mxu0 %v6738_v17  ;;  %v4188_v18 = vsel %vm4179_vm1, %v3860_v15, %v4157_v36  ;;  %v4190_v9 = vsel %vm4179_vm1, %v3886_v16, %v4159_v60  ;;  %v5066_v24 = vpack.c.bf16 %v1852_v37, %v1844_v25  ;;  %v1883_v56 = vld [vmem:[#allocation19 + $0x368] sm:$0xff]  ;;  %v1877_v39 = vld [vmem:[#allocation19 + $0x338] sm:$0xff]  ;;  %v1874_v36 = vld [vmem:[#allocation19 + $0x320] sm:$0xff] }
 0x56f   :  { %5059 = vmatpush1.bf16.msra.mxu0 %v5058_v44  ;;  %4933 = vmatprep.subr.bf16.mxu1 %v4932_v58  ;;  %v4189_v8 = vsel %vm4179_vm1, %v3873_v1, %v4158_v3  ;;  %v4191_v20 = vsel %vm4179_vm1, %v3899_v54, %v4160_v59  ;;  %v4938_v44 = vpack.c.bf16 %v1850_v46, %v1842_v10  ;;  %v1861_v58 = vld [vmem:[#allocation19 + $0x2b8] sm:$0xff]  ;;  %v1882_v60 = vld [vmem:[#allocation19 + $0x360] sm:$0xff]  ;;  %v1876_v11 = vld [vmem:[#allocation19 + $0x330] sm:$0xff] }
 0x570   :  { %2572 = vmatmul.mubr.f32.gmra.mrb[54].mxu1 %v6732_v33  ;;  %5061 = vmatprep.subr.bf16.mxu0 %v5060_v35  ;;  %v4244_v7 = vcombine.low %v4188_v18, %v4189_v8  ;;  %v4245_v34 = vcombine.low %v4190_v9, %v4191_v20  ;;  %v4940_v4 = vpack.c.bf16 %v1867_v21, %v1859_v27  ;;  %v1868_v35 = vld [vmem:[#allocation19 + $0x2f0] sm:$0xff]  ;;  %v1885_v48 = vld [vmem:[#allocation19 + $0x378] sm:$0xff]  ;;  %v1891_v59 = vld [vmem:[#allocation19 + $0x3a8] sm:$0xff] }
 0x571   :  { %2894 = vmatmul.mubr.f32.gmra.mrb[86].mxu0 %v6732_v33  ;;  %2577 = vmatprep.mubr.f32.mxu1 %v6748_v12  ;;  %v4942_v16 = vpack.c.bf16 %v1866_v53, %v1858_v51  ;;  %v5070_v1 = vpack.c.bf16 %v1868_v35, %v1860_v63  ;;  %v4944_v54 = vpack.c.bf16 %v1883_v56, %v1875_v2  ;;  %v1884_v3 = vld [vmem:[#allocation19 + $0x370] sm:$0xff]  ;;  %v1893_v46 = vld [vmem:[#allocation19 + $0x3b8] sm:$0xff]  ;;  %v1890_v9 = vld [vmem:[#allocation19 + $0x3a0] sm:$0xff] }
 0x572   :  { %4935 = vmatpush1.bf16.msra.mxu1 %v4934_v52  ;;  %2899 = vmatprep.mubr.f32.mxu0 %v6748_v12  ;;  %v4252_v55 = vrot.slane %v4244_v7, %v6493_v50  ;;  %v4259_v13 = vrot.slane %v4245_v34, %v6493_v50  ;;  %v5068_v52 = vpack.c.bf16 %v1869_v43, %v1861_v58  ;;  %v1901_v18 = vld [vmem:[#allocation19 + $0x3f8] sm:$0xff]  ;;  %v1892_v20 = vld [vmem:[#allocation19 + $0x3b0] sm:$0xff]  ;;  %v1907_v27 = vld [vmem:[#allocation19 + $0x428] sm:$0xff] }
 0x573   :  { %5063 = vmatpush1.bf16.msra.mxu0 %v5062_v19  ;;  %4937 = vmatprep.subr.bf16.mxu1 %v4936_v61  ;;  %v5072_v42 = vpack.c.bf16 %v1885_v48, %v1877_v39  ;;  %v1899_v19 = vld [vmem:[#allocation19 + $0x3e8] sm:$0xff]  ;;  %v4946_v10 = vpack.c.bf16 %v1882_v60, %v1874_v36  ;;  %v1898_v61 = vld [vmem:[#allocation19 + $0x3e0] sm:$0xff]  ;;  %v5074_v25 = vpack.c.bf16 %v1884_v3, %v1876_v11  ;;  %v1900_v37 = vld [vmem:[#allocation19 + $0x3f0] sm:$0xff] }
 0x574   :  { %2578 = vmatmul.mubr.f32.gmra.mrb[56].mxu1 %v6743_v6  ;;  %5065 = vmatprep.subr.bf16.mxu0 %v5064_v45  ;;  %v4260_v15 = vcombine.low %v4252_v55, %v4259_v13  ;;  %v4948_v8 = vpack.c.bf16 %v1899_v19, %v1891_v59  ;;  %v5076_v45 = vpack.c.bf16 %v1901_v18, %v1893_v46  ;;  %v1915_v21 = vld [vmem:[#allocation19 + $0x468] sm:$0xff]  ;;  %v1909_v34 = vld [vmem:[#allocation19 + $0x438] sm:$0xff]  ;;  %v1906_v58 = vld [vmem:[#allocation19 + $0x420] sm:$0xff] }
 0x575   :  { %2900 = vmatmul.mubr.f32.gmra.mrb[88].mxu0 %v6743_v6  ;;  %2583 = vmatprep.mubr.f32.mxu1 %v6758_v38  ;;  %v4950_v7 = vpack.c.bf16 %v1898_v61, %v1890_v9  ;;  %v1914_v43 = vld [vmem:[#allocation19 + $0x460] sm:$0xff]  ;;  %v5078_v51 = vpack.c.bf16 %v1900_v37, %v1892_v20  ;;  %v4952_v53 = vpack.c.bf16 %v1915_v21, %v1907_v27  ;;  %v1908_v55 = vld [vmem:[#allocation19 + $0x430] sm:$0xff]  ;;  %v1923_v63 = vld [vmem:[#allocation19 + $0x4a8] sm:$0xff] }
 0x576   :  { %4939 = vmatpush1.bf16.msra.mxu1 %v4938_v44  ;;  %2905 = vmatprep.mubr.f32.mxu0 %v6758_v38  ;;  %4283 = vst [vmem:[#allocation22 + $0x10] sm:$0xff] %v4260_v15  ;;  %v1917_v44 = vld [vmem:[#allocation19 + $0x478] sm:$0xff]  ;;  %v7755_v13 = vld [vmem:[#allocation59_spill] sm:$0xff]  ;;  %v4954_v35 = vpack.c.bf16 %v1914_v43, %v1906_v58  ;;  %v1924_v36 = vld [vmem:[#allocation19 + $0x4b0] sm:$0xff] }
 0x577   :  { %5067 = vmatpush1.bf16.msra.mxu0 %v5066_v24  ;;  %4941 = vmatprep.subr.bf16.mxu1 %v4940_v4  ;;  %v5080_v24 = vpack.c.bf16 %v1917_v44, %v1909_v34  ;;  %v1916_v4 = vld [vmem:[#allocation19 + $0x470] sm:$0xff]  ;;  %v1925_v2 = vld [vmem:[#allocation19 + $0x4b8] sm:$0xff]  ;;  %v1922_v15 = vld [vmem:[#allocation19 + $0x4a0] sm:$0xff] }
 0x578   :  { %2584 = vmatmul.mubr.f32.gmra.mrb[58].mxu1 %v6753_v22  ;;  %5069 = vmatprep.subr.bf16.mxu0 %v5068_v52  ;;  %v1931_v52 = vld [vmem:[#allocation19 + $0x4e8] sm:$0xff]  ;;  %v1933_v56 = vld [vmem:[#allocation19 + $0x4f8] sm:$0xff]  ;;  %v5082_v39 = vpack.c.bf16 %v1916_v4, %v1908_v55  ;;  %v1938_v19 = vld [vmem:[#allocation19 + $0x520] sm:$0xff] }
 0x579   :  { %2906 = vmatmul.mubr.f32.gmra.mrb[90].mxu0 %v6753_v22  ;;  %2589 = vmatprep.mubr.f32.mxu1 %v6779_v30  ;;  %v4956_v48 = vpack.c.bf16 %v1931_v52, %v1923_v63  ;;  %v5084_v60 = vpack.c.bf16 %v1933_v56, %v1925_v2  ;;  %v1947_v11 = vld [vmem:[#allocation19 + $0x568] sm:$0xff]  ;;  %v1941_v3 = vld [vmem:[#allocation19 + $0x538] sm:$0xff]  ;;  %v1940_v9 = vld [vmem:[#allocation19 + $0x530] sm:$0xff] }
 0x57a   :  { %4943 = vmatpush1.bf16.msra.mxu1 %v4942_v16  ;;  %2911 = vmatprep.mubr.f32.mxu0 %v6779_v30  ;;  %v1930_v16 = vld [vmem:[#allocation19 + $0x4e0] sm:$0xff]  ;;  %v1949_v59 = vld [vmem:[#allocation19 + $0x578] sm:$0xff]  ;;  %v1963_v20 = vld [vmem:[#allocation19 + $0x5e8] sm:$0xff] }
 0x57b   :  { %5071 = vmatpush1.bf16.msra.mxu0 %v5070_v1  ;;  %4945 = vmatprep.subr.bf16.mxu1 %v4944_v54  ;;  %v1932_v1 = vld [vmem:[#allocation19 + $0x4f0] sm:$0xff]  ;;  %v1939_v54 = vld [vmem:[#allocation19 + $0x528] sm:$0xff]  ;;  %v5088_v61 = vpack.c.bf16 %v1949_v59, %v1941_v3  ;;  %v1957_v37 = vld [vmem:[#allocation19 + $0x5b8] sm:$0xff] }
 0x57c   :  { %2590 = vmatmul.mubr.f32.gmra.mrb[60].mxu1 %v6768_v14  ;;  %5073 = vmatprep.subr.bf16.mxu0 %v5072_v42  ;;  %v4958_v42 = vpack.c.bf16 %v1930_v16, %v1922_v15  ;;  %v5086_v46 = vpack.c.bf16 %v1932_v1, %v1924_v36  ;;  %v4960_v18 = vpack.c.bf16 %v1947_v11, %v1939_v54  ;;  %v1965_v27 = vld [vmem:[#allocation19 + $0x5f8] sm:$0xff]  ;;  %v1954_v21 = vld [vmem:[#allocation19 + $0x5a0] sm:$0xff]  ;;  %v1956_v58 = vld [vmem:[#allocation19 + $0x5b0] sm:$0xff] }
 0x57d   :  { %2912 = vmatmul.mubr.f32.gmra.mrb[92].mxu0 %v6768_v14  ;;  %2595 = vmatprep.mubr.f32.mxu1 %v6793_v41  ;;  %v5092_v43 = vpack.c.bf16 %v1965_v27, %v1957_v37  ;;  %v1979_v55 = vld [vmem:[#allocation19 + $0x668] sm:$0xff]  ;;  %v1973_v4 = vld [vmem:[#allocation19 + $0x638] sm:$0xff]  ;;  %v1970_v52 = vld [vmem:[#allocation19 + $0x620] sm:$0xff] }
 0x57e   :  { %4947 = vmatpush1.bf16.msra.mxu1 %v4946_v10  ;;  %2917 = vmatprep.mubr.f32.mxu0 %v6793_v41  ;;  %v1946_v10 = vld [vmem:[#allocation19 + $0x560] sm:$0xff]  ;;  %v1981_v63 = vld [vmem:[#allocation19 + $0x678] sm:$0xff]  ;;  %v1972_v15 = vld [vmem:[#allocation19 + $0x630] sm:$0xff] }
 0x57f   :  { %5075 = vmatpush1.bf16.msra.mxu0 %v5074_v25  ;;  %4949 = vmatprep.subr.bf16.mxu1 %v4948_v8  ;;  %v1948_v25 = vld [vmem:[#allocation19 + $0x570] sm:$0xff]  ;;  %v1955_v8 = vld [vmem:[#allocation19 + $0x5a8] sm:$0xff]  ;;  %v1989_v54 = vld [vmem:[#allocation19 + $0x6b8] sm:$0xff] }
 0x580   :  { %2596 = vmatmul.mubr.f32.gmra.mrb[62].mxu1 %v7755_v13  ;;  %5077 = vmatprep.subr.bf16.mxu0 %v5076_v45  ;;  %v4962_v45 = vpack.c.bf16 %v1946_v10, %v1938_v19  ;;  %v5090_v34 = vpack.c.bf16 %v1948_v25, %v1940_v9  ;;  %v4964_v44 = vpack.c.bf16 %v1963_v20, %v1955_v8  ;;  %v7756_v16 = vld [vmem:[#allocation64_spill] sm:$0xff]  ;;  %v1997_v11 = vld [vmem:[#allocation19 + $0x6f8] sm:$0xff]  ;;  %v1986_v3 = vld [vmem:[#allocation19 + $0x6a0] sm:$0xff] }
 0x581   :  { %2918 = vmatmul.mubr.f32.gmra.mrb[94].mxu0 %v7755_v13  ;;  %2601 = vmatprep.mubr.f32.mxu1 %v6836_v23  ;;  %v1987_v36 = vld [vmem:[#allocation19 + $0x6a8] sm:$0xff]  ;;  %v1994_v59 = vld [vmem:[#allocation19 + $0x6e0] sm:$0xff]  ;;  %v5100_v9 = vpack.c.bf16 %v1997_v11, %v1989_v54  ;;  %v2013_v37 = vld [vmem:[#allocation19 + $0x778] sm:$0xff] }
 0x582   :  { %4951 = vmatpush1.bf16.msra.mxu1 %v4950_v7  ;;  %2923 = vmatprep.mubr.f32.mxu0 %v6836_v23  ;;  %v1962_v7 = vld [vmem:[#allocation19 + $0x5e0] sm:$0xff]  ;;  %v2003_v25 = vld [vmem:[#allocation19 + $0x728] sm:$0xff]  ;;  %v4974_v20 = vpack.c.bf16 %v1994_v59, %v1986_v3  ;;  %v7759_v27 = vld [vmem:[#allocation69_spill] sm:$0xff] }
 0x583   :  { %5079 = vmatpush1.bf16.msra.mxu0 %v5078_v51  ;;  %4953 = vmatprep.subr.bf16.mxu1 %v4952_v53  ;;  %v1964_v51 = vld [vmem:[#allocation19 + $0x5f0] sm:$0xff]  ;;  %v1971_v53 = vld [vmem:[#allocation19 + $0x628] sm:$0xff]  ;;  %v2037_v59 = vld [vmem:[#allocation19 + $0x838] sm:$0xff] }
 0x584   :  { %2602 = vmatmul.mubr.f32.gmra.mrb[64].mxu1 %v6823_v26  ;;  %5081 = vmatprep.subr.bf16.mxu0 %v5080_v24  ;;  %v4966_v24 = vpack.c.bf16 %v1962_v7, %v1954_v21  ;;  %v5094_v2 = vpack.c.bf16 %v1964_v51, %v1956_v58  ;;  %v4968_v56 = vpack.c.bf16 %v1979_v55, %v1971_v53  ;;  %v2011_v8 = vld [vmem:[#allocation19 + $0x768] sm:$0xff]  ;;  %v2002_v21 = vld [vmem:[#allocation19 + $0x720] sm:$0xff]  ;;  %v2004_v58 = vld [vmem:[#allocation19 + $0x730] sm:$0xff] }
 0x585   :  { %2924 = vmatmul.mubr.f32.gmra.mrb[96].mxu0 %v6823_v26  ;;  %2607 = vmatprep.mubr.f32.mxu1 %v6826_v57  ;;  %v2010_v7 = vld [vmem:[#allocation19 + $0x760] sm:$0xff]  ;;  %v2012_v53 = vld [vmem:[#allocation19 + $0x770] sm:$0xff]  ;;  %v2019_v55 = vld [vmem:[#allocation19 + $0x7a8] sm:$0xff] }
 0x586   :  { %4955 = vmatpush1.bf16.msra.mxu1 %v4954_v35  ;;  %2929 = vmatprep.mubr.f32.mxu0 %v6826_v57  ;;  %v1978_v35 = vld [vmem:[#allocation19 + $0x660] sm:$0xff]  ;;  %v2035_v54 = vld [vmem:[#allocation19 + $0x828] sm:$0xff] }
 0x587   :  { %5083 = vmatpush1.bf16.msra.mxu0 %v5082_v39  ;;  %4957 = vmatprep.subr.bf16.mxu1 %v4956_v48  ;;  %v5096_v39 = vpack.c.bf16 %v1981_v63, %v1973_v4  ;;  %v1980_v48 = vld [vmem:[#allocation19 + $0x670] sm:$0xff]  ;;  %v4970_v1 = vpack.c.bf16 %v1978_v35, %v1970_v52  ;;  %v4978_v4 = vpack.c.bf16 %v2010_v7, %v2002_v21  ;;  %v2021_v63 = vld [vmem:[#allocation19 + $0x7b8] sm:$0xff]  ;;  %v2043_v11 = vld [vmem:[#allocation19 + $0x868] sm:$0xff] }
 0x588   :  { %2608 = vmatmul.mubr.f32.gmra.mrb[66].mxu1 %v6814_v31  ;;  %5085 = vmatprep.subr.bf16.mxu0 %v5084_v60  ;;  %v1995_v60 = vld [vmem:[#allocation19 + $0x6e8] sm:$0xff]  ;;  %v5098_v19 = vpack.c.bf16 %v1980_v48, %v1972_v15  ;;  %v2029_v52 = vld [vmem:[#allocation19 + $0x7f8] sm:$0xff]  ;;  %v5106_v15 = vpack.c.bf16 %v2012_v53, %v2004_v58  ;;  %v2020_v48 = vld [vmem:[#allocation19 + $0x7b0] sm:$0xff] }
 0x589   :  { %2930 = vmatmul.mubr.f32.gmra.mrb[98].mxu0 %v6814_v31  ;;  %2613 = vmatprep.mubr.f32.mxu1 %v6845_v5  ;;  %v4972_v10 = vpack.c.bf16 %v1995_v60, %v1987_v36  ;;  %v7761_v35 = vld [vmem:[#allocation73_spill] sm:$0xff]  ;;  %v7762_v36 = vld [vmem:[#allocation71_spill] sm:$0xff]  ;;  %v5108_v60 = vpack.c.bf16 %v2029_v52, %v2021_v63 }
 0x58a   :  { %4959 = vmatpush1.bf16.msra.mxu1 %v4958_v42  ;;  %2935 = vmatprep.mubr.f32.mxu0 %v6845_v5  ;;  %v7757_v42 = vld [vmem:[#allocation67_spill] sm:$0xff]  ;;  %v2036_v21 = vld [vmem:[#allocation19 + $0x830] sm:$0xff]  ;;  %v2061_v58 = vld [vmem:[#allocation19 + $0x8f8] sm:$0xff] }
 0x58b   :  { %5087 = vmatpush1.bf16.msra.mxu0 %v5086_v46  ;;  %4961 = vmatprep.subr.bf16.mxu1 %v4960_v18  ;;  %v1988_v46 = vld [vmem:[#allocation19 + $0x6b0] sm:$0xff]  ;;  %v7758_v18 = vld [vmem:[#allocation66_spill] sm:$0xff]  ;;  %v2067_v63 = vld [vmem:[#allocation19 + $0x928] sm:$0xff] }
 0x58c   :  { %2614 = vmatmul.mubr.f32.gmra.mrb[68].mxu1 %v6829_v49  ;;  %5089 = vmatprep.subr.bf16.mxu0 %v5088_v61  ;;  %v1996_v61 = vld [vmem:[#allocation19 + $0x6f0] sm:$0xff]  ;;  %v2075_v52 = vld [vmem:[#allocation19 + $0x968] sm:$0xff] }
 0x58d   :  { %2936 = vmatmul.mubr.f32.gmra.mrb[100].mxu0 %v6829_v49  ;;  %2619 = vmatprep.mubr.f32.mxu1 %v6863_v62  ;;  %v2044_v7 = vld [vmem:[#allocation19 + $0x870] sm:$0xff]  ;;  %v2171_v50 = vld [vmem:[#allocation19 + $0xc68] sm:$0xff] }
 0x58e   :  { %4963 = vmatpush1.bf16.msra.mxu1 %v4962_v45  ;;  %2941 = vmatprep.mubr.f32.mxu0 %v6863_v62  ;;  %v2005_v45 = vld [vmem:[#allocation19 + $0x738] sm:$0xff]  ;;  %v2251_v62 = vld [vmem:[#allocation19 + $0xee8] sm:$0xff] }
 0x58f   :  { %5091 = vmatpush1.bf16.msra.mxu0 %v5090_v34  ;;  %4965 = vmatprep.subr.bf16.mxu1 %v4964_v44  ;;  %v5102_v34 = vpack.c.bf16 %v1996_v61, %v1988_v46  ;;  %v4976_v44 = vpack.c.bf16 %v2011_v8, %v2003_v25  ;;  %v5104_v51 = vpack.c.bf16 %v2013_v37, %v2005_v45  ;;  %v2034_v46 = vld [vmem:[#allocation19 + $0x820] sm:$0xff]  ;;  %v2051_v8 = vld [vmem:[#allocation19 + $0x8a8] sm:$0xff] }
 0x590   :  { %2620 = vmatmul.mubr.f32.gmra.mrb[70].mxu1 %v7756_v16  ;;  %5093 = vmatprep.subr.bf16.mxu0 %v5092_v43  ;;  %v7760_v43 = vld [vmem:[#allocation68_spill] sm:$0xff]  ;;  %v4984_v25 = vpack.c.bf16 %v2043_v11, %v2035_v54  ;;  %v7764_v45 = vld [vmem:[#allocation75_spill] sm:$0xff]  ;;  %v2077_v54 = vld [vmem:[#allocation19 + $0x978] sm:$0xff]  ;;  %v4992_v11 = vpack.c.bf16 %v2075_v52, %v2067_v63 }
 0x591   :  { %2942 = vmatmul.mubr.f32.gmra.mrb[102].mxu0 %v7756_v16  ;;  %2625 = vmatprep.mubr.f32.mxu1 %v7757_v42  ;;  %v2107_v63 = vld [vmem:[#allocation19 + $0xa68] sm:$0xff]  ;;  %v2234_v16 = vld [vmem:[#allocation19 + $0xe60] sm:$0xff] }
 0x592   :  { %4967 = vmatpush1.bf16.msra.mxu1 %v4966_v24  ;;  %2947 = vmatprep.mubr.f32.mxu0 %v7757_v42  ;;  %v2027_v24 = vld [vmem:[#allocation19 + $0x7e8] sm:$0xff] }
 0x593   :  { %5095 = vmatpush1.bf16.msra.mxu0 %v5094_v2  ;;  %4969 = vmatprep.subr.bf16.mxu1 %v4968_v56  ;;  %v2018_v2 = vld [vmem:[#allocation19 + $0x7a0] sm:$0xff]  ;;  %v7770_v52 = vld [vmem:[#allocation40_spill] sm:$0xff] }
 0x594   :  { %2626 = vmatmul.mubr.f32.gmra.mrb[72].mxu1 %v7758_v18  ;;  %5097 = vmatprep.subr.bf16.mxu0 %v5096_v39  ;;  %v2026_v56 = vld [vmem:[#allocation19 + $0x7e0] sm:$0xff]  ;;  %v4980_v39 = vpack.c.bf16 %v2027_v24, %v2019_v55  ;;  %v2235_v42 = vld [vmem:[#allocation19 + $0xe68] sm:$0xff] }
 0x595   :  { %2948 = vmatmul.mubr.f32.gmra.mrb[104].mxu0 %v7758_v18  ;;  %2631 = vmatprep.mubr.f32.mxu1 %v7759_v27  ;;  %v4982_v3 = vpack.c.bf16 %v2026_v56, %v2018_v2  ;;  %v2050_v55 = vld [vmem:[#allocation19 + $0x8a0] sm:$0xff]  ;;  %v7766_v2 = vld [vmem:[#allocation36_spill] sm:$0xff] }
 0x596   :  { %4971 = vmatpush1.bf16.msra.mxu1 %v4970_v1  ;;  %2953 = vmatprep.mubr.f32.mxu0 %v7759_v27  ;;  %v2028_v1 = vld [vmem:[#allocation19 + $0x7f0] sm:$0xff]  ;;  %v2058_v24 = vld [vmem:[#allocation19 + $0x8e0] sm:$0xff]  ;;  %v2219_v27 = vld [vmem:[#allocation19 + $0xde8] sm:$0xff] }
 0x597   :  { %5099 = vmatpush1.bf16.msra.mxu0 %v5098_v19  ;;  %4973 = vmatprep.subr.bf16.mxu1 %v4972_v10  ;;  %v2045_v19 = vld [vmem:[#allocation19 + $0x878] sm:$0xff]  ;;  %v5110_v61 = vpack.c.bf16 %v2028_v1, %v2020_v48  ;;  %v2218_v18 = vld [vmem:[#allocation19 + $0xde0] sm:$0xff] }
 0x598   :  { %2632 = vmatmul.mubr.f32.gmra.mrb[74].mxu1 %v7760_v43  ;;  %5101 = vmatprep.subr.bf16.mxu0 %v5100_v9  ;;  %v7763_v10 = vld [vmem:[#allocation77_spill] sm:$0xff]  ;;  %v2042_v9 = vld [vmem:[#allocation19 + $0x860] sm:$0xff]  ;;  %v7082_v37 = vpack.c.bf16 %v2045_v19, %v2037_v59 }
 0x599   :  { %2954 = vmatmul.mubr.f32.gmra.mrb[106].mxu0 %v7760_v43  ;;  %2637 = vmatprep.mubr.f32.mxu1 %v7761_v35  ;;  %v7767_v48 = vld [vmem:[#allocation37_spill] sm:$0xff]  ;;  %v2074_v59 = vld [vmem:[#allocation19 + $0x960] sm:$0xff] }
 0x59a   :  { %4975 = vmatpush1.bf16.msra.mxu1 %v4974_v20  ;;  %2959 = vmatprep.mubr.f32.mxu0 %v7761_v35  ;;  %v2059_v20 = vld [vmem:[#allocation19 + $0x8e8] sm:$0xff]  ;;  %v2069_v1 = vld [vmem:[#allocation19 + $0x938] sm:$0xff]  ;;  %v2202_v43 = vld [vmem:[#allocation19 + $0xd60] sm:$0xff] }
 0x59b   :  { %5103 = vmatpush1.bf16.msra.mxu0 %v5102_v34  ;;  %4977 = vmatprep.subr.bf16.mxu1 %v4976_v44  ;;  %v4986_v34 = vpack.c.bf16 %v2042_v9, %v2034_v46  ;;  %v2053_v44 = vld [vmem:[#allocation19 + $0x8b8] sm:$0xff]  ;;  %v4988_v53 = vpack.c.bf16 %v2059_v20, %v2051_v8  ;;  %v2083_v46 = vld [vmem:[#allocation19 + $0x9a8] sm:$0xff]  ;;  %v2068_v8 = vld [vmem:[#allocation19 + $0x930] sm:$0xff] }
 0x59c   :  { %2638 = vmatmul.mubr.f32.gmra.mrb[76].mxu1 %v7762_v36  ;;  %5105 = vmatprep.subr.bf16.mxu0 %v5104_v51  ;;  %v7765_v51 = vld [vmem:[#allocation35_spill] sm:$0xff]  ;;  %v7091_v56 = vpack.c.bf16 %v2061_v58, %v2053_v44  ;;  %v2076_v20 = vld [vmem:[#allocation19 + $0x970] sm:$0xff]  ;;  %v2093_v44 = vld [vmem:[#allocation19 + $0x9f8] sm:$0xff] }
 0x59d   :  { %2960 = vmatmul.mubr.f32.gmra.mrb[108].mxu0 %v7762_v36  ;;  %2643 = vmatprep.mubr.f32.mxu1 %v7763_v10  ;;  %v2091_v9 = vld [vmem:[#allocation19 + $0x9e8] sm:$0xff]  ;;  %v2186_v36 = vld [vmem:[#allocation19 + $0xce0] sm:$0xff] }
 0x59e   :  { %4979 = vmatpush1.bf16.msra.mxu1 %v4978_v4  ;;  %2965 = vmatprep.mubr.f32.mxu0 %v7763_v10  ;;  %v7087_v4 = vpack.c.bf16 %v2044_v7, %v2036_v21  ;;  %v7769_v21 = vld [vmem:[#allocation39_spill] sm:$0xff]  ;;  %v4996_v58 = vpack.c.bf16 %v2091_v9, %v2083_v46 }
 0x59f   :  { %5107 = vmatpush1.bf16.msra.mxu0 %v5106_v15  ;;  %4981 = vmatprep.subr.bf16.mxu1 %v4980_v39  ;;  %v2052_v15 = vld [vmem:[#allocation19 + $0x8b0] sm:$0xff]  ;;  %v2115_v9 = vld [vmem:[#allocation19 + $0xaa8] sm:$0xff] }
 0x5a0   :  { %2644 = vmatmul.mubr.f32.gmra.mrb[78].mxu1 %v7764_v45  ;;  %5109 = vmatprep.subr.bf16.mxu0 %v5108_v60  ;;  %v2060_v39 = vld [vmem:[#allocation19 + $0x8f0] sm:$0xff]  ;;  %v4990_v60 = vpack.c.bf16 %v2058_v24, %v2050_v55  ;;  %v7107_v55 = vpack.c.bf16 %v2076_v20, %v2068_v8  ;;  %v2099_v24 = vld [vmem:[#allocation19 + $0xa28] sm:$0xff]  ;;  %v7772_v8 = vld [vmem:[#allocation42_spill] sm:$0xff] }
 0x5a1   :  { %2966 = vmatmul.mubr.f32.gmra.mrb[110].mxu0 %v7764_v45  ;;  %3036 = vmatprep.mubr.f32.mxu1 %v7765_v51  ;;  %v7097_v19 = vpack.c.bf16 %v2060_v39, %v2052_v15  ;;  %v2084_v15 = vld [vmem:[#allocation19 + $0x9b0] sm:$0xff]  ;;  %v2170_v45 = vld [vmem:[#allocation19 + $0xc60] sm:$0xff]  ;;  %v2187_v10 = vld [vmem:[#allocation19 + $0xce8] sm:$0xff] }
 0x5a2   :  { %4983 = vmatpush1.bf16.msra.mxu1 %v4982_v3  ;;  %3358 = vmatprep.mubr.f32.mxu0 %v7765_v51  ;;  %v2066_v3 = vld [vmem:[#allocation19 + $0x920] sm:$0xff]  ;;  %v2092_v39 = vld [vmem:[#allocation19 + $0x9f0] sm:$0xff]  ;;  %v2203_v35 = vld [vmem:[#allocation19 + $0xd68] sm:$0xff] }
 0x5a3   :  { %5111 = vmatpush1.bf16.msra.mxu0 %v5110_v61  ;;  %4985 = vmatprep.subr.bf16.mxu1 %v4984_v25  ;;  %v7768_v61 = vld [vmem:[#allocation38_spill] sm:$0xff]  ;;  %v7101_v25 = vpack.c.bf16 %v2077_v54, %v2069_v1  ;;  %v4994_v7 = vpack.c.bf16 %v2074_v59, %v2066_v3  ;;  %v7117_v46 = vpack.c.bf16 %v2092_v39, %v2084_v15  ;;  %v2131_v15 = vld [vmem:[#allocation19 + $0xb28] sm:$0xff] }
 0x5a4   :  { %5113 = vmatprep.subr.bf16.mxu0 %v7082_v37  ;;  %v2082_v51 = vld [vmem:[#allocation19 + $0x9a0] sm:$0xff]  ;;  %v2101_v1 = vld [vmem:[#allocation19 + $0xa38] sm:$0xff]  ;;  %v2139_v39 = vld [vmem:[#allocation19 + $0xb68] sm:$0xff] }
 0x5a5   :  { %3037 = vmatmul.mubr.f32.vlgmr.msra.gmra.mrb[80].mxu1 %v7766_v2  ;;  %v2109_v54 = vld [vmem:[#allocation19 + $0xa78] sm:$0xff]  ;;  %v2098_v3 = vld [vmem:[#allocation19 + $0xa20] sm:$0xff] }
 0x5a6   :  { %4987 = vmatpush1.bf16.msra.mxu1 %v4986_v34  ;;  %3042 = vmatprep.mubr.f32.mxu1 %v7767_v48  ;;  %v2085_v34 = vld [vmem:[#allocation19 + $0x9b8] sm:$0xff]  ;;  %v2106_v59 = vld [vmem:[#allocation19 + $0xa60] sm:$0xff]  ;;  %v7121_v20 = vpack.c.bf16 %v2109_v54, %v2101_v1  ;;  %v2116_v1 = vld [vmem:[#allocation19 + $0xab0] sm:$0xff] }
 0x5a7   :  { %3359 = vmatmul.mubr.f32.vlgmr.msra.gmra.mrb[112].mxu0 %v7766_v2  ;;  %4989 = vmatprep.subr.bf16.mxu1 %v4988_v53  ;;  %v2090_v53 = vld [vmem:[#allocation19 + $0x9e0] sm:$0xff]  ;;  %v7111_v2 = vpack.c.bf16 %v2093_v44, %v2085_v34  ;;  %v5002_v44 = vpack.c.bf16 %v2106_v59, %v2098_v3  ;;  %v2124_v54 = vld [vmem:[#allocation19 + $0xaf0] sm:$0xff]  ;;  %v2133_v59 = vld [vmem:[#allocation19 + $0xb38] sm:$0xff] }
 0x5a8   :  { %3364 = vmatprep.mubr.f32.mxu0 %v7767_v48  ;;  %5115 = vmatpush1.bf16.msra.mxu0 %v7087_v4  ;;  %v7771_v48 = vld [vmem:[#allocation41_spill] sm:$0xff]  ;;  %v7773_v34 = vld [vmem:[#allocation43_spill] sm:$0xff] }
 0x5a9   :  { %3043 = vmatmul.mubr.f32.gmra.mrb[82].mxu1 %v7768_v61  ;;  %5117 = vmatprep.subr.bf16.mxu0 %v7091_v56 }
 0x5aa   :  { %4991 = vmatpush1.bf16.msra.mxu1 %v4990_v60  ;;  %3048 = vmatprep.mubr.f32.mxu1 %v7769_v21  ;;  %v4998_v60 = vpack.c.bf16 %v2090_v53, %v2082_v51  ;;  %v2125_v51 = vld [vmem:[#allocation19 + $0xaf8] sm:$0xff] }
 0x5ab   :  { %3365 = vmatmul.mubr.f32.gmra.mrb[114].mxu0 %v7768_v61  ;;  %4993 = vmatprep.subr.bf16.mxu1 %v4992_v11  ;;  %v5000_v11 = vpack.c.bf16 %v2107_v63, %v2099_v24  ;;  %v2123_v61 = vld [vmem:[#allocation19 + $0xae8] sm:$0xff]  ;;  %v2114_v24 = vld [vmem:[#allocation19 + $0xaa0] sm:$0xff] }
 0x5ac   :  { %3370 = vmatprep.mubr.f32.mxu0 %v7769_v21  ;;  %5119 = vmatpush1.bf16.msra.mxu0 %v7097_v19  ;;  %v2100_v21 = vld [vmem:[#allocation19 + $0xa30] sm:$0xff]  ;;  %v5004_v53 = vpack.c.bf16 %v2123_v61, %v2115_v9  ;;  %v2122_v63 = vld [vmem:[#allocation19 + $0xae0] sm:$0xff]  ;;  %v2141_v9 = vld [vmem:[#allocation19 + $0xb78] sm:$0xff]  ;;  %v5008_v61 = vpack.c.bf16 %v2139_v39, %v2131_v15 }
 0x5ad   :  { %3049 = vmatmul.mubr.f32.gmra.mrb[84].mxu1 %v7770_v52  ;;  %5121 = vmatprep.subr.bf16.mxu0 %v7101_v25  ;;  %v5006_v3 = vpack.c.bf16 %v2122_v63, %v2114_v24  ;;  %v2132_v24 = vld [vmem:[#allocation19 + $0xb30] sm:$0xff]  ;;  %v2149_v39 = vld [vmem:[#allocation19 + $0xbb8] sm:$0xff] }
 0x5ae   :  { %4995 = vmatpush1.bf16.msra.mxu1 %v4994_v7  ;;  %3054 = vmatprep.mubr.f32.mxu1 %v7771_v48  ;;  %v2108_v7 = vld [vmem:[#allocation19 + $0xa70] sm:$0xff] }
 0x5af   :  { %3371 = vmatmul.mubr.f32.gmra.mrb[116].mxu0 %v7770_v52  ;;  %4997 = vmatprep.subr.bf16.mxu1 %v4996_v58  ;;  %v2117_v58 = vld [vmem:[#allocation19 + $0xab8] sm:$0xff]  ;;  %v7127_v52 = vpack.c.bf16 %v2108_v7, %v2100_v21  ;;  %v2138_v21 = vld [vmem:[#allocation19 + $0xb60] sm:$0xff]  ;;  %v7137_v7 = vpack.c.bf16 %v2124_v54, %v2116_v1  ;;  %v2140_v63 = vld [vmem:[#allocation19 + $0xb70] sm:$0xff] }
 0x5b0   :  { %3376 = vmatprep.mubr.f32.mxu0 %v7771_v48  ;;  %5123 = vmatpush1.bf16.msra.mxu0 %v7107_v55  ;;  %v7774_v48 = vld [vmem:[#allocation44_spill] sm:$0xff]  ;;  %v2146_v54 = vld [vmem:[#allocation19 + $0xba0] sm:$0xff] }
 0x5b1   :  { %3055 = vmatmul.mubr.f32.gmra.mrb[86].mxu1 %v7772_v8  ;;  %5125 = vmatprep.subr.bf16.mxu0 %v7111_v2 }
 0x5b2   :  { %4999 = vmatpush1.bf16.msra.mxu1 %v4998_v60  ;;  %3060 = vmatprep.mubr.f32.mxu1 %v7773_v34  ;;  %v7131_v60 = vpack.c.bf16 %v2125_v51, %v2117_v58  ;;  %v2155_v58 = vld [vmem:[#allocation19 + $0xbe8] sm:$0xff]  ;;  %v7141_v51 = vpack.c.bf16 %v2141_v9, %v2133_v59  ;;  %v7147_v59 = vpack.c.bf16 %v2140_v63, %v2132_v24  ;;  %v2162_v63 = vld [vmem:[#allocation19 + $0xc20] sm:$0xff] }
 0x5b3   :  { %3377 = vmatmul.mubr.f32.gmra.mrb[118].mxu0 %v7772_v8  ;;  %5001 = vmatprep.subr.bf16.mxu1 %v5000_v11  ;;  %v7775_v11 = vld [vmem:[#allocation45_spill] sm:$0xff]  ;;  %v2130_v8 = vld [vmem:[#allocation19 + $0xb20] sm:$0xff]  ;;  %v2163_v9 = vld [vmem:[#allocation19 + $0xc28] sm:$0xff] }
 0x5b4   :  { %3382 = vmatprep.mubr.f32.mxu0 %v7773_v34  ;;  %5127 = vmatpush1.bf16.msra.mxu0 %v7117_v46  ;;  %v2147_v34 = vld [vmem:[#allocation19 + $0xba8] sm:$0xff]  ;;  %v5010_v15 = vpack.c.bf16 %v2138_v21, %v2130_v8  ;;  %v2148_v21 = vld [vmem:[#allocation19 + $0xbb0] sm:$0xff]  ;;  %v5016_v24 = vpack.c.bf16 %v2171_v50, %v2163_v9  ;;  %v2181_v9 = vld [vmem:[#allocation19 + $0xcb8] sm:$0xff] }
 0x5b5   :  { %3061 = vmatmul.mubr.f32.gmra.mrb[88].mxu1 %v7774_v48  ;;  %5129 = vmatprep.subr.bf16.mxu0 %v7121_v20  ;;  %v5012_v1 = vpack.c.bf16 %v2155_v58, %v2147_v34  ;;  %v2165_v58 = vld [vmem:[#allocation19 + $0xc38] sm:$0xff]  ;;  %v7781_v50 = vld [vmem:[#allocation51_spill] sm:$0xff] }
 0x5b6   :  { %5003 = vmatpush1.bf16.msra.mxu1 %v5002_v44  ;;  %3066 = vmatprep.mubr.f32.mxu1 %v7775_v11  ;;  %v7776_v44 = vld [vmem:[#allocation46_spill] sm:$0xff] }
 0x5b7   :  { %3383 = vmatmul.mubr.f32.gmra.mrb[120].mxu0 %v7774_v48  ;;  %5005 = vmatprep.subr.bf16.mxu1 %v5004_v53  ;;  %v7777_v53 = vld [vmem:[#allocation47_spill] sm:$0xff]  ;;  %v2157_v48 = vld [vmem:[#allocation19 + $0xbf8] sm:$0xff] }
 0x5b8   :  { %3388 = vmatprep.mubr.f32.mxu0 %v7775_v11  ;;  %5131 = vmatpush1.bf16.msra.mxu0 %v7127_v52  ;;  %v2154_v11 = vld [vmem:[#allocation19 + $0xbe0] sm:$0xff]  ;;  %v7151_v8 = vpack.c.bf16 %v2157_v48, %v2149_v39  ;;  %v2179_v48 = vld [vmem:[#allocation19 + $0xca8] sm:$0xff] }
 0x5b9   :  { %3067 = vmatmul.mubr.f32.gmra.mrb[90].mxu1 %v7776_v44  ;;  %5133 = vmatprep.subr.bf16.mxu0 %v7131_v60  ;;  %v5014_v34 = vpack.c.bf16 %v2154_v11, %v2146_v54  ;;  %v2164_v11 = vld [vmem:[#allocation19 + $0xc30] sm:$0xff] }
 0x5ba   :  { %5007 = vmatpush1.bf16.msra.mxu1 %v5006_v3  ;;  %3072 = vmatprep.mubr.f32.mxu1 %v7777_v53  ;;  %v7778_v3 = vld [vmem:[#allocation48_spill] sm:$0xff] }
 0x5bb   :  { %3389 = vmatmul.mubr.f32.gmra.mrb[122].mxu0 %v7776_v44  ;;  %5009 = vmatprep.subr.bf16.mxu1 %v5008_v61  ;;  %v2156_v44 = vld [vmem:[#allocation19 + $0xbf0] sm:$0xff] }
 0x5bc   :  { %3394 = vmatprep.mubr.f32.mxu0 %v7777_v53  ;;  %5135 = vmatpush1.bf16.msra.mxu0 %v7137_v7  ;;  %v7779_v61 = vld [vmem:[#allocation49_spill] sm:$0xff]  ;;  %v7157_v39 = vpack.c.bf16 %v2156_v44, %v2148_v21  ;;  %v5020_v21 = vpack.c.bf16 %v2187_v10, %v2179_v48  ;;  %v2178_v44 = vld [vmem:[#allocation19 + $0xca0] sm:$0xff] }
 0x5bd   :  { %3073 = vmatmul.mubr.f32.gmra.mrb[92].mxu1 %v7778_v3  ;;  %5137 = vmatprep.subr.bf16.mxu0 %v7141_v51  ;;  %v2173_v53 = vld [vmem:[#allocation19 + $0xc78] sm:$0xff] }
 0x5be   :  { %5011 = vmatpush1.bf16.msra.mxu1 %v5010_v15  ;;  %3078 = vmatprep.mubr.f32.mxu1 %v7779_v61  ;;  %v7780_v15 = vld [vmem:[#allocation50_spill] sm:$0xff]  ;;  %v7161_v54 = vpack.c.bf16 %v2173_v53, %v2165_v58  ;;  %v2195_v53 = vld [vmem:[#allocation19 + $0xd28] sm:$0xff]  ;;  %v7783_v10 = vld [vmem:[#allocation53_spill] sm:$0xff] }
 0x5bf   :  { %3395 = vmatmul.mubr.f32.gmra.mrb[124].mxu0 %v7778_v3  ;;  %5013 = vmatprep.subr.bf16.mxu1 %v5012_v1  ;;  %v2172_v3 = vld [vmem:[#allocation19 + $0xc70] sm:$0xff]  ;;  %v5018_v1 = vpack.c.bf16 %v2170_v45, %v2162_v63  ;;  %v2197_v48 = vld [vmem:[#allocation19 + $0xd38] sm:$0xff] }
 0x5c0   :  { %3400 = vmatprep.mubr.f32.mxu0 %v7779_v61  ;;  %5139 = vmatpush1.bf16.msra.mxu0 %v7147_v59  ;;  %v2189_v61 = vld [vmem:[#allocation19 + $0xcf8] sm:$0xff]  ;;  %v7167_v58 = vpack.c.bf16 %v2172_v3, %v2164_v11  ;;  %v2180_v63 = vld [vmem:[#allocation19 + $0xcb0] sm:$0xff]  ;;  %v5024_v11 = vpack.c.bf16 %v2203_v35, %v2195_v53  ;;  %v2194_v3 = vld [vmem:[#allocation19 + $0xd20] sm:$0xff] }
 0x5c1   :  { %3079 = vmatmul.mubr.f32.gmra.mrb[94].mxu1 %v7780_v15  ;;  %5141 = vmatprep.subr.bf16.mxu0 %v7151_v8  ;;  %v7171_v45 = vpack.c.bf16 %v2189_v61, %v2181_v9  ;;  %v2211_v61 = vld [vmem:[#allocation19 + $0xda8] sm:$0xff]  ;;  %v2213_v53 = vld [vmem:[#allocation19 + $0xdb8] sm:$0xff] }
 0x5c2   :  { %5015 = vmatpush1.bf16.msra.mxu1 %v5014_v34  ;;  %3084 = vmatprep.mubr.f32.mxu1 %v7781_v50  ;;  %v7782_v34 = vld [vmem:[#allocation52_spill] sm:$0xff]  ;;  %v7785_v35 = vld [vmem:[#allocation55_spill] sm:$0xff] }
 0x5c3   :  { %3401 = vmatmul.mubr.f32.gmra.mrb[126].mxu0 %v7780_v15  ;;  %5017 = vmatprep.subr.bf16.mxu1 %v5016_v24  ;;  %v2188_v15 = vld [vmem:[#allocation19 + $0xcf0] sm:$0xff]  ;;  %v5022_v24 = vpack.c.bf16 %v2186_v36, %v2178_v44 }
 0x5c4   :  { %3406 = vmatprep.mubr.f32.mxu0 %v7781_v50  ;;  %5143 = vmatpush1.bf16.msra.mxu0 %v7157_v39  ;;  %v2205_v50 = vld [vmem:[#allocation19 + $0xd78] sm:$0xff]  ;;  %v7177_v9 = vpack.c.bf16 %v2188_v15, %v2180_v63  ;;  %v2196_v44 = vld [vmem:[#allocation19 + $0xd30] sm:$0xff]  ;;  %v5028_v63 = vpack.c.bf16 %v2219_v27, %v2211_v61  ;;  %v2210_v15 = vld [vmem:[#allocation19 + $0xda0] sm:$0xff] }
 0x5c5   :  { %3085 = vmatmul.mubr.f32.gmra.mrb[96].mxu1 %v7782_v34  ;;  %5145 = vmatprep.subr.bf16.mxu0 %v7161_v54  ;;  %v7181_v36 = vpack.c.bf16 %v2205_v50, %v2197_v48  ;;  %v2227_v50 = vld [vmem:[#allocation19 + $0xe28] sm:$0xff]  ;;  %v7789_v27 = vld [vmem:[#allocation57_spill] sm:$0xff] }
 0x5c6   :  { %5019 = vmatpush1.bf16.msra.mxu1 %v5018_v1  ;;  %3090 = vmatprep.mubr.f32.mxu1 %v7783_v10  ;;  %v7784_v1 = vld [vmem:[#allocation54_spill] sm:$0xff] }
 0x5c7   :  { %3407 = vmatmul.mubr.f32.gmra.mrb[128].mxu0 %v7782_v34  ;;  %5021 = vmatprep.subr.bf16.mxu1 %v5020_v21  ;;  %v2204_v34 = vld [vmem:[#allocation19 + $0xd70] sm:$0xff]  ;;  %v5026_v21 = vpack.c.bf16 %v2202_v43, %v2194_v3  ;;  %v2229_v61 = vld [vmem:[#allocation19 + $0xe38] sm:$0xff] }
 0x5c8   :  { %3412 = vmatprep.mubr.f32.mxu0 %v7783_v10  ;;  %5147 = vmatpush1.bf16.msra.mxu0 %v7167_v58  ;;  %v2221_v10 = vld [vmem:[#allocation19 + $0xdf8] sm:$0xff]  ;;  %v7187_v48 = vpack.c.bf16 %v2204_v34, %v2196_v44  ;;  %v2212_v3 = vld [vmem:[#allocation19 + $0xdb0] sm:$0xff]  ;;  %v5032_v44 = vpack.c.bf16 %v2235_v42, %v2227_v50  ;;  %v2226_v34 = vld [vmem:[#allocation19 + $0xe20] sm:$0xff] }
 0x5c9   :  { %3091 = vmatmul.mubr.f32.gmra.mrb[98].mxu1 %v7784_v1  ;;  %5149 = vmatprep.subr.bf16.mxu0 %v7171_v45  ;;  %v7191_v43 = vpack.c.bf16 %v2221_v10, %v2213_v53  ;;  %v2243_v10 = vld [vmem:[#allocation19 + $0xea8] sm:$0xff]  ;;  %v2245_v50 = vld [vmem:[#allocation19 + $0xeb8] sm:$0xff] }
 0x5ca   :  { %5023 = vmatpush1.bf16.msra.mxu1 %v5022_v24  ;;  %3096 = vmatprep.mubr.f32.mxu1 %v7785_v35  ;;  %7786 = vst [vmem:[#allocation59_spill] sm:$0xff] %v7187_v48  ;;  %v7787_v24 = vld [vmem:[#allocation56_spill] sm:$0xff] }
 0x5cb   :  { %3413 = vmatmul.mubr.f32.gmra.mrb[130].mxu0 %v7784_v1  ;;  %5025 = vmatprep.subr.bf16.mxu1 %v5024_v11  ;;  %7788 = vst [vmem:[#allocation35_spill] sm:$0xff] %v7191_v43  ;;  %v2220_v1 = vld [vmem:[#allocation19 + $0xdf0] sm:$0xff]  ;;  %v5030_v11 = vpack.c.bf16 %v2218_v18, %v2210_v15 }
 0x5cc   :  { %3418 = vmatprep.mubr.f32.mxu0 %v7785_v35  ;;  %5151 = vmatpush1.bf16.msra.mxu0 %v7177_v9  ;;  %v2237_v35 = vld [vmem:[#allocation19 + $0xe78] sm:$0xff]  ;;  %v7197_v53 = vpack.c.bf16 %v2220_v1, %v2212_v3  ;;  %v2228_v15 = vld [vmem:[#allocation19 + $0xe30] sm:$0xff]  ;;  %v5036_v3 = vpack.c.bf16 %v2251_v62, %v2243_v10  ;;  %v2242_v1 = vld [vmem:[#allocation19 + $0xea0] sm:$0xff] }
 0x5cd   :  { %3097 = vmatmul.mubr.f32.gmra.mrb[100].mxu1 %v7787_v24  ;;  %5153 = vmatprep.subr.bf16.mxu0 %v7181_v36  ;;  %v7201_v18 = vpack.c.bf16 %v2237_v35, %v2229_v61  ;;  %v7793_v42 = vld [vmem:[#allocation60_spill] sm:$0xff]  ;;  %v7796_v62 = vld [vmem:[#allocation62_spill] sm:$0xff] }
 0x5ce   :  { %5027 = vmatpush1.bf16.msra.mxu1 %v5026_v21  ;;  %3102 = vmatprep.mubr.f32.mxu1 %v7789_v27  ;;  %7790 = vst [vmem:[#allocation36_spill] sm:$0xff] %v7197_v53  ;;  %v7791_v21 = vld [vmem:[#allocation58_spill] sm:$0xff]  ;;  %v2259_v35 = vld [vmem:[#allocation19 + $0xf28] sm:$0xff] }
 0x5cf   :  { %3419 = vmatmul.mubr.f32.gmra.mrb[132].mxu0 %v7787_v24  ;;  %5029 = vmatprep.subr.bf16.mxu1 %v5028_v63  ;;  %7792 = vst [vmem:[#allocation37_spill] sm:$0xff] %v7201_v18  ;;  %v2236_v24 = vld [vmem:[#allocation19 + $0xe70] sm:$0xff]  ;;  %v5034_v63 = vpack.c.bf16 %v2234_v16, %v2226_v34  ;;  %v2261_v10 = vld [vmem:[#allocation19 + $0xf38] sm:$0xff] }
 0x5d0   :  { %3424 = vmatprep.mubr.f32.mxu0 %v7789_v27  ;;  %5155 = vmatpush1.bf16.msra.mxu0 %v7187_v48  ;;  %v2253_v27 = vld [vmem:[#allocation19 + $0xef8] sm:$0xff]  ;;  %v2250_v48 = vld [vmem:[#allocation19 + $0xee0] sm:$0xff]  ;;  %v7207_v61 = vpack.c.bf16 %v2236_v24, %v2228_v15  ;;  %v2244_v34 = vld [vmem:[#allocation19 + $0xeb0] sm:$0xff] }
 0x5d1   :  { %3103 = vmatmul.mubr.f32.gmra.mrb[102].mxu1 %v7791_v21  ;;  %5157 = vmatprep.subr.bf16.mxu0 %v7191_v43  ;;  %v2267_v43 = vld [vmem:[#allocation19 + $0xf68] sm:$0xff]  ;;  %v7211_v16 = vpack.c.bf16 %v2253_v27, %v2245_v50  ;;  %v2258_v24 = vld [vmem:[#allocation19 + $0xf20] sm:$0xff] }
 0x5d2   :  { %5031 = vmatpush1.bf16.msra.mxu1 %v5030_v11  ;;  %3108 = vmatprep.mubr.f32.mxu1 %v7793_v42  ;;  %7794 = vst [vmem:[#allocation38_spill] sm:$0xff] %v7207_v61  ;;  %v7795_v11 = vld [vmem:[#allocation61_spill] sm:$0xff]  ;;  %v5040_v15 = vpack.c.bf16 %v2267_v43, %v2259_v35  ;;  %v2275_v27 = vld [vmem:[#allocation19 + $0xfa8] sm:$0xff] }
 0x5d3   :  { %3425 = vmatmul.mubr.f32.gmra.mrb[134].mxu0 %v7791_v21  ;;  %5033 = vmatprep.subr.bf16.mxu1 %v5032_v44  ;;  %v2252_v21 = vld [vmem:[#allocation19 + $0xef0] sm:$0xff]  ;;  %v5038_v44 = vpack.c.bf16 %v2250_v48, %v2242_v1  ;;  %v2277_v35 = vld [vmem:[#allocation19 + $0xfb8] sm:$0xff] }
 0x5d4   :  { %3430 = vmatprep.mubr.f32.mxu0 %v7793_v42  ;;  %5159 = vmatpush1.bf16.msra.mxu0 %v7197_v53  ;;  %v2269_v42 = vld [vmem:[#allocation19 + $0xf78] sm:$0xff]  ;;  %v2266_v53 = vld [vmem:[#allocation19 + $0xf60] sm:$0xff]  ;;  %v7217_v50 = vpack.c.bf16 %v2252_v21, %v2244_v34  ;;  %v2260_v1 = vld [vmem:[#allocation19 + $0xf30] sm:$0xff] }
 0x5d5   :  { %3109 = vmatmul.mubr.f32.gmra.mrb[104].mxu1 %v7795_v11  ;;  %5161 = vmatprep.subr.bf16.mxu0 %v7201_v18  ;;  %v2283_v18 = vld [vmem:[#allocation19 + $0xfe8] sm:$0xff]  ;;  %v7221_v48 = vpack.c.bf16 %v2269_v42, %v2261_v10  ;;  %v2274_v21 = vld [vmem:[#allocation19 + $0xfa0] sm:$0xff] }
 0x5d6   :  { %5035 = vmatpush1.bf16.msra.mxu1 %v5034_v63  ;;  %3114 = vmatprep.mubr.f32.mxu1 %v7796_v62  ;;  %v7797_v63 = vld [vmem:[#allocation63_spill] sm:$0xff]  ;;  %v7798_v43 = vld [vmem:[#allocation72_spill] sm:$0xff]  ;;  %v5044_v34 = vpack.c.bf16 %v2283_v18, %v2275_v27  ;;  %v7799_v42 = vld [vmem:[#allocation70_spill] sm:$0xff] }
 0x5d7   :  { %3431 = vmatmul.mubr.f32.gmra.mrb[136].mxu0 %v7795_v11  ;;  %5037 = vmatprep.subr.bf16.mxu1 %v5036_v3  ;;  %v2268_v11 = vld [vmem:[#allocation19 + $0xf70] sm:$0xff]  ;;  %v5042_v3 = vpack.c.bf16 %v2266_v53, %v2258_v24  ;;  %v7801_v27 = vld [vmem:[#allocation74_spill] sm:$0xff] }
 0x5d8   :  { %3436 = vmatprep.mubr.f32.mxu0 %v7796_v62  ;;  %5163 = vmatpush1.bf16.msra.mxu0 %v7207_v61  ;;  %v2285_v62 = vld [vmem:[#allocation19 + $0xff8] sm:$0xff]  ;;  %v2282_v61 = vld [vmem:[#allocation19 + $0xfe0] sm:$0xff]  ;;  %v7227_v10 = vpack.c.bf16 %v2268_v11, %v2260_v1  ;;  %v2276_v53 = vld [vmem:[#allocation19 + $0xfb0] sm:$0xff] }
 0x5d9   :  { %3115 = vmatmul.mubr.f32.gmra.mrb[106].mxu1 %v7797_v63  ;;  %5165 = vmatprep.subr.bf16.mxu0 %v7211_v16  ;;  %v2284_v24 = vld [vmem:[#allocation19 + $0xff0] sm:$0xff]  ;;  %v5046_v18 = vpack.c.bf16 %v2282_v61, %v2274_v21 }
 0x5da   :  { %5039 = vmatpush1.bf16.msra.mxu1 %v5038_v44  ;;  %3120 = vmatprep.mubr.f32.mxu1 %v7798_v43  ;;  %v7231_v44 = vpack.c.bf16 %v2285_v62, %v2277_v35 }
 0x5db   :  { %3437 = vmatmul.mubr.f32.gmra.mrb[138].mxu0 %v7797_v63  ;;  %5041 = vmatprep.subr.bf16.mxu1 %v5040_v15  ;;  %v7800_v63 = vld [vmem:[#allocation76_spill] sm:$0xff]  ;;  %v7237_v15 = vpack.c.bf16 %v2284_v24, %v2276_v53 }
 0x5dc   :  { %3442 = vmatprep.mubr.f32.mxu0 %v7798_v43  ;;  %5167 = vmatpush1.bf16.msra.mxu0 %v7217_v50 }
 0x5dd   :  { %3121 = vmatmul.mubr.f32.gmra.mrb[108].mxu1 %v7799_v42  ;;  %5169 = vmatprep.subr.bf16.mxu0 %v7221_v48 }
 0x5de   :  { %5043 = vmatpush1.bf16.msra.mxu1 %v5042_v3  ;;  %3126 = vmatprep.mubr.f32.mxu1 %v7800_v63 }
 0x5df   :  { %3443 = vmatmul.mubr.f32.gmra.mrb[140].mxu0 %v7799_v42  ;;  %5045 = vmatprep.subr.bf16.mxu1 %v5044_v34 }
 0x5e0   :  { %3448 = vmatprep.mubr.f32.mxu0 %v7800_v63  ;;  %5171 = vmatpush1.bf16.msra.mxu0 %v7227_v10 }
 0x5e1   :  { %3127 = vmatmul.mubr.f32.gmra.mrb[110].mxu1 %v7801_v27  ;;  %5173 = vmatprep.subr.bf16.mxu0 %v7231_v44 }
 0x5e2   :  { %5047 = vmatpush1.bf16.msra.mxu1 %v5046_v18  ;;  %3197 = vmatprep.mubr.f32.mxu1 %v6720_v47 }
 0x5e3   :  { %3449 = vmatmul.mubr.f32.gmra.mrb[142].mxu0 %v7801_v27  ;;  %5176 = vmatprep.subr.bf16.mxu1 %v7082_v37  ;;  %v7820_v37 = vld [vmem:[#allocation33_spill] sm:$0xff] }
 0x5e4   :  { %5175 = vmatpush1.bf16.msra.mxu0 %v7237_v15  ;;  %3519 = vmatprep.mubr.f32.mxu0 %v6720_v47  ;;  %v7810_v47 = vld [vmem:[#allocation38_spill] sm:$0xff] }
 0x5e5   :  { %3198 = vmatmul.mubr.f32.vlgmr.msra.gmra.mrb[80].mxu1 %v6713_v29 }
 0x5e6   :  { %5192 = vmatpush1.bf16.msra.mxu1 %v7087_v4  ;;  %3203 = vmatprep.mubr.f32.mxu1 %v6709_v28 }
 0x5e7   :  { %3520 = vmatmul.mubr.f32.vlgmr.msra.gmra.mrb[112].mxu0 %v6713_v29  ;;  %5177 = vmatprep.subr.bf16.mxu1 %v7091_v56  ;;  %v7808_v29 = vld [vmem:[#allocation37_spill] sm:$0xff] }
 0x5e8   :  { %3525 = vmatprep.mubr.f32.mxu0 %v6709_v28  ;;  %v7807_v28 = vld [vmem:[#allocation67_spill] sm:$0xff] }
 0x5e9   :  { %3204 = vmatmul.mubr.f32.gmra.mrb[82].mxu1 %v6704_v0 }
 0x5ea   :  { %5193 = vmatpush1.bf16.msra.mxu1 %v7097_v19  ;;  %3209 = vmatprep.mubr.f32.mxu1 %v6725_v32 }
 0x5eb   :  { %3526 = vmatmul.mubr.f32.gmra.mrb[114].mxu0 %v6704_v0  ;;  %5178 = vmatprep.subr.bf16.mxu1 %v7101_v25  ;;  %v7806_v0 = vld [vmem:[#allocation36_spill] sm:$0xff] }
 0x5ec   :  { %3531 = vmatprep.mubr.f32.mxu0 %v6725_v32  ;;  %v7811_v32 = vld [vmem:[#allocation69_spill] sm:$0xff] }
 0x5ed   :  { %3210 = vmatmul.mubr.f32.gmra.mrb[84].mxu1 %v6716_v40 }
 0x5ee   :  { %5194 = vmatpush1.bf16.msra.mxu1 %v7107_v55  ;;  %3215 = vmatprep.mubr.f32.mxu1 %v6738_v17 }
 0x5ef   :  { %3532 = vmatmul.mubr.f32.gmra.mrb[116].mxu0 %v6716_v40  ;;  %5179 = vmatprep.subr.bf16.mxu1 %v7111_v2  ;;  %v7809_v40 = vld [vmem:[#allocation66_spill] sm:$0xff] }
 0x5f0   :  { %3537 = vmatprep.mubr.f32.mxu0 %v6738_v17  ;;  %v7813_v17 = vld [vmem:[#allocation73_spill] sm:$0xff] }
 0x5f1   :  { %3216 = vmatmul.mubr.f32.gmra.mrb[86].mxu1 %v6732_v33 }
 0x5f2   :  { %5195 = vmatpush1.bf16.msra.mxu1 %v7117_v46  ;;  %3221 = vmatprep.mubr.f32.mxu1 %v6748_v12 }
 0x5f3   :  { %3538 = vmatmul.mubr.f32.gmra.mrb[118].mxu0 %v6732_v33  ;;  %5180 = vmatprep.subr.bf16.mxu1 %v7121_v20  ;;  %v7812_v33 = vld [vmem:[#allocation68_spill] sm:$0xff] }
 0x5f4   :  { %3543 = vmatprep.mubr.f32.mxu0 %v6748_v12  ;;  %v7802_v12 = vld [vmem:[#allocation59_spill] sm:$0xff] }
 0x5f5   :  { %3222 = vmatmul.mubr.f32.gmra.mrb[88].mxu1 %v6743_v6 }
 0x5f6   :  { %5196 = vmatpush1.bf16.msra.mxu1 %v7127_v52  ;;  %3227 = vmatprep.mubr.f32.mxu1 %v6758_v38 }
 0x5f7   :  { %3544 = vmatmul.mubr.f32.gmra.mrb[120].mxu0 %v6743_v6  ;;  %5181 = vmatprep.subr.bf16.mxu1 %v7131_v60  ;;  %v7814_v6 = vld [vmem:[#allocation71_spill] sm:$0xff] }
 0x5f8   :  { %3549 = vmatprep.mubr.f32.mxu0 %v6758_v38  ;;  %v7816_v38 = vld [vmem:[#allocation75_spill] sm:$0xff] }
 0x5f9   :  { %3228 = vmatmul.mubr.f32.gmra.mrb[90].mxu1 %v6753_v22 }
 0x5fa   :  { %5197 = vmatpush1.bf16.msra.mxu1 %v7137_v7  ;;  %3233 = vmatprep.mubr.f32.mxu1 %v6779_v30 }
 0x5fb   :  { %3550 = vmatmul.mubr.f32.gmra.mrb[122].mxu0 %v6753_v22  ;;  %5182 = vmatprep.subr.bf16.mxu1 %v7141_v51  ;;  %v7815_v22 = vld [vmem:[#allocation77_spill] sm:$0xff] }
 0x5fc   :  { %3555 = vmatprep.mubr.f32.mxu0 %v6779_v30  ;;  %v7803_v30 = vld [vmem:[#allocation65_spill] sm:$0xff] }
 0x5fd   :  { %3234 = vmatmul.mubr.f32.gmra.mrb[92].mxu1 %v6768_v14 }
 0x5fe   :  { %5198 = vmatpush1.bf16.msra.mxu1 %v7147_v59  ;;  %3239 = vmatprep.mubr.f32.mxu1 %v6793_v41 }
 0x5ff   :  { %3556 = vmatmul.mubr.f32.gmra.mrb[124].mxu0 %v6768_v14  ;;  %5183 = vmatprep.subr.bf16.mxu1 %v7151_v8  ;;  %v7339_v14 = vld [vmem:[#allocation20] sm:$0xff] }
 0x600   :  { %3561 = vmatprep.mubr.f32.mxu0 %v6793_v41  ;;  %v7804_v41 = vld [vmem:[#allocation35_spill] sm:$0xff]  ;;  %v7352_v4 = vrot.slane %v7339_v14, %v7820_v37 }
 0x601   :  { %3240 = vmatmul.mubr.f32.gmra.mrb[94].mxu1 %v7755_v13 }
 0x602   :  { %5199 = vmatpush1.bf16.msra.mxu1 %v7157_v39  ;;  %3245 = vmatprep.mubr.f32.mxu1 %v6836_v23 }
 0x603   :  { %3562 = vmatmul.mubr.f32.gmra.mrb[126].mxu0 %v7755_v13  ;;  %5184 = vmatprep.subr.bf16.mxu1 %v7161_v54 }
 0x604   :  { %3567 = vmatprep.mubr.f32.mxu0 %v6836_v23  ;;  %v7805_v23 = vld [vmem:[#allocation64_spill] sm:$0xff] }
 0x605   :  { %3246 = vmatmul.mubr.f32.gmra.mrb[96].mxu1 %v6823_v26 }
 0x606   :  { %5200 = vmatpush1.bf16.msra.mxu1 %v7167_v58  ;;  %3251 = vmatprep.mubr.f32.mxu1 %v6826_v57 }
 0x607   :  { %3568 = vmatmul.mubr.f32.gmra.mrb[128].mxu0 %v6823_v26  ;;  %5185 = vmatprep.subr.bf16.mxu1 %v7171_v45 }
 0x608   :  { %3573 = vmatprep.mubr.f32.mxu0 %v6826_v57 }
 0x609   :  { %3252 = vmatmul.mubr.f32.gmra.mrb[98].mxu1 %v6814_v31 }
 0x60a   :  { %5201 = vmatpush1.bf16.msra.mxu1 %v7177_v9  ;;  %3257 = vmatprep.mubr.f32.mxu1 %v6845_v5 }
 0x60b   :  { %3574 = vmatmul.mubr.f32.gmra.mrb[130].mxu0 %v6814_v31  ;;  %5186 = vmatprep.subr.bf16.mxu1 %v7181_v36  ;;  %v7817_v31 = vld [vmem:[#allocation32_spill] sm:$0xff] }
 0x60c   :  { %3579 = vmatprep.mubr.f32.mxu0 %v6845_v5  ;;  %v7343_v26 = vrot.slane %v7339_v14, %v7817_v31 }
 0x60d   :  { %3258 = vmatmul.mubr.f32.gmra.mrb[100].mxu1 %v6829_v49 }
 0x60e   :  { %5202 = vmatpush1.bf16.msra.mxu1 %v7802_v12  ;;  %3263 = vmatprep.mubr.f32.mxu1 %v7803_v30 }
 0x60f   :  { %3580 = vmatmul.mubr.f32.gmra.mrb[132].mxu0 %v6829_v49  ;;  %5187 = vmatprep.subr.bf16.mxu1 %v7804_v41  ;;  %v7818_v49 = vld [vmem:[#allocation31_spill] sm:$0xff] }
 0x610   :  { %3585 = vmatprep.mubr.f32.mxu0 %v7803_v30  ;;  %v7819_v5 = vsub.s32 2, %v7818_v49  ;;  %v7821_v25 = vsub.s32 3, %v7818_v49 }
 0x611   :  { %3264 = vmatmul.mubr.f32.gmra.mrb[102].mxu1 %v7805_v23 }
 0x612   :  { %5203 = vmatpush1.bf16.msra.mxu1 %v7806_v0  ;;  %3269 = vmatprep.mubr.f32.mxu1 %v7807_v28  ;;  %v7348_v13 = vrot.slane %v7339_v14, %v7819_v5  ;;  %v7357_v55 = vrot.slane %v7339_v14, %v7821_v25 }
 0x613   :  { %3586 = vmatmul.mubr.f32.gmra.mrb[134].mxu0 %v7805_v23  ;;  %5188 = vmatprep.subr.bf16.mxu1 %v7808_v29 }
 0x615   :  { %3270 = vmatmul.mubr.f32.gmra.mrb[104].mxu1 %v7809_v40 }
 0x616   :  { %5204 = vmatpush1.bf16.msra.mxu1 %v7810_v47  ;;  %3275 = vmatprep.mubr.f32.mxu1 %v7811_v32 }
 0x617   :  { %5189 = vmatprep.subr.bf16.mxu1 %v7211_v16 }
 0x619   :  { %3276 = vmatmul.mubr.f32.gmra.mrb[106].mxu1 %v7812_v33 }
 0x61a   :  { %5205 = vmatpush1.bf16.msra.mxu1 %v7217_v50  ;;  %3281 = vmatprep.mubr.f32.mxu1 %v7813_v17 }
 0x61b   :  { %5190 = vmatprep.subr.bf16.mxu1 %v7221_v48 }
 0x61d   :  { %3282 = vmatmul.mubr.f32.gmra.mrb[108].mxu1 %v7814_v6 }
 0x61e   :  { %5206 = vmatpush1.bf16.msra.mxu1 %v7227_v10  ;;  %3287 = vmatprep.mubr.f32.mxu1 %v7815_v22 }
 0x61f   :  { %5191 = vmatprep.subr.bf16.mxu1 %v7231_v44 }
 0x621   :  { %3288 = vmatmul.mubr.f32.gmra.mrb[110].mxu1 %v7816_v38 }
 0x622   :  { %5207 = vmatpush1.bf16.msra.mxu1 %v7237_v15  ;;  %3591 = vmatprep.mubr.f32.mxu1 %v7807_v28 }
 0x625   :  { %3592 = vmatmul.mubr.f32.vlgmr.msra.gmra.mrb[112].mxu1 %v7809_v40 }
 0x626   :  { %3597 = vmatprep.mubr.f32.mxu1 %v7811_v32 }
 0x629   :  { %3598 = vmatmul.mubr.f32.gmra.mrb[114].mxu1 %v7812_v33 }
 0x62a   :  { %3603 = vmatprep.mubr.f32.mxu1 %v7813_v17 }
 0x62d   :  { %3604 = vmatmul.mubr.f32.gmra.mrb[116].mxu1 %v7814_v6 }
 0x62e   :  { %3609 = vmatprep.mubr.f32.mxu1 %v7815_v22 }
 0x631   :  { %3610 = vmatmul.mubr.f32.gmra.mrb[118].mxu1 %v7816_v38 }
 0x637   :  { %v2555_v57 = vpop.f32.mrb[48].mxu1 }
 0x638   :  { %v2877_v56 = vpop.f32.mrb[80].mxu0  ;;  %v2557_v19 = vpop.f32.mrb[49].mxu1  ;;  %v5208_v46 = vadd.f32 %v2555_v57, %v7343_v26 }
 0x639   :  { %v2879_v2 = vpop.f32.mrb[81].mxu0  ;;  %v5240_v20 = vadd.f32 %v2877_v56, %v7348_v13  ;;  %v5209_v52 = vadd.f32 %v2557_v19, %v7352_v4 }
 0x63a   :  { %v5241_v7 = vadd.f32 %v2879_v2, %v7357_v55  ;;  %v3616_v45 = vmax.f32 %v5208_v46, 0.0 }
 0x63b   :  { %v2561_v60 = vpop.f32.mrb[50].mxu1  ;;  %v3618_v61 = vmax.f32 %v5240_v20, 0.0  ;;  %v3617_v16 = vmax.f32 %v5209_v52, 0.0 }
 0x63c   :  { %v5210_v51 = vadd.f32 %v2561_v60, %v7343_v26  ;;  %v2883_v59 = vpop.f32.mrb[82].mxu0  ;;  %v2563_v8 = vpop.f32.mrb[51].mxu1  ;;  %v3619_v11 = vmax.f32 %v5241_v7, 0.0 }
 0x63d   :  { %v5242_v39 = vadd.f32 %v2883_v59, %v7348_v13  ;;  %v5211_v54 = vadd.f32 %v2563_v8, %v7352_v4  ;;  %v2885_v58 = vpop.f32.mrb[83].mxu0 }
 0x63e   :  { %v3624_v9 = vmax.f32 %v5210_v51, 0.0  ;;  %v5243_v36 = vadd.f32 %v2885_v58, %v7357_v55 }
 0x63f   :  { %v3626_v50 = vmax.f32 %v5242_v39, 0.0  ;;  %v3625_v48 = vmax.f32 %v5211_v54, 0.0  ;;  %v2567_v1 = vpop.f32.mrb[52].mxu1 }
 0x640   :  { %v3744_v43 = vmax.f32 %v3616_v45, %v3624_v9  ;;  %v3627_v3 = vmax.f32 %v5243_v36, 0.0  ;;  %v5212_v35 = vadd.f32 %v2567_v1, %v7343_v26  ;;  %v2889_v62 = vpop.f32.mrb[84].mxu0  ;;  %v2569_v34 = vpop.f32.mrb[53].mxu1 }
 0x641   :  { %v3770_v21 = vmax.f32 %v3618_v61, %v3626_v50  ;;  %v3757_v10 = vmax.f32 %v3617_v16, %v3625_v48  ;;  %v5244_v42 = vadd.f32 %v2889_v62, %v7348_v13  ;;  %v5213_v44 = vadd.f32 %v2569_v34, %v7352_v4  ;;  %v2891_v53 = vpop.f32.mrb[85].mxu0 }
 0x642   :  { %v3783_v24 = vmax.f32 %v3619_v11, %v3627_v3  ;;  %v3632_v63 = vmax.f32 %v5212_v35, 0.0  ;;  %v5245_v18 = vadd.f32 %v2891_v53, %v7357_v55 }
 0x643   :  { %v3634_v15 = vmax.f32 %v5244_v42, 0.0  ;;  %v3633_v27 = vmax.f32 %v5213_v44, 0.0  ;;  %v2573_v12 = vpop.f32.mrb[54].mxu1 }
 0x644   :  { %v3745_v30 = vmax.f32 %v3744_v43, %v3632_v63  ;;  %v3635_v41 = vmax.f32 %v5245_v18, 0.0  ;;  %v5214_v23 = vadd.f32 %v2573_v12, %v7343_v26  ;;  %v2895_v0 = vpop.f32.mrb[86].mxu0  ;;  %v2575_v28 = vpop.f32.mrb[55].mxu1 }
 0x645   :  { %v3771_v29 = vmax.f32 %v3770_v21, %v3634_v15  ;;  %v3758_v40 = vmax.f32 %v3757_v10, %v3633_v27  ;;  %v5246_v47 = vadd.f32 %v2895_v0, %v7348_v13  ;;  %v5215_v32 = vadd.f32 %v2575_v28, %v7352_v4  ;;  %v2897_v33 = vpop.f32.mrb[87].mxu0 }
 0x646   :  { %v3784_v17 = vmax.f32 %v3783_v24, %v3635_v41  ;;  %v3640_v6 = vmax.f32 %v5214_v23, 0.0  ;;  %v5247_v22 = vadd.f32 %v2897_v33, %v7357_v55 }
 0x647   :  { %v3642_v38 = vmax.f32 %v5246_v47, 0.0  ;;  %v3641_v31 = vmax.f32 %v5215_v32, 0.0  ;;  %v2579_v57 = vpop.f32.mrb[56].mxu1 }
 0x648   :  { %v3746_v5 = vmax.f32 %v3745_v30, %v3640_v6  ;;  %v3643_v37 = vmax.f32 %v5247_v22, 0.0  ;;  %v5216_v56 = vadd.f32 %v2579_v57, %v7343_v26  ;;  %v2901_v19 = vpop.f32.mrb[88].mxu0  ;;  %v2581_v25 = vpop.f32.mrb[57].mxu1 }
 0x649   :  { %v3772_v2 = vmax.f32 %v3771_v29, %v3642_v38  ;;  %v3759_v46 = vmax.f32 %v3758_v40, %v3641_v31  ;;  %v5248_v20 = vadd.f32 %v2901_v19, %v7348_v13  ;;  %v5217_v52 = vadd.f32 %v2581_v25, %v7352_v4  ;;  %v2903_v60 = vpop.f32.mrb[89].mxu0 }
 0x64a   :  { %v3785_v7 = vmax.f32 %v3784_v17, %v3643_v37  ;;  %v3648_v51 = vmax.f32 %v5216_v56, 0.0  ;;  %v5249_v59 = vadd.f32 %v2903_v60, %v7357_v55 }
 0x64b   :  { %v3650_v8 = vmax.f32 %v5248_v20, 0.0  ;;  %v3649_v39 = vmax.f32 %v5217_v52, 0.0  ;;  %v2585_v54 = vpop.f32.mrb[58].mxu1 }
 0x64c   :  { %v3747_v58 = vmax.f32 %v3746_v5, %v3648_v51  ;;  %v3651_v45 = vmax.f32 %v5249_v59, 0.0  ;;  %v5218_v9 = vadd.f32 %v2585_v54, %v7343_v26  ;;  %v2907_v36 = vpop.f32.mrb[90].mxu0  ;;  %v2587_v61 = vpop.f32.mrb[59].mxu1 }
 0x64d   :  { %v3773_v16 = vmax.f32 %v3772_v2, %v3650_v8  ;;  %v3760_v50 = vmax.f32 %v3759_v46, %v3649_v39  ;;  %v5250_v48 = vadd.f32 %v2907_v36, %v7348_v13  ;;  %v5219_v1 = vadd.f32 %v2587_v61, %v7352_v4  ;;  %v2909_v11 = vpop.f32.mrb[91].mxu0 }
 0x64e   :  { %v3786_v43 = vmax.f32 %v3785_v7, %v3651_v45  ;;  %v3656_v3 = vmax.f32 %v5218_v9, 0.0  ;;  %v5251_v35 = vadd.f32 %v2909_v11, %v7357_v55 }
 0x64f   :  { %v3658_v62 = vmax.f32 %v5250_v48, 0.0  ;;  %v3657_v34 = vmax.f32 %v5219_v1, 0.0  ;;  %v2591_v21 = vpop.f32.mrb[60].mxu1 }
 0x650   :  { %v3748_v10 = vmax.f32 %v3747_v58, %v3656_v3  ;;  %v3659_v42 = vmax.f32 %v5251_v35, 0.0  ;;  %v5220_v44 = vadd.f32 %v2591_v21, %v7343_v26  ;;  %v2913_v53 = vpop.f32.mrb[92].mxu0  ;;  %v2593_v24 = vpop.f32.mrb[61].mxu1 }
 0x651   :  { %v3774_v63 = vmax.f32 %v3773_v16, %v3658_v62  ;;  %v3761_v18 = vmax.f32 %v3760_v50, %v3657_v34  ;;  %v5252_v15 = vadd.f32 %v2913_v53, %v7348_v13  ;;  %v5221_v27 = vadd.f32 %v2593_v24, %v7352_v4  ;;  %v2915_v12 = vpop.f32.mrb[93].mxu0 }
 0x652   :  { %v3787_v30 = vmax.f32 %v3786_v43, %v3659_v42  ;;  %v3664_v41 = vmax.f32 %v5220_v44, 0.0  ;;  %v5253_v23 = vadd.f32 %v2915_v12, %v7357_v55 }
 0x653   :  { %v3666_v0 = vmax.f32 %v5252_v15, 0.0  ;;  %v3665_v28 = vmax.f32 %v5221_v27, 0.0  ;;  %v2597_v29 = vpop.f32.mrb[62].mxu1 }
 0x654   :  { %v3749_v40 = vmax.f32 %v3748_v10, %v3664_v41  ;;  %v3667_v47 = vmax.f32 %v5253_v23, 0.0  ;;  %v5222_v32 = vadd.f32 %v2597_v29, %v7343_v26  ;;  %v2919_v33 = vpop.f32.mrb[94].mxu0  ;;  %v2599_v17 = vpop.f32.mrb[63].mxu1 }
 0x655   :  { %v3775_v6 = vmax.f32 %v3774_v63, %v3666_v0  ;;  %v3762_v22 = vmax.f32 %v3761_v18, %v3665_v28  ;;  %v5254_v38 = vadd.f32 %v2919_v33, %v7348_v13  ;;  %v5223_v31 = vadd.f32 %v2599_v17, %v7352_v4  ;;  %v2921_v57 = vpop.f32.mrb[95].mxu0 }
 0x656   :  { %v3788_v5 = vmax.f32 %v3787_v30, %v3667_v47  ;;  %v3672_v37 = vmax.f32 %v5222_v32, 0.0  ;;  %v5255_v56 = vadd.f32 %v2921_v57, %v7357_v55 }
 0x657   :  { %v3674_v19 = vmax.f32 %v5254_v38, 0.0  ;;  %v3673_v25 = vmax.f32 %v5223_v31, 0.0  ;;  %v2603_v2 = vpop.f32.mrb[64].mxu1 }
 0x658   :  { %v7391_v46 = vmax.f32 %v3749_v40, %v3672_v37  ;;  %v3675_v20 = vmax.f32 %v5255_v56, 0.0  ;;  %v2925_v52 = vpop.f32.mrb[96].mxu0  ;;  %v2605_v60 = vpop.f32.mrb[65].mxu1  ;;  %v5224_v39 = vadd.f32 %v2603_v2, %v7343_v26 }
 0x659   :  { %v7393_v7 = vmax.f32 %v3775_v6, %v3674_v19  ;;  %v7395_v51 = vmax.f32 %v3762_v22, %v3673_v25  ;;  %v2927_v59 = vpop.f32.mrb[97].mxu0  ;;  %v5256_v54 = vadd.f32 %v2925_v52, %v7348_v13  ;;  %v5225_v58 = vadd.f32 %v2605_v60, %v7352_v4 }
 0x65a   :  { %v7397_v8 = vmax.f32 %v3788_v5, %v3675_v20  ;;  %v5257_v9 = vadd.f32 %v2927_v59, %v7357_v55  ;;  %v3680_v11 = vmax.f32 %v5224_v39, 0.0 }
 0x65b   :  { %v2609_v45 = vpop.f32.mrb[66].mxu1  ;;  %v3682_v35 = vmax.f32 %v5256_v54, 0.0  ;;  %v3681_v62 = vmax.f32 %v5225_v58, 0.0 }
 0x65c   :  { %v5226_v36 = vadd.f32 %v2609_v45, %v7343_v26  ;;  %v2931_v61 = vpop.f32.mrb[98].mxu0  ;;  %v2611_v16 = vpop.f32.mrb[67].mxu1  ;;  %v3683_v42 = vmax.f32 %v5257_v9, 0.0 }
 0x65d   :  { %v5258_v50 = vadd.f32 %v2931_v61, %v7348_v13  ;;  %v5227_v48 = vadd.f32 %v2611_v16, %v7352_v4  ;;  %v2933_v1 = vpop.f32.mrb[99].mxu0 }
 0x65e   :  { %v3688_v43 = vmax.f32 %v5226_v36, 0.0  ;;  %v5259_v3 = vadd.f32 %v2933_v1, %v7357_v55 }
 0x65f   :  { %v3690_v34 = vmax.f32 %v5258_v50, 0.0  ;;  %v3689_v21 = vmax.f32 %v5227_v48, 0.0  ;;  %v2615_v10 = vpop.f32.mrb[68].mxu1 }
 0x660   :  { %v3939_v44 = vmax.f32 %v3680_v11, %v3688_v43  ;;  %v3691_v53 = vmax.f32 %v5259_v3, 0.0  ;;  %v2937_v24 = vpop.f32.mrb[100].mxu0  ;;  %v2617_v63 = vpop.f32.mrb[69].mxu1  ;;  %v5228_v30 = vadd.f32 %v2615_v10, %v7343_v26 }
 0x661   :  { %v3965_v18 = vmax.f32 %v3682_v35, %v3690_v34  ;;  %v3952_v15 = vmax.f32 %v3681_v62, %v3689_v21  ;;  %v2939_v27 = vpop.f32.mrb[101].mxu0  ;;  %v5260_v41 = vadd.f32 %v2937_v24, %v7348_v13  ;;  %v5229_v23 = vadd.f32 %v2617_v63, %v7352_v4 }
 0x662   :  { %v3978_v12 = vmax.f32 %v3683_v42, %v3691_v53  ;;  %v3696_v28 = vmax.f32 %v5228_v30, 0.0  ;;  %v5261_v29 = vadd.f32 %v2939_v27, %v7357_v55 }
 0x663   :  { %v2621_v0 = vpop.f32.mrb[70].mxu1  ;;  %v3698_v32 = vmax.f32 %v5260_v41, 0.0  ;;  %v3697_v33 = vmax.f32 %v5229_v23, 0.0 }
 0x664   :  { %v2943_v40 = vpop.f32.mrb[102].mxu0  ;;  %v2623_v47 = vpop.f32.mrb[71].mxu1  ;;  %v3940_v6 = vmax.f32 %v3939_v44, %v3696_v28  ;;  %v3699_v22 = vmax.f32 %v5261_v29, 0.0  ;;  %v5230_v38 = vadd.f32 %v2621_v0, %v7343_v26 }
 0x665   :  { %v2945_v17 = vpop.f32.mrb[103].mxu0  ;;  %v3966_v31 = vmax.f32 %v3965_v18, %v3698_v32  ;;  %v3953_v57 = vmax.f32 %v3952_v15, %v3697_v33  ;;  %v5262_v5 = vadd.f32 %v2943_v40, %v7348_v13  ;;  %v5231_v37 = vadd.f32 %v2623_v47, %v7352_v4 }
 0x666   :  { %v3979_v19 = vmax.f32 %v3978_v12, %v3699_v22  ;;  %v3704_v25 = vmax.f32 %v5230_v38, 0.0  ;;  %v5263_v2 = vadd.f32 %v2945_v17, %v7357_v55  ;;  %v3751_v22 = vrot.slane %v7391_v46, 4 }
 0x667   :  { %v2627_v56 = vpop.f32.mrb[72].mxu1  ;;  %v3706_v59 = vmax.f32 %v5262_v5, 0.0  ;;  %v3705_v39 = vmax.f32 %v5231_v37, 0.0  ;;  %v3777_v5 = vrot.slane %v7393_v7, 4  ;;  %v3764_v37 = vrot.slane %v7395_v51, 4 }
 0x668   :  { %v5232_v20 = vadd.f32 %v2627_v56, %v7343_v26  ;;  %v2949_v52 = vpop.f32.mrb[104].mxu0  ;;  %v2629_v60 = vpop.f32.mrb[73].mxu1  ;;  %v3941_v9 = vmax.f32 %v3940_v6, %v3704_v25  ;;  %v3707_v36 = vmax.f32 %v5263_v2, 0.0  ;;  %v3790_v2 = vrot.slane %v7397_v8, 4 }
 0x669   :  { %v5264_v54 = vadd.f32 %v2949_v52, %v7348_v13  ;;  %v5233_v58 = vadd.f32 %v2629_v60, %v7352_v4  ;;  %v2951_v45 = vpop.f32.mrb[105].mxu0  ;;  %v3967_v50 = vmax.f32 %v3966_v31, %v3706_v59  ;;  %v3954_v48 = vmax.f32 %v3953_v57, %v3705_v39 }
 0x66a   :  { %v3712_v61 = vmax.f32 %v5232_v20, 0.0  ;;  %v5265_v16 = vadd.f32 %v2951_v45, %v7357_v55  ;;  %v3980_v3 = vmax.f32 %v3979_v19, %v3707_v36 }
 0x66b   :  { %v3714_v1 = vmax.f32 %v5264_v54, 0.0  ;;  %v3713_v11 = vmax.f32 %v5233_v58, 0.0  ;;  %v2633_v43 = vpop.f32.mrb[74].mxu1 }
 0x66c   :  { %v3942_v35 = vmax.f32 %v3941_v9, %v3712_v61  ;;  %v3715_v62 = vmax.f32 %v5265_v16, 0.0  ;;  %v5234_v34 = vadd.f32 %v2633_v43, %v7343_v26  ;;  %v2955_v21 = vpop.f32.mrb[106].mxu0  ;;  %v2635_v10 = vpop.f32.mrb[75].mxu1  ;;  %v3752_v61 = vmax.f32 %v7391_v46, %v3751_v22 }
 0x66d   :  { %v3968_v42 = vmax.f32 %v3967_v50, %v3714_v1  ;;  %v3955_v44 = vmax.f32 %v3954_v48, %v3713_v11  ;;  %v5266_v53 = vadd.f32 %v2955_v21, %v7348_v13  ;;  %v5235_v24 = vadd.f32 %v2635_v10, %v7352_v4  ;;  %v2957_v63 = vpop.f32.mrb[107].mxu0 }
 0x66e   :  { %v3981_v18 = vmax.f32 %v3980_v3, %v3715_v62  ;;  %v3720_v15 = vmax.f32 %v5234_v34, 0.0  ;;  %v5267_v27 = vadd.f32 %v2957_v63, %v7357_v55  ;;  %v3778_v1 = vmax.f32 %v7393_v7, %v3777_v5 }
 0x66f   :  { %v3722_v12 = vmax.f32 %v5266_v53, 0.0  ;;  %v3721_v30 = vmax.f32 %v5235_v24, 0.0  ;;  %v2639_v41 = vpop.f32.mrb[76].mxu1  ;;  %v3765_v11 = vmax.f32 %v7395_v51, %v3764_v37  ;;  %v3791_v3 = vmax.f32 %v7397_v8, %v3790_v2 }
 0x670   :  { %v3943_v23 = vmax.f32 %v3942_v35, %v3720_v15  ;;  %v3723_v0 = vmax.f32 %v5267_v27, 0.0  ;;  %v5236_v28 = vadd.f32 %v2639_v41, %v7343_v26  ;;  %v2961_v29 = vpop.f32.mrb[108].mxu0  ;;  %v2641_v40 = vpop.f32.mrb[77].mxu1  ;;  %v3779_v46 = vrot.slane %v3778_v1, 2 }
 0x671   :  { %v3969_v47 = vmax.f32 %v3968_v42, %v3722_v12  ;;  %v3956_v32 = vmax.f32 %v3955_v44, %v3721_v30  ;;  %v5268_v33 = vadd.f32 %v2961_v29, %v7348_v13  ;;  %v5237_v17 = vadd.f32 %v2641_v40, %v7352_v4  ;;  %v2963_v6 = vpop.f32.mrb[109].mxu0 }
 0x672   :  { %v3982_v38 = vmax.f32 %v3981_v18, %v3723_v0  ;;  %v3728_v31 = vmax.f32 %v5236_v28, 0.0  ;;  %v5269_v57 = vadd.f32 %v2963_v6, %v7357_v55  ;;  %v3766_v42 = vrot.slane %v3765_v11, 2 }
 0x673   :  { %v3730_v56 = vmax.f32 %v5268_v33, 0.0  ;;  %v3729_v19 = vmax.f32 %v5237_v17, 0.0  ;;  %v2645_v25 = vpop.f32.mrb[78].mxu1  ;;  %v3780_v8 = vmax.f32 %v3778_v1, %v3779_v46 }
 0x674   :  { %v3944_v20 = vmax.f32 %v3943_v23, %v3728_v31  ;;  %v3731_v52 = vmax.f32 %v5269_v57, 0.0  ;;  %v5238_v60 = vadd.f32 %v2645_v25, %v7343_v26  ;;  %v2967_v59 = vpop.f32.mrb[110].mxu0  ;;  %v2647_v39 = vpop.f32.mrb[79].mxu1  ;;  %v3767_v12 = vmax.f32 %v3765_v11, %v3766_v42 }
 0x675   :  { %v3970_v54 = vmax.f32 %v3969_v47, %v3730_v56  ;;  %v3957_v58 = vmax.f32 %v3956_v32, %v3729_v19  ;;  %v5270_v45 = vadd.f32 %v2967_v59, %v7348_v13  ;;  %v5239_v9 = vadd.f32 %v2647_v39, %v7352_v4  ;;  %v2969_v36 = vpop.f32.mrb[111].mxu0 }
 0x676   :  { %v3983_v16 = vmax.f32 %v3982_v38, %v3731_v52  ;;  %v3736_v50 = vmax.f32 %v5238_v60, 0.0  ;;  %v5271_v48 = vadd.f32 %v2969_v36, %v7357_v55  ;;  %v3753_v4 = vrot.slane %v3752_v61, 2 }
 0x677   :  { %v3738_v26 = vmax.f32 %v5270_v45, 0.0  ;;  %v3737_v43 = vmax.f32 %v5239_v9, 0.0  ;;  %v3792_v55 = vrot.slane %v3791_v3, 2  ;;  %v3781_v17 = vrot.slane %v3780_v8, 1 }
 0x678   :  { %v3945_v35 = vmax.f32 %v3944_v20, %v3736_v50  ;;  %v3739_v62 = vmax.f32 %v5271_v48, 0.0  ;;  %v3754_v18 = vmax.f32 %v3752_v61, %v3753_v4  ;;  %v3768_v6 = vrot.slane %v3767_v12, 1  ;;  %v7822_v50 = vld [vmem:[#allocation34_spill] sm:$0xff] }
 0x679   :  { %v3971_v13 = vmax.f32 %v3970_v54, %v3738_v26  ;;  %v3958_v34 = vmax.f32 %v3957_v58, %v3737_v43  ;;  %v3793_v23 = vmax.f32 %v3791_v3, %v3792_v55  ;;  %v3782_v20 = vmax.f32 %v3780_v8, %v3781_v17 }
 0x67a   :  { %v3946_v21 = vrot.slane %v3945_v35, 4  ;;  %v3984_v10 = vmax.f32 %v3983_v16, %v3739_v62  ;;  %v3755_v47 = vrot.slane %v3754_v18, 1  ;;  %v3769_v52 = vmax.f32 %v3767_v12, %v3768_v6 }
 0x67b   :  { %v3972_v44 = vrot.slane %v3971_v13, 4  ;;  %v3959_v53 = vrot.slane %v3958_v34, 4  ;;  %v3794_v31 = vrot.slane %v3793_v23, 1  ;;  %v2310_v4 = vsub.s32 5, %v7818_v49 }
 0x67c   :  { %v3947_v24 = vmax.f32 %v3945_v35, %v3946_v21  ;;  %v3985_v7 = vrot.slane %v3984_v10, 4  ;;  %v3756_v19 = vmax.f32 %v3754_v18, %v3755_v47 }
 0x67d   :  { %v3973_v63 = vmax.f32 %v3971_v13, %v3972_v44  ;;  %v3960_v51 = vmax.f32 %v3958_v34, %v3959_v53  ;;  %v3795_v39 = vmax.f32 %v3793_v23, %v3794_v31  ;;  %v2306_v34 = vsub.s32 4, %v7818_v49 }
 0x67e   :  { %v3948_v15 = vrot.slane %v3947_v24, 2  ;;  %v3986_v27 = vmax.f32 %v3984_v10, %v3985_v7  ;;  %v2314_v10 = vsub.s32 6, %v7818_v49  ;;  %v2318_v44 = vsub.s32 7, %v7818_v49 }
 0x67f   :  { %v3974_v30 = vrot.slane %v3973_v63, 2  ;;  %v3961_v41 = vrot.slane %v3960_v51, 2  ;;  %v7465_v42 = vrot.slane %v7339_v14, %v2306_v34  ;;  %v7469_v55 = vrot.slane %v7339_v14, %v2310_v4 }
 0x680   :  { %v3949_v0 = vmax.f32 %v3947_v24, %v3948_v15  ;;  %v3987_v28 = vrot.slane %v3986_v27, 2  ;;  %v7476_v15 = vrot.slane %v7339_v14, %v2318_v44 }
 0x681   :  { %v3975_v29 = vmax.f32 %v3973_v63, %v3974_v30  ;;  %v3962_v40 = vmax.f32 %v3960_v51, %v3961_v41  ;;  %v7472_v63 = vrot.slane %v7339_v14, %v2314_v10 }
 0x682   :  { %v3950_v32 = vrot.slane %v3949_v0, 1  ;;  %v3988_v33 = vmax.f32 %v3986_v27, %v3987_v28 }
 0x683   :  { %v3976_v22 = vrot.slane %v3975_v29, 1  ;;  %v3963_v38 = vrot.slane %v3962_v40, 1 }
 0x684   :  { %v3951_v57 = vmax.f32 %v3949_v0, %v3950_v32  ;;  %v3989_v5 = vrot.slane %v3988_v33, 1 }
 0x685   :  { %v3977_v37 = vmax.f32 %v3975_v29, %v3976_v22  ;;  %v3964_v56 = vmax.f32 %v3962_v40, %v3963_v38 }
 0x686   :  { %v4149_v25 = vrot.slane %v3951_v57, 7  ;;  %v3990_v2 = vmax.f32 %v3988_v33, %v3989_v5 }
 0x687   :  { %v4151_v60 = vrot.slane %v3977_v37, 7  ;;  %v4150_v59 = vrot.slane %v3964_v56, 7 }
 0x688   :  { %v4180_v54 = vsel %vm4179_vm1, %v3756_v19, %v4149_v25  ;;  %v4152_v58 = vrot.slane %v3990_v2, 7 }
 0x689   :  { %v4182_v45 = vsel %vm4179_vm1, %v3782_v20, %v4151_v60  ;;  %v4181_v9 = vsel %vm4179_vm1, %v3769_v52, %v4150_v59 }
 0x68a   :  { %v4183_v36 = vsel %vm4179_vm1, %v3795_v39, %v4152_v58  ;;  %v4210_v61 = vcombine.low %v4180_v54, %v4181_v9 }
 0x68b   :  { %v4211_v16 = vcombine.low %v4182_v45, %v4183_v36 }
 0x68c   :  { %v4218_v48 = vrot.slane %v4210_v61, %v7822_v50 }
 0x68d   :  { %v4225_v1 = vrot.slane %v4211_v16, %v7822_v50 }
 0x68f   :  { %v4226_v11 = vcombine.low %v4218_v48, %v4225_v1 }
 0x691   :  { %4281 = vst [vmem:[#allocation22] sm:$0xff] %v4226_v11 }
 0x6aa   :  { %v7445_v26 = vpop.f32.mrb[136].mxu0 }
 0x6ab   :  { %v7447_v43 = vpop.f32.mrb[137].mxu0 }
 0x6ae   :  { %v7449_v3 = vpop.f32.mrb[138].mxu0 }
 0x6af   :  { %v7451_v35 = vpop.f32.mrb[139].mxu0 }
 0x6b2   :  { %v7453_v62 = vpop.f32.mrb[140].mxu0 }
 0x6b3   :  { %v7455_v13 = vpop.f32.mrb[141].mxu0 }
 0x6b6   :  { %v7459_v21 = vpop.f32.mrb[142].mxu0 }
 0x6b7   :  { %v7462_v46 = vpop.f32.mrb[143].mxu0 }
 0x6b8   :  { %v3199_v53 = vpop.f32.mrb[80].mxu1 }
 0x6b9   :  { %v3201_v24 = vpop.f32.mrb[81].mxu1  ;;  %v5272_v51 = vadd.f32 %v3199_v53, %v7465_v42 }
 0x6ba   :  { %v3521_v7 = vpop.f32.mrb[112].mxu0  ;;  %v5273_v27 = vadd.f32 %v3201_v24, %v7469_v55 }
 0x6bb   :  { %v3523_v18 = vpop.f32.mrb[113].mxu0  ;;  %v5304_v49 = vadd.f32 %v3521_v7, %v7472_v63  ;;  %v3620_v28 = vmax.f32 %v5272_v51, 0.0 }
 0x6bc   :  { %v3205_v8 = vpop.f32.mrb[82].mxu1  ;;  %v5305_v41 = vadd.f32 %v3523_v18, %v7476_v15  ;;  %v3621_v14 = vmax.f32 %v5273_v27, 0.0 }
 0x6bd   :  { %v5274_v12 = vadd.f32 %v3205_v8, %v7465_v42  ;;  %v3207_v30 = vpop.f32.mrb[83].mxu1  ;;  %v3622_v6 = vmax.f32 %v5304_v49, 0.0 }
 0x6be   :  { %v3527_v23 = vpop.f32.mrb[114].mxu0  ;;  %v5275_v0 = vadd.f32 %v3207_v30, %v7469_v55  ;;  %v3623_v5 = vmax.f32 %v5305_v41, 0.0 }
 0x6bf   :  { %v3628_v29 = vmax.f32 %v5274_v12, 0.0  ;;  %v5306_v40 = vadd.f32 %v3527_v23, %v7472_v63  ;;  %v3529_v47 = vpop.f32.mrb[115].mxu0 }
 0x6c0   :  { %v3629_v32 = vmax.f32 %v5275_v0, 0.0  ;;  %v5307_v33 = vadd.f32 %v3529_v47, %v7476_v15  ;;  %v3211_v17 = vpop.f32.mrb[84].mxu1 }
 0x6c1   :  { %v3796_v22 = vmax.f32 %v3620_v28, %v3628_v29  ;;  %v3630_v38 = vmax.f32 %v5306_v40, 0.0  ;;  %v5276_v31 = vadd.f32 %v3211_v17, %v7465_v42  ;;  %v3213_v57 = vpop.f32.mrb[85].mxu1 }
 0x6c2   :  { %v3809_v37 = vmax.f32 %v3621_v14, %v3629_v32  ;;  %v3631_v56 = vmax.f32 %v5307_v33, 0.0  ;;  %v3533_v19 = vpop.f32.mrb[116].mxu0  ;;  %v5277_v25 = vadd.f32 %v3213_v57, %v7469_v55 }
 0x6c3   :  { %v3822_v2 = vmax.f32 %v3622_v6, %v3630_v38  ;;  %v3636_v20 = vmax.f32 %v5276_v31, 0.0  ;;  %v5308_v52 = vadd.f32 %v3533_v19, %v7472_v63  ;;  %v3535_v60 = vpop.f32.mrb[117].mxu0 }
 0x6c4   :  { %v3835_v59 = vmax.f32 %v3623_v5, %v3631_v56  ;;  %v3637_v39 = vmax.f32 %v5277_v25, 0.0  ;;  %v5309_v54 = vadd.f32 %v3535_v60, %v7476_v15  ;;  %v3217_v58 = vpop.f32.mrb[86].mxu1 }
 0x6c5   :  { %v3797_v45 = vmax.f32 %v3796_v22, %v3636_v20  ;;  %v3638_v9 = vmax.f32 %v5308_v52, 0.0  ;;  %v5278_v36 = vadd.f32 %v3217_v58, %v7465_v42  ;;  %v3219_v61 = vpop.f32.mrb[87].mxu1 }
 0x6c6   :  { %v3810_v16 = vmax.f32 %v3809_v37, %v3637_v39  ;;  %v3639_v48 = vmax.f32 %v5309_v54, 0.0  ;;  %v3539_v1 = vpop.f32.mrb[118].mxu0  ;;  %v5279_v11 = vadd.f32 %v3219_v61, %v7469_v55 }
 0x6c7   :  { %v3823_v34 = vmax.f32 %v3822_v2, %v3638_v9  ;;  %v3644_v4 = vmax.f32 %v5278_v36, 0.0  ;;  %v5310_v10 = vadd.f32 %v3539_v1, %v7472_v63  ;;  %v3541_v44 = vpop.f32.mrb[119].mxu0 }
 0x6c8   :  { %v3836_v53 = vmax.f32 %v3835_v59, %v3639_v48  ;;  %v3645_v24 = vmax.f32 %v5279_v11, 0.0  ;;  %v5311_v7 = vadd.f32 %v3541_v44, %v7476_v15  ;;  %v3223_v51 = vpop.f32.mrb[88].mxu1 }
 0x6c9   :  { %v3798_v18 = vmax.f32 %v3797_v45, %v3644_v4  ;;  %v3646_v27 = vmax.f32 %v5310_v10, 0.0  ;;  %v5280_v8 = vadd.f32 %v3223_v51, %v7465_v42  ;;  %v3225_v49 = vpop.f32.mrb[89].mxu1 }
 0x6ca   :  { %v3811_v12 = vmax.f32 %v3810_v16, %v3645_v24  ;;  %v3647_v30 = vmax.f32 %v5311_v7, 0.0  ;;  %v3545_v41 = vpop.f32.mrb[120].mxu0  ;;  %v5281_v23 = vadd.f32 %v3225_v49, %v7469_v55 }
 0x6cb   :  { %v3824_v0 = vmax.f32 %v3823_v34, %v3646_v27  ;;  %v3652_v28 = vmax.f32 %v5280_v8, 0.0  ;;  %v5312_v29 = vadd.f32 %v3545_v41, %v7472_v63  ;;  %v3547_v40 = vpop.f32.mrb[121].mxu0 }
 0x6cc   :  { %v3837_v47 = vmax.f32 %v3836_v53, %v3647_v30  ;;  %v3653_v14 = vmax.f32 %v5281_v23, 0.0  ;;  %v5313_v32 = vadd.f32 %v3547_v40, %v7476_v15  ;;  %v3229_v33 = vpop.f32.mrb[90].mxu1 }
 0x6cd   :  { %v3799_v17 = vmax.f32 %v3798_v18, %v3652_v28  ;;  %v3654_v6 = vmax.f32 %v5312_v29, 0.0  ;;  %v5282_v22 = vadd.f32 %v3229_v33, %v7465_v42  ;;  %v3231_v38 = vpop.f32.mrb[91].mxu1 }
 0x6ce   :  { %v3812_v31 = vmax.f32 %v3811_v12, %v3653_v14  ;;  %v3655_v57 = vmax.f32 %v5313_v32, 0.0  ;;  %v3551_v5 = vpop.f32.mrb[122].mxu0  ;;  %v5283_v37 = vadd.f32 %v3231_v38, %v7469_v55 }
 0x6cf   :  { %v3825_v56 = vmax.f32 %v3824_v0, %v3654_v6  ;;  %v3660_v19 = vmax.f32 %v5282_v22, 0.0  ;;  %v5314_v25 = vadd.f32 %v3551_v5, %v7472_v63  ;;  %v3553_v2 = vpop.f32.mrb[123].mxu0 }
 0x6d0   :  { %v3838_v20 = vmax.f32 %v3837_v47, %v3655_v57  ;;  %v3661_v52 = vmax.f32 %v5283_v37, 0.0  ;;  %v5315_v60 = vadd.f32 %v3553_v2, %v7476_v15  ;;  %v3235_v59 = vpop.f32.mrb[92].mxu1 }
 0x6d1   :  { %v3800_v39 = vmax.f32 %v3799_v17, %v3660_v19  ;;  %v3662_v54 = vmax.f32 %v5314_v25, 0.0  ;;  %v5284_v58 = vadd.f32 %v3235_v59, %v7465_v42  ;;  %v3237_v45 = vpop.f32.mrb[93].mxu1 }
 0x6d2   :  { %v3813_v9 = vmax.f32 %v3812_v31, %v3661_v52  ;;  %v3663_v36 = vmax.f32 %v5315_v60, 0.0  ;;  %v3557_v61 = vpop.f32.mrb[124].mxu0  ;;  %v5285_v16 = vadd.f32 %v3237_v45, %v7469_v55 }
 0x6d3   :  { %v3826_v48 = vmax.f32 %v3825_v56, %v3662_v54  ;;  %v3668_v1 = vmax.f32 %v5284_v58, 0.0  ;;  %v5316_v11 = vadd.f32 %v3557_v61, %v7472_v63  ;;  %v3559_v34 = vpop.f32.mrb[125].mxu0 }
 0x6d4   :  { %v3839_v4 = vmax.f32 %v3838_v20, %v3663_v36  ;;  %v3669_v10 = vmax.f32 %v5285_v16, 0.0  ;;  %v5317_v44 = vadd.f32 %v3559_v34, %v7476_v15  ;;  %v3241_v53 = vpop.f32.mrb[94].mxu1 }
 0x6d5   :  { %v3801_v24 = vmax.f32 %v3800_v39, %v3668_v1  ;;  %v3670_v7 = vmax.f32 %v5316_v11, 0.0  ;;  %v5286_v51 = vadd.f32 %v3241_v53, %v7465_v42  ;;  %v3243_v18 = vpop.f32.mrb[95].mxu1 }
 0x6d6   :  { %v3814_v27 = vmax.f32 %v3813_v9, %v3669_v10  ;;  %v3671_v8 = vmax.f32 %v5317_v44, 0.0  ;;  %v3563_v49 = vpop.f32.mrb[126].mxu0  ;;  %v5287_v12 = vadd.f32 %v3243_v18, %v7469_v55 }
 0x6d7   :  { %v3827_v30 = vmax.f32 %v3826_v48, %v3670_v7  ;;  %v3676_v41 = vmax.f32 %v5286_v51, 0.0  ;;  %v5318_v23 = vadd.f32 %v3563_v49, %v7472_v63  ;;  %v3565_v0 = vpop.f32.mrb[127].mxu0 }
 0x6d8   :  { %v3840_v28 = vmax.f32 %v3839_v4, %v3671_v8  ;;  %v3677_v29 = vmax.f32 %v5287_v12, 0.0  ;;  %v5319_v40 = vadd.f32 %v3565_v0, %v7476_v15  ;;  %v3247_v47 = vpop.f32.mrb[96].mxu1 }
 0x6d9   :  { %v7509_v14 = vmax.f32 %v3801_v24, %v3676_v41  ;;  %v3678_v32 = vmax.f32 %v5318_v23, 0.0  ;;  %v3249_v33 = vpop.f32.mrb[97].mxu1  ;;  %v5288_v31 = vadd.f32 %v3247_v47, %v7465_v42 }
 0x6da   :  { %v7511_v17 = vmax.f32 %v3814_v27, %v3677_v29  ;;  %v3679_v6 = vmax.f32 %v5319_v40, 0.0  ;;  %v3569_v22 = vpop.f32.mrb[128].mxu0  ;;  %v5289_v37 = vadd.f32 %v3249_v33, %v7469_v55 }
 0x6db   :  { %v7513_v38 = vmax.f32 %v3827_v30, %v3678_v32  ;;  %v3571_v57 = vpop.f32.mrb[129].mxu0  ;;  %v5320_v19 = vadd.f32 %v3569_v22, %v7472_v63  ;;  %v3684_v59 = vmax.f32 %v5288_v31, 0.0 }
 0x6dc   :  { %v7516_v5 = vmax.f32 %v3840_v28, %v3679_v6  ;;  %v3253_v56 = vpop.f32.mrb[98].mxu1  ;;  %v5321_v20 = vadd.f32 %v3571_v57, %v7476_v15  ;;  %v3685_v45 = vmax.f32 %v5289_v37, 0.0 }
 0x6dd   :  { %v5290_v25 = vadd.f32 %v3253_v56, %v7465_v42  ;;  %v3255_v2 = vpop.f32.mrb[99].mxu1  ;;  %v3686_v16 = vmax.f32 %v5320_v19, 0.0 }
 0x6de   :  { %v3575_v52 = vpop.f32.mrb[130].mxu0  ;;  %v5291_v60 = vadd.f32 %v3255_v2, %v7469_v55  ;;  %v3687_v34 = vmax.f32 %v5321_v20, 0.0 }
 0x6df   :  { %v3692_v39 = vmax.f32 %v5290_v25, 0.0  ;;  %v5322_v54 = vadd.f32 %v3575_v52, %v7472_v63  ;;  %v3577_v58 = vpop.f32.mrb[131].mxu0 }
 0x6e0   :  { %v3693_v9 = vmax.f32 %v5291_v60, 0.0  ;;  %v5323_v36 = vadd.f32 %v3577_v58, %v7476_v15  ;;  %v3259_v61 = vpop.f32.mrb[100].mxu1 }
 0x6e1   :  { %v3991_v48 = vmax.f32 %v3684_v59, %v3692_v39  ;;  %v3694_v1 = vmax.f32 %v5322_v54, 0.0  ;;  %v3261_v11 = vpop.f32.mrb[101].mxu1  ;;  %v5292_v24 = vadd.f32 %v3259_v61, %v7465_v42 }
 0x6e2   :  { %v4004_v4 = vmax.f32 %v3685_v45, %v3693_v9  ;;  %v3695_v10 = vmax.f32 %v5323_v36, 0.0  ;;  %v3581_v44 = vpop.f32.mrb[132].mxu0  ;;  %v5293_v49 = vadd.f32 %v3261_v11, %v7469_v55 }
 0x6e3   :  { %v4017_v53 = vmax.f32 %v3686_v16, %v3694_v1  ;;  %v3583_v7 = vpop.f32.mrb[133].mxu0  ;;  %v5324_v18 = vadd.f32 %v3581_v44, %v7472_v63  ;;  %v3700_v8 = vmax.f32 %v5292_v24, 0.0 }
 0x6e4   :  { %v4030_v51 = vmax.f32 %v3687_v34, %v3695_v10  ;;  %v3265_v27 = vpop.f32.mrb[102].mxu1  ;;  %v5325_v41 = vadd.f32 %v3583_v7, %v7476_v15  ;;  %v3701_v28 = vmax.f32 %v5293_v49, 0.0 }
 0x6e5   :  { %v3267_v12 = vpop.f32.mrb[103].mxu1  ;;  %v3702_v30 = vmax.f32 %v5324_v18, 0.0  ;;  %v3992_v0 = vmax.f32 %v3991_v48, %v3700_v8  ;;  %v5294_v29 = vadd.f32 %v3265_v27, %v7465_v42  ;;  %v3803_v18 = vrot.slane %v7509_v14, 4 }
 0x6e6   :  { %v3587_v23 = vpop.f32.mrb[134].mxu0  ;;  %v3703_v32 = vmax.f32 %v5325_v41, 0.0  ;;  %v4005_v22 = vmax.f32 %v4004_v4, %v3701_v28  ;;  %v5295_v57 = vadd.f32 %v3267_v12, %v7469_v55  ;;  %v3816_v8 = vrot.slane %v7511_v17, 4 }
 0x6e7   :  { %v3589_v40 = vpop.f32.mrb[135].mxu0  ;;  %v4018_v47 = vmax.f32 %v4017_v53, %v3702_v30  ;;  %v5326_v33 = vadd.f32 %v3587_v23, %v7472_v63  ;;  %v3708_v31 = vmax.f32 %v5294_v29, 0.0  ;;  %v3433_v29 = vadd.f32 %v7445_v26, %v7472_v63 }
 0x6e8   :  { %v3271_v6 = vpop.f32.mrb[104].mxu1  ;;  %v5327_v37 = vadd.f32 %v3589_v40, %v7476_v15  ;;  %v4031_v19 = vmax.f32 %v4030_v51, %v3703_v32  ;;  %v3709_v60 = vmax.f32 %v5295_v57, 0.0  ;;  %v3804_v40 = vmax.f32 %v7509_v14, %v3803_v18 }
 0x6e9   :  { %v3273_v56 = vpop.f32.mrb[105].mxu1  ;;  %v3710_v25 = vmax.f32 %v5326_v33, 0.0  ;;  %v5296_v2 = vadd.f32 %v3271_v6, %v7465_v42  ;;  %v3993_v52 = vmax.f32 %v3992_v0, %v3708_v31  ;;  %v3435_v32 = vadd.f32 %v7447_v43, %v7476_v15 }
 0x6ea   :  { %v5297_v20 = vadd.f32 %v3273_v56, %v7469_v55  ;;  %v3711_v59 = vmax.f32 %v5327_v37, 0.0  ;;  %v4006_v9 = vmax.f32 %v4005_v22, %v3709_v60  ;;  %v3817_v33 = vmax.f32 %v7511_v17, %v3816_v8 }
 0x6eb   :  { %v4019_v39 = vmax.f32 %v4018_v47, %v3710_v25  ;;  %v3716_v54 = vmax.f32 %v5296_v2, 0.0  ;;  %v3441_v14 = vadd.f32 %v7451_v35, %v7476_v15  ;;  %v3447_v35 = vadd.f32 %v7455_v13, %v7476_v15 }
 0x6ec   :  { %v3717_v58 = vmax.f32 %v5297_v20, 0.0  ;;  %v3277_v45 = vpop.f32.mrb[106].mxu1  ;;  %v4032_v36 = vmax.f32 %v4031_v19, %v3711_v59  ;;  %v3805_v19 = vrot.slane %v3804_v40, 2  ;;  %v3818_v2 = vrot.slane %v3817_v33, 2 }
 0x6ed   :  { %v5298_v61 = vadd.f32 %v3277_v45, %v7465_v42  ;;  %v3279_v16 = vpop.f32.mrb[107].mxu1  ;;  %v3994_v48 = vmax.f32 %v3993_v52, %v3716_v54  ;;  %v3829_v13 = vrot.slane %v7513_v38, 4 }
 0x6ee   :  { %v5299_v1 = vadd.f32 %v3279_v16, %v7469_v55  ;;  %v4007_v11 = vmax.f32 %v4006_v9, %v3717_v58 }
 0x6ef   :  { %v3724_v34 = vmax.f32 %v5298_v61, 0.0  ;;  %v3806_v61 = vmax.f32 %v3804_v40, %v3805_v19 }
 0x6f0   :  { %v3725_v4 = vmax.f32 %v5299_v1, 0.0  ;;  %v3283_v10 = vpop.f32.mrb[108].mxu1  ;;  %v3819_v1 = vmax.f32 %v3817_v33, %v3818_v2 }
 0x6f1   :  { %v3995_v44 = vmax.f32 %v3994_v48, %v3724_v34  ;;  %v5300_v53 = vadd.f32 %v3283_v10, %v7465_v42  ;;  %v3285_v24 = vpop.f32.mrb[109].mxu1  ;;  %v3807_v18 = vrot.slane %v3806_v61, 1 }
 0x6f2   :  { %v4008_v7 = vmax.f32 %v4007_v11, %v3725_v4  ;;  %v5301_v51 = vadd.f32 %v3285_v24, %v7469_v55 }
 0x6f3   :  { %v3732_v27 = vmax.f32 %v5300_v53, 0.0  ;;  %v3808_v40 = vmax.f32 %v3806_v61, %v3807_v18 }
 0x6f4   :  { %v3733_v49 = vmax.f32 %v5301_v51, 0.0  ;;  %v3289_v12 = vpop.f32.mrb[110].mxu1 }
 0x6f5   :  { %v3996_v30 = vmax.f32 %v3995_v44, %v3732_v27  ;;  %v5302_v41 = vadd.f32 %v3289_v12, %v7465_v42  ;;  %v3291_v23 = vpop.f32.mrb[111].mxu1  ;;  %v3842_v12 = vrot.slane %v7516_v5, 4 }
 0x6f6   :  { %v4009_v0 = vmax.f32 %v4008_v7, %v3733_v49  ;;  %v5303_v28 = vadd.f32 %v3291_v23, %v7469_v55  ;;  %v3439_v55 = vadd.f32 %v7449_v3, %v7472_v63  ;;  %v3445_v3 = vadd.f32 %v7453_v62, %v7472_v63 }
 0x6f7   :  { %v3740_v47 = vmax.f32 %v5302_v41, 0.0  ;;  %v3453_v62 = vadd.f32 %v7462_v46, %v7476_v15  ;;  %v3820_v49 = vrot.slane %v3819_v1, 1 }
 0x6f8   :  { %v3741_v6 = vmax.f32 %v5303_v28, 0.0  ;;  %v3593_v22 = vpop.f32.mrb[112].mxu1 }
 0x6f9   :  { %v3997_v31 = vmax.f32 %v3996_v30, %v3740_v47  ;;  %v3594_v57 = vadd.f32 %v3593_v22, %v3433_v29  ;;  %v3595_v42 = vpop.f32.mrb[113].mxu1  ;;  %v3830_v47 = vmax.f32 %v7513_v38, %v3829_v13  ;;  %v3843_v22 = vmax.f32 %v7516_v5, %v3842_v12 }
 0x6fa   :  { %v4010_v37 = vmax.f32 %v4009_v0, %v3741_v6  ;;  %v3596_v56 = vadd.f32 %v3595_v42, %v3435_v32  ;;  %v3821_v6 = vmax.f32 %v3819_v1, %v3820_v49 }
 0x6fb   :  { %v3998_v26 = vrot.slane %v3997_v31, 4  ;;  %v3718_v25 = vmax.f32 %v3594_v57, 0.0  ;;  %v3831_v19 = vrot.slane %v3830_v47, 2 }
 0x6fc   :  { %v4011_v43 = vrot.slane %v4010_v37, 4  ;;  %v3719_v20 = vmax.f32 %v3596_v56, 0.0  ;;  %v3599_v17 = vpop.f32.mrb[114].mxu1 }
 0x6fd   :  { %v3999_v52 = vmax.f32 %v3997_v31, %v3998_v26  ;;  %v4020_v60 = vmax.f32 %v4019_v39, %v3718_v25  ;;  %v3600_v59 = vadd.f32 %v3599_v17, %v3439_v55  ;;  %v3601_v54 = vpop.f32.mrb[115].mxu1  ;;  %v3451_v39 = vadd.f32 %v7459_v21, %v7472_v63 }
 0x6fe   :  { %v4012_v58 = vmax.f32 %v4010_v37, %v4011_v43  ;;  %v4033_v45 = vmax.f32 %v4032_v36, %v3719_v20  ;;  %v3602_v9 = vadd.f32 %v3601_v54, %v3441_v14  ;;  %v3844_v14 = vrot.slane %v3843_v22, 2 }
 0x6ff   :  { %v4000_v16 = vrot.slane %v3999_v52, 2  ;;  %v3726_v48 = vmax.f32 %v3600_v59, 0.0  ;;  %v3832_v20 = vmax.f32 %v3830_v47, %v3831_v19 }
 0x700   :  { %v4013_v11 = vrot.slane %v4012_v58, 2  ;;  %v3727_v34 = vmax.f32 %v3602_v9, 0.0  ;;  %v3605_v4 = vpop.f32.mrb[116].mxu1 }
 0x701   :  { %v4001_v10 = vmax.f32 %v3999_v52, %v4000_v16  ;;  %v4021_v44 = vmax.f32 %v4020_v60, %v3726_v48  ;;  %v3606_v36 = vadd.f32 %v3605_v4, %v3445_v3  ;;  %v3607_v53 = vpop.f32.mrb[117].mxu1  ;;  %v3845_v52 = vmax.f32 %v3843_v22, %v3844_v14 }
 0x702   :  { %v4014_v24 = vmax.f32 %v4012_v58, %v4013_v11  ;;  %v4034_v7 = vmax.f32 %v4033_v45, %v3727_v34  ;;  %v3608_v51 = vadd.f32 %v3607_v53, %v3447_v35  ;;  %v3833_v54 = vrot.slane %v3832_v20, 1 }
 0x703   :  { %v4002_v27 = vrot.slane %v4001_v10, 1  ;;  %v3734_v8 = vmax.f32 %v3606_v36, 0.0  ;;  %v3846_v45 = vrot.slane %v3845_v52, 1 }
 0x704   :  { %v4015_v30 = vrot.slane %v4014_v24, 1  ;;  %v3735_v21 = vmax.f32 %v3608_v51, 0.0  ;;  %v3611_v63 = vpop.f32.mrb[118].mxu1  ;;  %v3834_v16 = vmax.f32 %v3832_v20, %v3833_v54 }
 0x705   :  { %v4003_v41 = vmax.f32 %v4001_v10, %v4002_v27  ;;  %v4022_v23 = vmax.f32 %v4021_v44, %v3734_v8  ;;  %v3612_v0 = vadd.f32 %v3611_v63, %v3451_v39  ;;  %v3613_v28 = vpop.f32.mrb[119].mxu1  ;;  %v3847_v35 = vmax.f32 %v3845_v52, %v3846_v45 }
 0x706   :  { %v4016_v29 = vmax.f32 %v4014_v24, %v4015_v30  ;;  %v4035_v46 = vmax.f32 %v4034_v7, %v3735_v21  ;;  %v3614_v15 = vadd.f32 %v3613_v28, %v3453_v62 }
 0x707   :  { %v4153_v32 = vrot.slane %v4003_v41, 7  ;;  %v3742_v33 = vmax.f32 %v3612_v0, 0.0 }
 0x708   :  { %v4154_v31 = vrot.slane %v4016_v29, 7  ;;  %v3743_v57 = vmax.f32 %v3614_v15, 0.0 }
 0x709   :  { %v4184_v42 = vsel %vm4179_vm1, %v3808_v40, %v4153_v32  ;;  %v4023_v37 = vmax.f32 %v4022_v23, %v3742_v33 }
 0x70a   :  { %v4185_v56 = vsel %vm4179_vm1, %v3821_v6, %v4154_v31  ;;  %v4036_v55 = vmax.f32 %v4035_v46, %v3743_v57 }
 0x70b   :  { %v4024_v26 = vrot.slane %v4023_v37, 4  ;;  %v4227_v25 = vcombine.low %v4184_v42, %v4185_v56 }
 0x70c   :  { %v4037_v2 = vrot.slane %v4036_v55, 4 }
 0x70d   :  { %v4025_v43 = vmax.f32 %v4023_v37, %v4024_v26  ;;  %v4235_v39 = vrot.slane %v4227_v25, %v7822_v50 }
 0x70e   :  { %v4038_v38 = vmax.f32 %v4036_v55, %v4037_v2 }
 0x70f   :  { %v4026_v17 = vrot.slane %v4025_v43, 2 }
 0x710   :  { %v4039_v60 = vrot.slane %v4038_v38, 2 }
 0x711   :  { %v4027_v5 = vmax.f32 %v4025_v43, %v4026_v17 }
 0x712   :  { %v4040_v59 = vmax.f32 %v4038_v38, %v4039_v60 }
 0x713   :  { %v4028_v58 = vrot.slane %v4027_v5, 1 }
 0x714   :  { %v4041_v9 = vrot.slane %v4040_v59, 1 }
 0x715   :  { %v4029_v3 = vmax.f32 %v4027_v5, %v4028_v58 }
 0x716   :  { %v4042_v61 = vmax.f32 %v4040_v59, %v4041_v9 }
 0x717   :  { %v4155_v48 = vrot.slane %v4029_v3, 7 }
 0x718   :  { %v4156_v1 = vrot.slane %v4042_v61, 7 }
 0x719   :  { %v4186_v11 = vsel %vm4179_vm1, %v3834_v16, %v4155_v48 }
 0x71a   :  { %v4187_v34 = vsel %vm4179_vm1, %v3847_v35, %v4156_v1 }
 0x71b   :  { %v4228_v4 = vcombine.low %v4186_v11, %v4187_v34 }
 0x71d   :  { %v4242_v10 = vrot.slane %v4228_v4, %v7822_v50 }
 0x71f   :  { %v4243_v44 = vcombine.low %v4235_v39, %v4242_v10 }
 0x721   :  { %4282 = vst [vmem:[#allocation22 + $0x8] sm:$0xff] %v4243_v44 }
 0x722   :  { %5795 = shalt.err (!%p5792_p2)
}
 0x723   :  { %s5796_s8 = scalar_lea.hbm %s7596_s13, 480 }
 0x724   :  { %p5797_p3 = scmp.ne.s32.totalorder %s7596_s13, %s5796_s8  ;;  %p5800_p4 = scmp.lt.u32.totalorder %s5796_s8, %s7596_s13 }
 0x726   :  { %p5802_p5 = pnand %p5800_p4, %p5797_p3 }
 0x728   :  { %5805 = shalt.err (!%p5802_p5)
}
 0x729   :  { %4294 = dma.vmem_to_hbm [thread:$0]  %s4292_s30, 480, %s7596_s13, [#allocation4]  }
 0x72a   :  { %5820 = dma.done.wait [#allocation4], 480  }
 0x72b   :  { %5821 = vsyncadd [#allocation4], 4294966816 }
 0x72c   :  { %4298 = vsyncpa [#allocation3], 1 }
 0x72d   :  { %4299 = vsyncpa [#allocation6], 1 }
 0x72e   :  { %4300 = vsyncpa [#allocation9], 1 }
 0x72f   :  { %4301 = vsyncpa [#allocation12], 1 }
 0x730   :  { %4302 = vsyncpa [#allocation15], 1 }
 0x731   :  { %4303 = vsyncpa [#allocation18], 1 }
 0x732   :  { %4304 = vsyncpa [#allocation21], 1 }
 0x733   :  { %4305 = vsyncpa [#allocation4], 1 }

</bundles_post_ra>
